<compile_context>
chip_gen: v7x
topology: tpu7x:2x2x1
jax: 0.10.0
libtpu: 0.0.40
codegen_flags: <defaults>
</compile_context>

<pallas_src>
import functools
import math

import jax
import jax.numpy as jnp
from jax import lax
from jax.experimental import pallas as pl
from jax.experimental.pallas import tpu as pltpu

_EPS = 1e-5  # nn.BatchNorm2d default eps


# ---------------------------------------------------------------------------
# Helpers
# ---------------------------------------------------------------------------
def _pick_tile(m, target=256):
    """Largest row-tile <= target that is a multiple of 8 and divides m."""
    if m <= target:
        return m
    for t in range(target, 7, -8):
        if m % t == 0:
            return t
    return m


# ---------------------------------------------------------------------------
# Pallas kernels
# ---------------------------------------------------------------------------
def _matmul_stats_kernel(p_ref, w_ref, o_ref, sum_ref, sumsq_ref):
    """Conv-as-matmul tile + per-channel sum / sumsq accumulation.

    p_ref:     (TM, K)   im2col / reshaped-input rows
    w_ref:     (K, C)    weight (resident, constant index map)
    o_ref:     (TM, C)   raw conv output tile
    sum_ref:   (1, C)    running per-channel sum   (resident across M axis)
    sumsq_ref: (1, C)    running per-channel sumsq (resident across M axis)
    """
    acc = jnp.dot(p_ref[...], w_ref[...], preferred_element_type=jnp.float32)
    o_ref[...] = acc

    @pl.when(pl.program_id(0) == 0)
    def _():
        sum_ref[...] = jnp.zeros_like(sum_ref)
        sumsq_ref[...] = jnp.zeros_like(sumsq_ref)

    sum_ref[...] += jnp.sum(acc, axis=0, keepdims=True)
    sumsq_ref[...] += jnp.sum(acc * acc, axis=0, keepdims=True)


def _conv3x3_s1_kernel(x_ref, w_ref, o_ref, sum_ref, sumsq_ref, *, ho, wo):
    """Implicit-im2col 3x3 stride-1 conv for one padded image.

    x_ref:     (1, H+2, W+2, Cin)  padded NHWC image block
    w_ref:     (9, Cin, Cout)      taps ordered (kh, kw)
    o_ref:     (1, H*W, Cout)      raw conv output for this image
    sum_ref:   (1, Cout)           running per-channel sum   (resident)
    sumsq_ref: (1, Cout)           running per-channel sumsq (resident)
    """
    x = x_ref[0]                                    # (H+2, W+2, Cin)
    cin = x.shape[-1]
    acc = None
    for kh in range(3):
        for kw in range(3):
            tap = x[kh:kh + ho, kw:kw + wo, :].reshape(ho * wo, cin)
            part = jnp.dot(tap, w_ref[kh * 3 + kw],
                           preferred_element_type=jnp.float32)
            acc = part if acc is None else acc + part
    o_ref[0] = acc

    @pl.when(pl.program_id(0) == 0)
    def _():
        sum_ref[...] = jnp.zeros_like(sum_ref)
        sumsq_ref[...] = jnp.zeros_like(sumsq_ref)

    sum_ref[...] += jnp.sum(acc, axis=0, keepdims=True)
    sumsq_ref[...] += jnp.sum(acc * acc, axis=0, keepdims=True)


def _scale_relu_kernel(y_ref, scale_ref, offset_ref, o_ref):
    """Folded BatchNorm (y*scale + offset) + ReLU on an (TM, C) tile."""
    o_ref[...] = jnp.maximum(y_ref[...] * scale_ref[...] + offset_ref[...], 0.0)


def _pool3x3_s1_kernel(x_ref, o_ref, *, op, ho, wo):
    """3x3 stride-1 pooling over one padded image (in-kernel tap accumulation).

    x_ref: (1, H+2, W+2, C) padded image (0 pad for avg, -inf pad for max)
    o_ref: (1, H, W, C)
    """
    x = x_ref[0]
    r = None
    for kh in range(3):
        for kw in range(3):
            t = x[kh:kh + ho, kw:kw + wo, :]
            if r is None:
                r = t
            elif op == "max":
                r = jnp.maximum(r, t)
            else:
                r = r + t
    if op == "avg":
        r = r * (1.0 / 9.0)      # count_include_pad=True -> always /9
    o_ref[0] = r


# ---------------------------------------------------------------------------
# Pallas-backed building blocks
# ---------------------------------------------------------------------------
def _matmul_stats(patches, w2d):
    """Tiled (M,K)@(K,C) with per-channel sum/sumsq accumulated across tiles."""
    m, k = patches.shape
    c = w2d.shape[1]
    tm = _pick_tile(m, 256)
    return pl.pallas_call(
        _matmul_stats_kernel,
        out_shape=(jax.ShapeDtypeStruct((m, c), jnp.float32),
                   jax.ShapeDtypeStruct((1, c), jnp.float32),
                   jax.ShapeDtypeStruct((1, c), jnp.float32)),
        grid=(m // tm,),
        in_specs=[pl.BlockSpec((tm, k), lambda i: (i, 0)),
                  pl.BlockSpec((k, c), lambda i: (0, 0))],
        out_specs=(pl.BlockSpec((tm, c), lambda i: (i, 0)),
                   pl.BlockSpec((1, c), lambda i: (0, 0)),
                   pl.BlockSpec((1, c), lambda i: (0, 0))),
        compiler_params=pltpu.CompilerParams(
            dimension_semantics=("arbitrary",)),   # stats accumulate across M
    )(patches, w2d)


def _conv3x3_s1_stats(x, w):
    """Implicit-im2col 3x3 stride-1 conv, gridded over batch images."""
    n, h, wd, cin = x.shape
    cout = w.shape[-1]
    hp, wp = h + 2, wd + 2
    xp = jnp.pad(x, ((0, 0), (1, 1), (1, 1), (0, 0)))
    w9 = w.reshape(9, cin, cout)
    conv, s, ss = pl.pallas_call(
        functools.partial(_conv3x3_s1_kernel, ho=h, wo=wd),
        out_shape=(jax.ShapeDtypeStruct((n, h * wd, cout), jnp.float32),
                   jax.ShapeDtypeStruct((1, cout), jnp.float32),
                   jax.ShapeDtypeStruct((1, cout), jnp.float32)),
        grid=(n,),
        in_specs=[pl.BlockSpec((1, hp, wp, cin), lambda i: (i, 0, 0, 0)),
                  pl.BlockSpec((9, cin, cout), lambda i: (0, 0, 0))],
        out_specs=(pl.BlockSpec((1, h * wd, cout), lambda i: (i, 0, 0)),
                   pl.BlockSpec((1, cout), lambda i: (0, 0)),
                   pl.BlockSpec((1, cout), lambda i: (0, 0))),
        compiler_params=pltpu.CompilerParams(
            dimension_semantics=("arbitrary",)),
    )(xp, w9)
    return conv.reshape(n * h * wd, cout), s, ss


def _bn_relu_apply(conv2d, s, ss, gamma, beta, count, eps=_EPS):
    """Finalize BN stats on (1,C) vectors, then tiled scale+offset+ReLU pass."""
    count = float(count)
    mean = s / count
    var = jnp.maximum(ss / count - mean * mean, 0.0)     # biased var (PyTorch)
    scale = gamma.reshape(1, -1) * lax.rsqrt(var + eps)
    offset = beta.reshape(1, -1) - mean * scale
    m, c = conv2d.shape
    tm = _pick_tile(m, 256)
    return pl.pallas_call(
        _scale_relu_kernel,
        out_shape=jax.ShapeDtypeStruct((m, c), jnp.float32),
        grid=(m // tm,),
        in_specs=[pl.BlockSpec((tm, c), lambda i: (i, 0)),
                  pl.BlockSpec((1, c), lambda i: (0, 0)),
                  pl.BlockSpec((1, c), lambda i: (0, 0))],
        out_specs=pl.BlockSpec((tm, c), lambda i: (i, 0)),
        compiler_params=pltpu.CompilerParams(
            dimension_semantics=("parallel",)),
    )(conv2d, scale, offset)


def conv1x1_bn_relu_multi(x, params_list):
    """Fused parallel 1x1-conv->BN->ReLU heads sharing the same input.

    Concatenates the head weights along Cout (lane-denser output, one launch,
    single read of x); per-channel BN on the fused output is mathematically
    identical to per-head BN. Returns one NHWC tensor per head.
    """
    n, h, wd, cin = x.shape
    couts = [p["w"].shape[-1] for p in params_list]
    w2d = jnp.concatenate([p["w"].reshape(cin, c)
                           for p, c in zip(params_list, couts)], axis=1)
    gamma = jnp.concatenate([p["gamma"] for p in params_list])
    beta = jnp.concatenate([p["beta"] for p in params_list])
    patches = x.reshape(n * h * wd, cin)                 # metadata-only reshape
    conv, s, ss = _matmul_stats(patches, w2d)
    y = _bn_relu_apply(conv, s, ss, gamma, beta, n * h * wd)
    y = y.reshape(n, h, wd, sum(couts))
    outs, off = [], 0
    for c in couts:
        outs.append(y[..., off:off + c])
        off += c
    return outs


def _gather_taps(x, k, stride, padding):
    """k*k zero-padded taps, each (N, H_out, W_out, C). JAX-side, stride>1 only."""
    n, h, w, c = x.shape
    h_out = (h + 2 * padding - k) // stride + 1
    w_out = (w + 2 * padding - k) // stride + 1
    if padding > 0:
        x = jnp.pad(x, ((0, 0), (padding, padding), (padding, padding), (0, 0)))
    taps = []
    for kh in range(k):
        for kw in range(k):
            taps.append(x[:, kh:kh + (h_out - 1) * stride + 1:stride,
                          kw:kw + (w_out - 1) * stride + 1:stride, :])
    return taps, h_out, w_out


def _im2col(x, k, stride, padding):
    n, _, _, c = x.shape
    taps, h_out, w_out = _gather_taps(x, k, stride, padding)
    patches = jnp.concatenate(taps, axis=-1)             # (N, Ho, Wo, k*k*C)
    return patches.reshape(n * h_out * w_out, k * k * c), h_out, w_out


def conv3x3_bn_relu(x, params, stride):
    """3x3 Conv2d(no bias) -> BatchNorm2d(train) -> ReLU, NHWC."""
    w = params["w"]                                      # (3, 3, Cin, Cout)
    n, h, wd, cin = x.shape
    cout = w.shape[-1]
    if stride == 1:
        ho, wo = h, wd
        conv, s, ss = _conv3x3_s1_stats(x, w)            # implicit im2col
    else:
        patches, ho, wo = _im2col(x, 3, stride, 1)       # small 4x-downsampled case
        conv, s, ss = _matmul_stats(patches, w.reshape(9 * cin, cout))
    y = _bn_relu_apply(conv, s, ss, params["gamma"], params["beta"], n * ho * wo)
    return y.reshape(n, ho, wo, cout)


def pool3x3(x, mode, stride):
    """AvgPool2d(3,1,1) / MaxPool2d(3,stride,1), channels-last."""
    n, h, w, c = x.shape
    pad_value = 0.0 if mode == "avg" else float("-inf")
    xp = jnp.pad(x, ((0, 0), (1, 1), (1, 1), (0, 0)), constant_values=pad_value)
    out = pl.pallas_call(
        functools.partial(_pool3x3_s1_kernel, op=mode, ho=h, wo=w),
        out_shape=jax.ShapeDtypeStruct((n, h, w, c), jnp.float32),
        grid=(n,),
        in_specs=[pl.BlockSpec((1, h + 2, w + 2, c), lambda i: (i, 0, 0, 0))],
        out_specs=pl.BlockSpec((1, h, w, c), lambda i: (i, 0, 0, 0)),
        compiler_params=pltpu.CompilerParams(
            dimension_semantics=("parallel",)),
    )(xp)
    if stride > 1:
        # stride-1 pooled values at (s*ho, s*wo) are exactly the strided pool.
        out = out[:, ::stride, ::stride, :]
    return out


# ---------------------------------------------------------------------------
# Parameters (deterministic, PyTorch-default-style init)
# ---------------------------------------------------------------------------
def _conv_params(key, cin, cout, k):
    # Conv2d default init: kaiming_uniform(a=sqrt(5)) -> U(-b, b), b = 1/sqrt(fan_in)
    bound = 1.0 / math.sqrt(cin * k * k)
    w = jax.random.uniform(key, (k, k, cin, cout), jnp.float32, -bound, bound)
    # BatchNorm2d default init: weight=1, bias=0
    return {"w": w,
            "gamma": jnp.ones((cout,), jnp.float32),
            "beta": jnp.zeros((cout,), jnp.float32)}


# ---------------------------------------------------------------------------
# Block module (Pallas forward + pure-JAX reference)
# ---------------------------------------------------------------------------
class Block:
    def __init__(self, key, in_planes, out_planes, pool_method, stride):
        assert pool_method in ("Avg", "Max")
        self.pool_method = pool_method
        self.stride = stride
        ks = jax.random.split(key, 7)
        self.b0 = [_conv_params(ks[0], in_planes, out_planes, 1),
                   _conv_params(ks[1], out_planes, out_planes, 3)]
        self.b1 = [_conv_params(ks[2], in_planes, out_planes, 1),
                   _conv_params(ks[3], out_planes, out_planes, 3),
                   _conv_params(ks[4], out_planes, out_planes, 3)]
        if pool_method == "Avg":
            assert stride == 1
            self.b2 = _conv_params(ks[5], in_planes, out_planes, 1)
            self.b3 = _conv_params(ks[6], in_planes, out_planes, 1)
        self._fwd = jax.jit(self._forward)

    def _forward(self, x_nchw):
        x = jnp.transpose(x_nchw, (0, 2, 3, 1))          # NCHW -> NHWC
        # Fuse the 1x1 heads that share input x into one wide matmul.
        if self.pool_method == "Avg":
            h0, h1, b2_out = conv1x1_bn_relu_multi(x, [self.b0[0], self.b1[0], self.b2])
        else:
            h0, h1 = conv1x1_bn_relu_multi(x, [self.b0[0], self.b1[0]])
        outs = []
        # branch 0: 1x1 -> 3x3 (stride)
        outs.append(conv3x3_bn_relu(h0, self.b0[1], self.stride))
        # branch 1: 1x1 -> 3x3 -> 3x3 (stride)
        h = conv3x3_bn_relu(h1, self.b1[1], 1)
        outs.append(conv3x3_bn_relu(h, self.b1[2], self.stride))
        if self.pool_method == "Avg":
            outs.append(b2_out)                          # branch 2: 1x1
            pooled = pool3x3(x, "avg", 1)                # branch 3: avgpool -> 1x1
            (y3,) = conv1x1_bn_relu_multi(pooled, [self.b3])
            outs.append(y3)
        else:
            outs.append(pool3x3(x, "max", self.stride))  # branch 2: maxpool
        y = jnp.concatenate(outs, axis=-1)               # cat along channels
        return jnp.transpose(y, (0, 3, 1, 2))            # NHWC -> NCHW

    def __call__(self, x_nchw):
        return self._fwd(x_nchw)

    # ----- pure-JAX reference (for correctness check only) -----
    def reference(self, x_nchw, eps=_EPS):
        def cbr(x, p, stride, padding):
            y = lax.conv_general_dilated(
                x, p["w"], (stride, stride),
                [(padding, padding), (padding, padding)],
                dimension_numbers=("NHWC", "HWIO", "NHWC"))
            mean = jnp.mean(y, axis=(0, 1, 2), keepdims=True)
            var = jnp.var(y, axis=(0, 1, 2), keepdims=True)
            y = (y - mean) * lax.rsqrt(var + eps) * p["gamma"] + p["beta"]
            return jnp.maximum(y, 0.0)

        def avg_pool(x):
            s = lax.reduce_window(x, 0.0, lax.add, (1, 3, 3, 1), (1, 1, 1, 1),
                                  [(0, 0), (1, 1), (1, 1), (0, 0)])
            return s / 9.0

        def max_pool(x, stride):
            return lax.reduce_window(x, -jnp.inf, lax.max, (1, 3, 3, 1),
                                     (1, stride, stride, 1),
                                     [(0, 0), (1, 1), (1, 1), (0, 0)])

        x = jnp.transpose(x_nchw, (0, 2, 3, 1))
        outs = []
        h = cbr(x, self.b0[0], 1, 0)
        h = cbr(h, self.b0[1], self.stride, 1)
        outs.append(h)
        h = cbr(x, self.b1[0], 1, 0)
        h = cbr(h, self.b1[1], 1, 1)
        h = cbr(h, self.b1[2], self.stride, 1)
        outs.append(h)
        if self.pool_method == "Avg":
            outs.append(cbr(x, self.b2, 1, 0))
            outs.append(cbr(avg_pool(x), self.b3, 1, 0))
        else:
            outs.append(max_pool(x, self.stride))
        y = jnp.concatenate(outs, axis=-1)
        return jnp.transpose(y, (0, 3, 1, 2))


# TODO(synk): BatchNorm running-stat updates (a training-time side effect) are
# not reproduced; they do not affect the forward output.

if __name__ == "__main__":
    key = jax.random.PRNGKey(0)
    kx, kavg, kmax = jax.random.split(key, 3)
    x = jax.random.normal(kx, (2, 4, 16, 16), jnp.float32)  # NCHW like PyTorch

    # Config 1: pool_method='Avg', stride=1 -> channels = 4 * out_planes
    blk_avg = Block(kavg, 4, 8, "Avg", 1)
    y_avg = blk_avg(x)
    jax.block_until_ready(y_avg)
    assert y_avg.shape == (2, 32, 16, 16), y_avg.shape
    assert bool(jnp.allclose(y_avg, blk_avg.reference(x), atol=1e-3, rtol=1e-3))

    # Config 2: pool_method='Max', stride=2 -> channels = 2*out_planes + in_planes
    blk_max = Block(kmax, 4, 8, "Max", 2)
    y_max = blk_max(x)
    jax.block_until_ready(y_max)
    assert y_max.shape == (2, 20, 8, 8), y_max.shape
    assert bool(jnp.allclose(y_max, blk_max.reference(x), atol=1e-3, rtol=1e-3))

    print("KERNEL_OK")
</pallas_src>

<mosaic_0001>
module attributes {stable_mosaic.version = 11 : i64} {
  func.func @_scale_relu_kernel(%arg0: i32, %arg1: memref<256x24xf32, #tpu.memory_space<vmem>>, %arg2: memref<1x24xf32, #tpu.memory_space<vmem>>, %arg3: memref<1x24xf32, #tpu.memory_space<vmem>>, %arg4: memref<256x24xf32, #tpu.memory_space<vmem>>) attributes {dimension_semantics = [#tpu.dimension_semantics<parallel>], iteration_bounds = array<i64: 2>, scalar_prefetch = 0 : i64, scratch_operands = 0 : i64, tpu.core_type = #tpu.core_type<tc>, window_params = [{transform_indices = @transform_0, window_bounds = array<i64: 256, 24>}, {pipeline_mode = #tpu.pipeline_mode<synchronous>, transform_indices = @transform_1, window_bounds = array<i64: 1, 24>}, {pipeline_mode = #tpu.pipeline_mode<synchronous>, transform_indices = @transform_2, window_bounds = array<i64: 1, 24>}, {transform_indices = @transform_3, window_bounds = array<i64: 256, 24>}]} {
    %c0 = arith.constant 0 : index
    %c0_0 = arith.constant 0 : index
    %0 = vector.load %arg1[%c0, %c0_0] : memref<256x24xf32, #tpu.memory_space<vmem>>, vector<256x24xf32>
    %c0_1 = arith.constant 0 : index
    %c0_2 = arith.constant 0 : index
    %1 = vector.load %arg2[%c0_1, %c0_2] : memref<1x24xf32, #tpu.memory_space<vmem>>, vector<1x24xf32>
    %2 = vector.broadcast %1 : vector<1x24xf32> to vector<256x24xf32>
    %3 = arith.mulf %0, %2 : vector<256x24xf32>
    %c0_3 = arith.constant 0 : index
    %c0_4 = arith.constant 0 : index
    %4 = vector.load %arg3[%c0_3, %c0_4] : memref<1x24xf32, #tpu.memory_space<vmem>>, vector<1x24xf32>
    %5 = vector.broadcast %4 : vector<1x24xf32> to vector<256x24xf32>
    %6 = arith.addf %3, %5 : vector<256x24xf32>
    %cst = arith.constant 0.000000e+00 : f32
    %7 = vector.broadcast %cst : f32 to vector<256x24xf32>
    %8 = arith.maximumf %6, %7 : vector<256x24xf32>
    %c0_5 = arith.constant 0 : index
    %c0_6 = arith.constant 0 : index
    %9 = vector.load %arg4[%c0_5, %c0_6] : memref<256x24xf32, #tpu.memory_space<vmem>>, vector<256x24xf32>
    tpu.vector_store %arg4[%c0_5, %c0_6], %8 {strides = array<i32>} : memref<256x24xf32, #tpu.memory_space<vmem>>, vector<256x24xf32>,
    return
  }
  func.func @transform_0(%arg0: i32) -> (i32, i32) {
    %c0_i32 = arith.constant 0 : i32
    %c0_i32_0 = arith.constant 0 : i32
    return %arg0, %c0_i32 : i32, i32
  }
  func.func @transform_1(%arg0: i32) -> (i32, i32) {
    %c0_i32 = arith.constant 0 : i32
    %c0_i32_0 = arith.constant 0 : i32
    %c0_i32_1 = arith.constant 0 : i32
    return %c0_i32, %c0_i32_0 : i32, i32
  }
  func.func @transform_2(%arg0: i32) -> (i32, i32) {
    %c0_i32 = arith.constant 0 : i32
    %c0_i32_0 = arith.constant 0 : i32
    %c0_i32_1 = arith.constant 0 : i32
    return %c0_i32, %c0_i32_0 : i32, i32
  }
  func.func @transform_3(%arg0: i32) -> (i32, i32) {
    %c0_i32 = arith.constant 0 : i32
    %c0_i32_0 = arith.constant 0 : i32
    return %arg0, %c0_i32 : i32, i32
  }
}

module attributes {stable_mosaic.version = 11 : i64} {
  func.func @_matmul_stats_kernel(%arg0: i32, %arg1: memref<256x4xf32, #tpu.memory_space<vmem>>, %arg2: memref<4x24xf32, #tpu.memory_space<vmem>>, %arg3: memref<256x24xf32, #tpu.memory_space<vmem>>, %arg4: memref<1x24xf32, #tpu.memory_space<vmem>>, %arg5: memref<1x24xf32, #tpu.memory_space<vmem>>) attributes {dimension_semantics = [#tpu.dimension_semantics<arbitrary>], iteration_bounds = array<i64: 2>, scalar_prefetch = 0 : i64, scratch_operands = 0 : i64, tpu.core_type = #tpu.core_type<tc>, window_params = [{transform_indices = @transform_0, window_bounds = array<i64: 256, 4>}, {pipeline_mode = #tpu.pipeline_mode<synchronous>, transform_indices = @transform_1, window_bounds = array<i64: 4, 24>}, {transform_indices = @transform_2, window_bounds = array<i64: 256, 24>}, {pipeline_mode = #tpu.pipeline_mode<synchronous>, transform_indices = @transform_3, window_bounds = array<i64: 1, 24>}, {pipeline_mode = #tpu.pipeline_mode<synchronous>, transform_indices = @transform_4, window_bounds = array<i64: 1, 24>}]} {
    %c0 = arith.constant 0 : index
    %c0_0 = arith.constant 0 : index
    %0 = vector.load %arg1[%c0, %c0_0] : memref<256x4xf32, #tpu.memory_space<vmem>>, vector<256x4xf32>
    %c0_1 = arith.constant 0 : index
    %c0_2 = arith.constant 0 : index
    %1 = vector.load %arg2[%c0_1, %c0_2] : memref<4x24xf32, #tpu.memory_space<vmem>>, vector<4x24xf32>
    %cst = arith.constant dense<0.000000e+00> : vector<256x24xf32>
    %2 = tpu.matmul %0, %1, %cst {dimension_numbers = #tpu.dot_dimension_numbers<[1], [0], [0], [1], [0, 0, 1, 1], [], []>} : vector<256x4xf32>, vector<4x24xf32>, vector<256x24xf32> -> vector<256x24xf32>
    %c0_3 = arith.constant 0 : index
    %c0_4 = arith.constant 0 : index
    %3 = vector.load %arg3[%c0_3, %c0_4] : memref<256x24xf32, #tpu.memory_space<vmem>>, vector<256x24xf32>
    tpu.vector_store %arg3[%c0_3, %c0_4], %2 {strides = array<i32>} : memref<256x24xf32, #tpu.memory_space<vmem>>, vector<256x24xf32>,
    %c0_i32 = arith.constant 0 : i32
    %4 = arith.cmpi eq, %arg0, %c0_i32 : i32
    %5 = arith.extui %4 : i1 to i32
    %c0_i32_5 = arith.constant 0 : i32
    %6 = arith.cmpi ne, %5, %c0_i32_5 : i32
    scf.if %6 {
      %cst_16 = arith.constant 0.000000e+00 : f32
      %18 = vector.broadcast %cst_16 : f32 to vector<1x24xf32>
      %c0_17 = arith.constant 0 : index
      %c0_18 = arith.constant 0 : index
      %19 = vector.load %arg4[%c0_17, %c0_18] : memref<1x24xf32, #tpu.memory_space<vmem>>, vector<1x24xf32>
      tpu.vector_store %arg4[%c0_17, %c0_18], %18 {strides = array<i32>} : memref<1x24xf32, #tpu.memory_space<vmem>>, vector<1x24xf32>,
      %cst_19 = arith.constant 0.000000e+00 : f32
      %20 = vector.broadcast %cst_19 : f32 to vector<1x24xf32>
      %c0_20 = arith.constant 0 : index
      %c0_21 = arith.constant 0 : index
      %21 = vector.load %arg5[%c0_20, %c0_21] : memref<1x24xf32, #tpu.memory_space<vmem>>, vector<1x24xf32>
      tpu.vector_store %arg5[%c0_20, %c0_21], %20 {strides = array<i32>} : memref<1x24xf32, #tpu.memory_space<vmem>>, vector<1x24xf32>,
    } else {
    }
    %c0_6 = arith.constant 0 : index
    %c0_7 = arith.constant 0 : index
    %7 = vector.load %arg4[%c0_6, %c0_7] : memref<1x24xf32, #tpu.memory_space<vmem>>, vector<1x24xf32>
    %cst_8 = arith.constant dense<0.000000e+00> : vector<24xf32>
    %8 = vector.multi_reduction <add>, %2, %cst_8 [0] : vector<256x24xf32> to vector<24xf32>
    %9 = vector.shape_cast %8 : vector<24xf32> to vector<1x24xf32>
    %10 = arith.addf %7, %9 : vector<1x24xf32>
    %c0_9 = arith.constant 0 : index
    %c0_10 = arith.constant 0 : index
    %11 = vector.load %arg4[%c0_9, %c0_10] : memref<1x24xf32, #tpu.memory_space<vmem>>, vector<1x24xf32>
    tpu.vector_store %arg4[%c0_9, %c0_10], %10 {strides = array<i32>} : memref<1x24xf32, #tpu.memory_space<vmem>>, vector<1x24xf32>,
    %c0_11 = arith.constant 0 : index
    %c0_12 = arith.constant 0 : index
    %12 = vector.load %arg5[%c0_11, %c0_12] : memref<1x24xf32, #tpu.memory_space<vmem>>, vector<1x24xf32>
    %13 = arith.mulf %2, %2 : vector<256x24xf32>
    %cst_13 = arith.constant dense<0.000000e+00> : vector<24xf32>
    %14 = vector.multi_reduction <add>, %13, %cst_13 [0] : vector<256x24xf32> to vector<24xf32>
    %15 = vector.shape_cast %14 : vector<24xf32> to vector<1x24xf32>
    %16 = arith.addf %12, %15 : vector<1x24xf32>
    %c0_14 = arith.constant 0 : index
    %c0_15 = arith.constant 0 : index
    %17 = vector.load %arg5[%c0_14, %c0_15] : memref<1x24xf32, #tpu.memory_space<vmem>>, vector<1x24xf32>
    tpu.vector_store %arg5[%c0_14, %c0_15], %16 {strides = array<i32>} : memref<1x24xf32, #tpu.memory_space<vmem>>, vector<1x24xf32>,
    return
  }
  func.func @transform_0(%arg0: i32) -> (i32, i32) {
    %c0_i32 = arith.constant 0 : i32
    %c0_i32_0 = arith.constant 0 : i32
    return %arg0, %c0_i32 : i32, i32
  }
  func.func @transform_1(%arg0: i32) -> (i32, i32) {
    %c0_i32 = arith.constant 0 : i32
    %c0_i32_0 = arith.constant 0 : i32
    %c0_i32_1 = arith.constant 0 : i32
    return %c0_i32, %c0_i32_0 : i32, i32
  }
  func.func @transform_2(%arg0: i32) -> (i32, i32) {
    %c0_i32 = arith.constant 0 : i32
    %c0_i32_0 = arith.constant 0 : i32
    return %arg0, %c0_i32 : i32, i32
  }
  func.func @transform_3(%arg0: i32) -> (i32, i32) {
    %c0_i32 = arith.constant 0 : i32
    %c0_i32_0 = arith.constant 0 : i32
    %c0_i32_1 = arith.constant 0 : i32
    return %c0_i32, %c0_i32_0 : i32, i32
  }
  func.func @transform_4(%arg0: i32) -> (i32, i32) {
    %c0_i32 = arith.constant 0 : i32
    %c0_i32_0 = arith.constant 0 : i32
    %c0_i32_1 = arith.constant 0 : i32
    return %c0_i32, %c0_i32_0 : i32, i32
  }
}

module attributes {stable_mosaic.version = 11 : i64} {
  func.func @_pool3x3_s1_kernel(%arg0: i32, %arg1: memref<1x18x18x4xf32, #tpu.memory_space<vmem>>, %arg2: memref<1x16x16x4xf32, #tpu.memory_space<vmem>>) attributes {dimension_semantics = [#tpu.dimension_semantics<parallel>], iteration_bounds = array<i64: 2>, scalar_prefetch = 0 : i64, scratch_operands = 0 : i64, tpu.core_type = #tpu.core_type<tc>, window_params = [{transform_indices = @transform_0, window_bounds = array<i64: 1, 18, 18, 4>}, {transform_indices = @transform_1, window_bounds = array<i64: 1, 16, 16, 4>}]} {
    %c0 = arith.constant 0 : index
    %c0_0 = arith.constant 0 : index
    %c0_1 = arith.constant 0 : index
    %c0_2 = arith.constant 0 : index
    %0 = vector.load %arg1[%c0, %c0_0, %c0_1, %c0_2] : memref<1x18x18x4xf32, #tpu.memory_space<vmem>>, vector<1x18x18x4xf32>
    %1 = vector.shape_cast %0 : vector<1x18x18x4xf32> to vector<18x18x4xf32>
    %2 = vector.extract_strided_slice %1 {offsets = [0, 0, 0], sizes = [16, 16, 4], strides = [1, 1, 1]} : vector<18x18x4xf32> to vector<16x16x4xf32>
    %3 = vector.extract_strided_slice %1 {offsets = [0, 1, 0], sizes = [16, 16, 4], strides = [1, 1, 1]} : vector<18x18x4xf32> to vector<16x16x4xf32>
    %4 = arith.addf %2, %3 : vector<16x16x4xf32>
    %5 = vector.extract_strided_slice %1 {offsets = [0, 2, 0], sizes = [16, 16, 4], strides = [1, 1, 1]} : vector<18x18x4xf32> to vector<16x16x4xf32>
    %6 = arith.addf %4, %5 : vector<16x16x4xf32>
    %7 = vector.extract_strided_slice %1 {offsets = [1, 0, 0], sizes = [16, 16, 4], strides = [1, 1, 1]} : vector<18x18x4xf32> to vector<16x16x4xf32>
    %8 = arith.addf %6, %7 : vector<16x16x4xf32>
    %9 = vector.extract_strided_slice %1 {offsets = [1, 1, 0], sizes = [16, 16, 4], strides = [1, 1, 1]} : vector<18x18x4xf32> to vector<16x16x4xf32>
    %10 = arith.addf %8, %9 : vector<16x16x4xf32>
    %11 = vector.extract_strided_slice %1 {offsets = [1, 2, 0], sizes = [16, 16, 4], strides = [1, 1, 1]} : vector<18x18x4xf32> to vector<16x16x4xf32>
    %12 = arith.addf %10, %11 : vector<16x16x4xf32>
    %13 = vector.extract_strided_slice %1 {offsets = [2, 0, 0], sizes = [16, 16, 4], strides = [1, 1, 1]} : vector<18x18x4xf32> to vector<16x16x4xf32>
    %14 = arith.addf %12, %13 : vector<16x16x4xf32>
    %15 = vector.extract_strided_slice %1 {offsets = [2, 1, 0], sizes = [16, 16, 4], strides = [1, 1, 1]} : vector<18x18x4xf32> to vector<16x16x4xf32>
    %16 = arith.addf %14, %15 : vector<16x16x4xf32>
    %17 = vector.extract_strided_slice %1 {offsets = [2, 2, 0], sizes = [16, 16, 4], strides = [1, 1, 1]} : vector<18x18x4xf32> to vector<16x16x4xf32>
    %18 = arith.addf %16, %17 : vector<16x16x4xf32>
    %cst = arith.constant 0.111111112 : f32
    %19 = vector.broadcast %cst : f32 to vector<16x16x4xf32>
    %20 = arith.mulf %18, %19 : vector<16x16x4xf32>
    %c0_3 = arith.constant 0 : index
    %c0_4 = arith.constant 0 : index
    %c0_5 = arith.constant 0 : index
    %c0_6 = arith.constant 0 : index
    %21 = vector.load %arg2[%c0_3, %c0_4, %c0_5, %c0_6] : memref<1x16x16x4xf32, #tpu.memory_space<vmem>>, vector<1x16x16x4xf32>
    %22 = vector.shape_cast %21 : vector<1x16x16x4xf32> to vector<16x16x4xf32>
    %23 = vector.shape_cast %20 : vector<16x16x4xf32> to vector<1x16x16x4xf32>
    tpu.vector_store %arg2[%c0_3, %c0_4, %c0_5, %c0_6], %23 {strides = array<i32>} : memref<1x16x16x4xf32, #tpu.memory_space<vmem>>, vector<1x16x16x4xf32>,
    return
  }
  func.func @transform_0(%arg0: i32) -> (i32, i32, i32, i32) {
    %c0_i32 = arith.constant 0 : i32
    %c0_i32_0 = arith.constant 0 : i32
    %c0_i32_1 = arith.constant 0 : i32
    %c0_i32_2 = arith.constant 0 : i32
    return %arg0, %c0_i32, %c0_i32_0, %c0_i32_1 : i32, i32, i32, i32
  }
  func.func @transform_1(%arg0: i32) -> (i32, i32, i32, i32) {
    %c0_i32 = arith.constant 0 : i32
    %c0_i32_0 = arith.constant 0 : i32
    %c0_i32_1 = arith.constant 0 : i32
    %c0_i32_2 = arith.constant 0 : i32
    return %arg0, %c0_i32, %c0_i32_0, %c0_i32_1 : i32, i32, i32, i32
  }
}

module attributes {stable_mosaic.version = 11 : i64} {
  func.func @_matmul_stats_kernel(%arg0: i32, %arg1: memref<256x4xf32, #tpu.memory_space<vmem>>, %arg2: memref<4x8xf32, #tpu.memory_space<vmem>>, %arg3: memref<256x8xf32, #tpu.memory_space<vmem>>, %arg4: memref<1x8xf32, #tpu.memory_space<vmem>>, %arg5: memref<1x8xf32, #tpu.memory_space<vmem>>) attributes {dimension_semantics = [#tpu.dimension_semantics<arbitrary>], iteration_bounds = array<i64: 2>, scalar_prefetch = 0 : i64, scratch_operands = 0 : i64, tpu.core_type = #tpu.core_type<tc>, window_params = [{transform_indices = @transform_0, window_bounds = array<i64: 256, 4>}, {pipeline_mode = #tpu.pipeline_mode<synchronous>, transform_indices = @transform_1, window_bounds = array<i64: 4, 8>}, {transform_indices = @transform_2, window_bounds = array<i64: 256, 8>}, {pipeline_mode = #tpu.pipeline_mode<synchronous>, transform_indices = @transform_3, window_bounds = array<i64: 1, 8>}, {pipeline_mode = #tpu.pipeline_mode<synchronous>, transform_indices = @transform_4, window_bounds = array<i64: 1, 8>}]} {
    %c0 = arith.constant 0 : index
    %c0_0 = arith.constant 0 : index
    %0 = vector.load %arg1[%c0, %c0_0] : memref<256x4xf32, #tpu.memory_space<vmem>>, vector<256x4xf32>
    %c0_1 = arith.constant 0 : index
    %c0_2 = arith.constant 0 : index
    %1 = vector.load %arg2[%c0_1, %c0_2] : memref<4x8xf32, #tpu.memory_space<vmem>>, vector<4x8xf32>
    %cst = arith.constant dense<0.000000e+00> : vector<256x8xf32>
    %2 = tpu.matmul %0, %1, %cst {dimension_numbers = #tpu.dot_dimension_numbers<[1], [0], [0], [1], [0, 0, 1, 1], [], []>} : vector<256x4xf32>, vector<4x8xf32>, vector<256x8xf32> -> vector<256x8xf32>
    %c0_3 = arith.constant 0 : index
    %c0_4 = arith.constant 0 : index
    %3 = vector.load %arg3[%c0_3, %c0_4] : memref<256x8xf32, #tpu.memory_space<vmem>>, vector<256x8xf32>
    tpu.vector_store %arg3[%c0_3, %c0_4], %2 {strides = array<i32>} : memref<256x8xf32, #tpu.memory_space<vmem>>, vector<256x8xf32>,
    %c0_i32 = arith.constant 0 : i32
    %4 = arith.cmpi eq, %arg0, %c0_i32 : i32
    %5 = arith.extui %4 : i1 to i32
    %c0_i32_5 = arith.constant 0 : i32
    %6 = arith.cmpi ne, %5, %c0_i32_5 : i32
    scf.if %6 {
      %cst_16 = arith.constant 0.000000e+00 : f32
      %18 = vector.broadcast %cst_16 : f32 to vector<1x8xf32>
      %c0_17 = arith.constant 0 : index
      %c0_18 = arith.constant 0 : index
      %19 = vector.load %arg4[%c0_17, %c0_18] : memref<1x8xf32, #tpu.memory_space<vmem>>, vector<1x8xf32>
      tpu.vector_store %arg4[%c0_17, %c0_18], %18 {strides = array<i32>} : memref<1x8xf32, #tpu.memory_space<vmem>>, vector<1x8xf32>,
      %cst_19 = arith.constant 0.000000e+00 : f32
      %20 = vector.broadcast %cst_19 : f32 to vector<1x8xf32>
      %c0_20 = arith.constant 0 : index
      %c0_21 = arith.constant 0 : index
      %21 = vector.load %arg5[%c0_20, %c0_21] : memref<1x8xf32, #tpu.memory_space<vmem>>, vector<1x8xf32>
      tpu.vector_store %arg5[%c0_20, %c0_21], %20 {strides = array<i32>} : memref<1x8xf32, #tpu.memory_space<vmem>>, vector<1x8xf32>,
    } else {
    }
    %c0_6 = arith.constant 0 : index
    %c0_7 = arith.constant 0 : index
    %7 = vector.load %arg4[%c0_6, %c0_7] : memref<1x8xf32, #tpu.memory_space<vmem>>, vector<1x8xf32>
    %cst_8 = arith.constant dense<0.000000e+00> : vector<8xf32>
    %8 = vector.multi_reduction <add>, %2, %cst_8 [0] : vector<256x8xf32> to vector<8xf32>
    %9 = vector.shape_cast %8 : vector<8xf32> to vector<1x8xf32>
    %10 = arith.addf %7, %9 : vector<1x8xf32>
    %c0_9 = arith.constant 0 : index
    %c0_10 = arith.constant 0 : index
    %11 = vector.load %arg4[%c0_9, %c0_10] : memref<1x8xf32, #tpu.memory_space<vmem>>, vector<1x8xf32>
    tpu.vector_store %arg4[%c0_9, %c0_10], %10 {strides = array<i32>} : memref<1x8xf32, #tpu.memory_space<vmem>>, vector<1x8xf32>,
    %c0_11 = arith.constant 0 : index
    %c0_12 = arith.constant 0 : index
    %12 = vector.load %arg5[%c0_11, %c0_12] : memref<1x8xf32, #tpu.memory_space<vmem>>, vector<1x8xf32>
    %13 = arith.mulf %2, %2 : vector<256x8xf32>
    %cst_13 = arith.constant dense<0.000000e+00> : vector<8xf32>
    %14 = vector.multi_reduction <add>, %13, %cst_13 [0] : vector<256x8xf32> to vector<8xf32>
    %15 = vector.shape_cast %14 : vector<8xf32> to vector<1x8xf32>
    %16 = arith.addf %12, %15 : vector<1x8xf32>
    %c0_14 = arith.constant 0 : index
    %c0_15 = arith.constant 0 : index
    %17 = vector.load %arg5[%c0_14, %c0_15] : memref<1x8xf32, #tpu.memory_space<vmem>>, vector<1x8xf32>
    tpu.vector_store %arg5[%c0_14, %c0_15], %16 {strides = array<i32>} : memref<1x8xf32, #tpu.memory_space<vmem>>, vector<1x8xf32>,
    return
  }
  func.func @transform_0(%arg0: i32) -> (i32, i32) {
    %c0_i32 = arith.constant 0 : i32
    %c0_i32_0 = arith.constant 0 : i32
    return %arg0, %c0_i32 : i32, i32
  }
  func.func @transform_1(%arg0: i32) -> (i32, i32) {
    %c0_i32 = arith.constant 0 : i32
    %c0_i32_0 = arith.constant 0 : i32
    %c0_i32_1 = arith.constant 0 : i32
    return %c0_i32, %c0_i32_0 : i32, i32
  }
  func.func @transform_2(%arg0: i32) -> (i32, i32) {
    %c0_i32 = arith.constant 0 : i32
    %c0_i32_0 = arith.constant 0 : i32
    return %arg0, %c0_i32 : i32, i32
  }
  func.func @transform_3(%arg0: i32) -> (i32, i32) {
    %c0_i32 = arith.constant 0 : i32
    %c0_i32_0 = arith.constant 0 : i32
    %c0_i32_1 = arith.constant 0 : i32
    return %c0_i32, %c0_i32_0 : i32, i32
  }
  func.func @transform_4(%arg0: i32) -> (i32, i32) {
    %c0_i32 = arith.constant 0 : i32
    %c0_i32_0 = arith.constant 0 : i32
    %c0_i32_1 = arith.constant 0 : i32
    return %c0_i32, %c0_i32_0 : i32, i32
  }
}

module attributes {stable_mosaic.version = 11 : i64} {
  func.func @_scale_relu_kernel(%arg0: i32, %arg1: memref<256x8xf32, #tpu.memory_space<vmem>>, %arg2: memref<1x8xf32, #tpu.memory_space<vmem>>, %arg3: memref<1x8xf32, #tpu.memory_space<vmem>>, %arg4: memref<256x8xf32, #tpu.memory_space<vmem>>) attributes {dimension_semantics = [#tpu.dimension_semantics<parallel>], iteration_bounds = array<i64: 2>, scalar_prefetch = 0 : i64, scratch_operands = 0 : i64, tpu.core_type = #tpu.core_type<tc>, window_params = [{transform_indices = @transform_0, window_bounds = array<i64: 256, 8>}, {pipeline_mode = #tpu.pipeline_mode<synchronous>, transform_indices = @transform_1, window_bounds = array<i64: 1, 8>}, {pipeline_mode = #tpu.pipeline_mode<synchronous>, transform_indices = @transform_2, window_bounds = array<i64: 1, 8>}, {transform_indices = @transform_3, window_bounds = array<i64: 256, 8>}]} {
    %c0 = arith.constant 0 : index
    %c0_0 = arith.constant 0 : index
    %0 = vector.load %arg1[%c0, %c0_0] : memref<256x8xf32, #tpu.memory_space<vmem>>, vector<256x8xf32>
    %c0_1 = arith.constant 0 : index
    %c0_2 = arith.constant 0 : index
    %1 = vector.load %arg2[%c0_1, %c0_2] : memref<1x8xf32, #tpu.memory_space<vmem>>, vector<1x8xf32>
    %2 = vector.broadcast %1 : vector<1x8xf32> to vector<256x8xf32>
    %3 = arith.mulf %0, %2 : vector<256x8xf32>
    %c0_3 = arith.constant 0 : index
    %c0_4 = arith.constant 0 : index
    %4 = vector.load %arg3[%c0_3, %c0_4] : memref<1x8xf32, #tpu.memory_space<vmem>>, vector<1x8xf32>
    %5 = vector.broadcast %4 : vector<1x8xf32> to vector<256x8xf32>
    %6 = arith.addf %3, %5 : vector<256x8xf32>
    %cst = arith.constant 0.000000e+00 : f32
    %7 = vector.broadcast %cst : f32 to vector<256x8xf32>
    %8 = arith.maximumf %6, %7 : vector<256x8xf32>
    %c0_5 = arith.constant 0 : index
    %c0_6 = arith.constant 0 : index
    %9 = vector.load %arg4[%c0_5, %c0_6] : memref<256x8xf32, #tpu.memory_space<vmem>>, vector<256x8xf32>
    tpu.vector_store %arg4[%c0_5, %c0_6], %8 {strides = array<i32>} : memref<256x8xf32, #tpu.memory_space<vmem>>, vector<256x8xf32>,
    return
  }
  func.func @transform_0(%arg0: i32) -> (i32, i32) {
    %c0_i32 = arith.constant 0 : i32
    %c0_i32_0 = arith.constant 0 : i32
    return %arg0, %c0_i32 : i32, i32
  }
  func.func @transform_1(%arg0: i32) -> (i32, i32) {
    %c0_i32 = arith.constant 0 : i32
    %c0_i32_0 = arith.constant 0 : i32
    %c0_i32_1 = arith.constant 0 : i32
    return %c0_i32, %c0_i32_0 : i32, i32
  }
  func.func @transform_2(%arg0: i32) -> (i32, i32) {
    %c0_i32 = arith.constant 0 : i32
    %c0_i32_0 = arith.constant 0 : i32
    %c0_i32_1 = arith.constant 0 : i32
    return %c0_i32, %c0_i32_0 : i32, i32
  }
  func.func @transform_3(%arg0: i32) -> (i32, i32) {
    %c0_i32 = arith.constant 0 : i32
    %c0_i32_0 = arith.constant 0 : i32
    return %arg0, %c0_i32 : i32, i32
  }
}

module attributes {stable_mosaic.version = 11 : i64} {
  func.func @_conv3x3_s1_kernel(%arg0: i32, %arg1: memref<1x18x18x8xf32, #tpu.memory_space<vmem>>, %arg2: memref<9x8x8xf32, #tpu.memory_space<vmem>>, %arg3: memref<1x256x8xf32, #tpu.memory_space<vmem>>, %arg4: memref<1x8xf32, #tpu.memory_space<vmem>>, %arg5: memref<1x8xf32, #tpu.memory_space<vmem>>) attributes {dimension_semantics = [#tpu.dimension_semantics<arbitrary>], iteration_bounds = array<i64: 2>, scalar_prefetch = 0 : i64, scratch_operands = 0 : i64, tpu.core_type = #tpu.core_type<tc>, window_params = [{transform_indices = @transform_0, window_bounds = array<i64: 1, 18, 18, 8>}, {pipeline_mode = #tpu.pipeline_mode<synchronous>, transform_indices = @transform_1, window_bounds = array<i64: 9, 8, 8>}, {transform_indices = @transform_2, window_bounds = array<i64: 1, 256, 8>}, {pipeline_mode = #tpu.pipeline_mode<synchronous>, transform_indices = @transform_3, window_bounds = array<i64: 1, 8>}, {pipeline_mode = #tpu.pipeline_mode<synchronous>, transform_indices = @transform_4, window_bounds = array<i64: 1, 8>}]} {
    %c0 = arith.constant 0 : index
    %c0_0 = arith.constant 0 : index
    %c0_1 = arith.constant 0 : index
    %c0_2 = arith.constant 0 : index
    %0 = vector.load %arg1[%c0, %c0_0, %c0_1, %c0_2] : memref<1x18x18x8xf32, #tpu.memory_space<vmem>>, vector<1x18x18x8xf32>
    %1 = vector.shape_cast %0 : vector<1x18x18x8xf32> to vector<18x18x8xf32>
    %2 = vector.extract_strided_slice %1 {offsets = [0, 0, 0], sizes = [16, 16, 8], strides = [1, 1, 1]} : vector<18x18x8xf32> to vector<16x16x8xf32>
    %3 = vector.shape_cast %2 : vector<16x16x8xf32> to vector<256x8xf32>
    %c0_3 = arith.constant 0 : index
    %c0_4 = arith.constant 0 : index
    %c0_5 = arith.constant 0 : index
    %4 = vector.load %arg2[%c0_3, %c0_4, %c0_5] : memref<9x8x8xf32, #tpu.memory_space<vmem>>, vector<1x8x8xf32>
    %5 = vector.shape_cast %4 : vector<1x8x8xf32> to vector<8x8xf32>
    %cst = arith.constant dense<0.000000e+00> : vector<256x8xf32>
    %6 = tpu.matmul %3, %5, %cst {dimension_numbers = #tpu.dot_dimension_numbers<[1], [0], [0], [1], [0, 0, 1, 1], [], []>} : vector<256x8xf32>, vector<8x8xf32>, vector<256x8xf32> -> vector<256x8xf32>
    %7 = vector.extract_strided_slice %1 {offsets = [0, 1, 0], sizes = [16, 16, 8], strides = [1, 1, 1]} : vector<18x18x8xf32> to vector<16x16x8xf32>
    %8 = vector.shape_cast %7 : vector<16x16x8xf32> to vector<256x8xf32>
    %c1 = arith.constant 1 : index
    %c0_6 = arith.constant 0 : index
    %c0_7 = arith.constant 0 : index
    %9 = vector.load %arg2[%c1, %c0_6, %c0_7] : memref<9x8x8xf32, #tpu.memory_space<vmem>>, vector<1x8x8xf32>
    %10 = vector.shape_cast %9 : vector<1x8x8xf32> to vector<8x8xf32>
    %cst_8 = arith.constant dense<0.000000e+00> : vector<256x8xf32>
    %11 = tpu.matmul %8, %10, %cst_8 {dimension_numbers = #tpu.dot_dimension_numbers<[1], [0], [0], [1], [0, 0, 1, 1], [], []>} : vector<256x8xf32>, vector<8x8xf32>, vector<256x8xf32> -> vector<256x8xf32>
    %12 = arith.addf %6, %11 : vector<256x8xf32>
    %13 = vector.extract_strided_slice %1 {offsets = [0, 2, 0], sizes = [16, 16, 8], strides = [1, 1, 1]} : vector<18x18x8xf32> to vector<16x16x8xf32>
    %14 = vector.shape_cast %13 : vector<16x16x8xf32> to vector<256x8xf32>
    %c2 = arith.constant 2 : index
    %c0_9 = arith.constant 0 : index
    %c0_10 = arith.constant 0 : index
    %15 = vector.load %arg2[%c2, %c0_9, %c0_10] : memref<9x8x8xf32, #tpu.memory_space<vmem>>, vector<1x8x8xf32>
    %16 = vector.shape_cast %15 : vector<1x8x8xf32> to vector<8x8xf32>
    %cst_11 = arith.constant dense<0.000000e+00> : vector<256x8xf32>
    %17 = tpu.matmul %14, %16, %cst_11 {dimension_numbers = #tpu.dot_dimension_numbers<[1], [0], [0], [1], [0, 0, 1, 1], [], []>} : vector<256x8xf32>, vector<8x8xf32>, vector<256x8xf32> -> vector<256x8xf32>
    %18 = arith.addf %12, %17 : vector<256x8xf32>
    %19 = vector.extract_strided_slice %1 {offsets = [1, 0, 0], sizes = [16, 16, 8], strides = [1, 1, 1]} : vector<18x18x8xf32> to vector<16x16x8xf32>
    %20 = vector.shape_cast %19 : vector<16x16x8xf32> to vector<256x8xf32>
    %c3 = arith.constant 3 : index
    %c0_12 = arith.constant 0 : index
    %c0_13 = arith.constant 0 : index
    %21 = vector.load %arg2[%c3, %c0_12, %c0_13] : memref<9x8x8xf32, #tpu.memory_space<vmem>>, vector<1x8x8xf32>
    %22 = vector.shape_cast %21 : vector<1x8x8xf32> to vector<8x8xf32>
    %cst_14 = arith.constant dense<0.000000e+00> : vector<256x8xf32>
    %23 = tpu.matmul %20, %22, %cst_14 {dimension_numbers = #tpu.dot_dimension_numbers<[1], [0], [0], [1], [0, 0, 1, 1], [], []>} : vector<256x8xf32>, vector<8x8xf32>, vector<256x8xf32> -> vector<256x8xf32>
    %24 = arith.addf %18, %23 : vector<256x8xf32>
    %25 = vector.extract_strided_slice %1 {offsets = [1, 1, 0], sizes = [16, 16, 8], strides = [1, 1, 1]} : vector<18x18x8xf32> to vector<16x16x8xf32>
    %26 = vector.shape_cast %25 : vector<16x16x8xf32> to vector<256x8xf32>
    %c4 = arith.constant 4 : index
    %c0_15 = arith.constant 0 : index
    %c0_16 = arith.constant 0 : index
    %27 = vector.load %arg2[%c4, %c0_15, %c0_16] : memref<9x8x8xf32, #tpu.memory_space<vmem>>, vector<1x8x8xf32>
    %28 = vector.shape_cast %27 : vector<1x8x8xf32> to vector<8x8xf32>
    %cst_17 = arith.constant dense<0.000000e+00> : vector<256x8xf32>
    %29 = tpu.matmul %26, %28, %cst_17 {dimension_numbers = #tpu.dot_dimension_numbers<[1], [0], [0], [1], [0, 0, 1, 1], [], []>} : vector<256x8xf32>, vector<8x8xf32>, vector<256x8xf32> -> vector<256x8xf32>
    %30 = arith.addf %24, %29 : vector<256x8xf32>
    %31 = vector.extract_strided_slice %1 {offsets = [1, 2, 0], sizes = [16, 16, 8], strides = [1, 1, 1]} : vector<18x18x8xf32> to vector<16x16x8xf32>
    %32 = vector.shape_cast %31 : vector<16x16x8xf32> to vector<256x8xf32>
    %c5 = arith.constant 5 : index
    %c0_18 = arith.constant 0 : index
    %c0_19 = arith.constant 0 : index
    %33 = vector.load %arg2[%c5, %c0_18, %c0_19] : memref<9x8x8xf32, #tpu.memory_space<vmem>>, vector<1x8x8xf32>
    %34 = vector.shape_cast %33 : vector<1x8x8xf32> to vector<8x8xf32>
    %cst_20 = arith.constant dense<0.000000e+00> : vector<256x8xf32>
    %35 = tpu.matmul %32, %34, %cst_20 {dimension_numbers = #tpu.dot_dimension_numbers<[1], [0], [0], [1], [0, 0, 1, 1], [], []>} : vector<256x8xf32>, vector<8x8xf32>, vector<256x8xf32> -> vector<256x8xf32>
    %36 = arith.addf %30, %35 : vector<256x8xf32>
    %37 = vector.extract_strided_slice %1 {offsets = [2, 0, 0], sizes = [16, 16, 8], strides = [1, 1, 1]} : vector<18x18x8xf32> to vector<16x16x8xf32>
    %38 = vector.shape_cast %37 : vector<16x16x8xf32> to vector<256x8xf32>
    %c6 = arith.constant 6 : index
    %c0_21 = arith.constant 0 : index
    %c0_22 = arith.constant 0 : index
    %39 = vector.load %arg2[%c6, %c0_21, %c0_22] : memref<9x8x8xf32, #tpu.memory_space<vmem>>, vector<1x8x8xf32>
    %40 = vector.shape_cast %39 : vector<1x8x8xf32> to vector<8x8xf32>
    %cst_23 = arith.constant dense<0.000000e+00> : vector<256x8xf32>
    %41 = tpu.matmul %38, %40, %cst_23 {dimension_numbers = #tpu.dot_dimension_numbers<[1], [0], [0], [1], [0, 0, 1, 1], [], []>} : vector<256x8xf32>, vector<8x8xf32>, vector<256x8xf32> -> vector<256x8xf32>
    %42 = arith.addf %36, %41 : vector<256x8xf32>
    %43 = vector.extract_strided_slice %1 {offsets = [2, 1, 0], sizes = [16, 16, 8], strides = [1, 1, 1]} : vector<18x18x8xf32> to vector<16x16x8xf32>
    %44 = vector.shape_cast %43 : vector<16x16x8xf32> to vector<256x8xf32>
    %c7 = arith.constant 7 : index
    %c0_24 = arith.constant 0 : index
    %c0_25 = arith.constant 0 : index
    %45 = vector.load %arg2[%c7, %c0_24, %c0_25] : memref<9x8x8xf32, #tpu.memory_space<vmem>>, vector<1x8x8xf32>
    %46 = vector.shape_cast %45 : vector<1x8x8xf32> to vector<8x8xf32>
    %cst_26 = arith.constant dense<0.000000e+00> : vector<256x8xf32>
    %47 = tpu.matmul %44, %46, %cst_26 {dimension_numbers = #tpu.dot_dimension_numbers<[1], [0], [0], [1], [0, 0, 1, 1], [], []>} : vector<256x8xf32>, vector<8x8xf32>, vector<256x8xf32> -> vector<256x8xf32>
    %48 = arith.addf %42, %47 : vector<256x8xf32>
    %49 = vector.extract_strided_slice %1 {offsets = [2, 2, 0], sizes = [16, 16, 8], strides = [1, 1, 1]} : vector<18x18x8xf32> to vector<16x16x8xf32>
    %50 = vector.shape_cast %49 : vector<16x16x8xf32> to vector<256x8xf32>
    %c8 = arith.constant 8 : index
    %c0_27 = arith.constant 0 : index
    %c0_28 = arith.constant 0 : index
    %51 = vector.load %arg2[%c8, %c0_27, %c0_28] : memref<9x8x8xf32, #tpu.memory_space<vmem>>, vector<1x8x8xf32>
    %52 = vector.shape_cast %51 : vector<1x8x8xf32> to vector<8x8xf32>
    %cst_29 = arith.constant dense<0.000000e+00> : vector<256x8xf32>
    %53 = tpu.matmul %50, %52, %cst_29 {dimension_numbers = #tpu.dot_dimension_numbers<[1], [0], [0], [1], [0, 0, 1, 1], [], []>} : vector<256x8xf32>, vector<8x8xf32>, vector<256x8xf32> -> vector<256x8xf32>
    %54 = arith.addf %48, %53 : vector<256x8xf32>
    %c0_30 = arith.constant 0 : index
    %c0_31 = arith.constant 0 : index
    %c0_32 = arith.constant 0 : index
    %55 = vector.load %arg3[%c0_30, %c0_31, %c0_32] : memref<1x256x8xf32, #tpu.memory_space<vmem>>, vector<1x256x8xf32>
    %56 = vector.shape_cast %55 : vector<1x256x8xf32> to vector<256x8xf32>
    %57 = vector.shape_cast %54 : vector<256x8xf32> to vector<1x256x8xf32>
    tpu.vector_store %arg3[%c0_30, %c0_31, %c0_32], %57 {strides = array<i32>} : memref<1x256x8xf32, #tpu.memory_space<vmem>>, vector<1x256x8xf32>,
    %c0_i32 = arith.constant 0 : i32
    %58 = arith.cmpi eq, %arg0, %c0_i32 : i32
    %59 = arith.extui %58 : i1 to i32
    %c0_i32_33 = arith.constant 0 : i32
    %60 = arith.cmpi ne, %59, %c0_i32_33 : i32
    scf.if %60 {
      %cst_44 = arith.constant 0.000000e+00 : f32
      %72 = vector.broadcast %cst_44 : f32 to vector<1x8xf32>
      %c0_45 = arith.constant 0 : index
      %c0_46 = arith.constant 0 : index
      %73 = vector.load %arg4[%c0_45, %c0_46] : memref<1x8xf32, #tpu.memory_space<vmem>>, vector<1x8xf32>
      tpu.vector_store %arg4[%c0_45, %c0_46], %72 {strides = array<i32>} : memref<1x8xf32, #tpu.memory_space<vmem>>, vector<1x8xf32>,
      %cst_47 = arith.constant 0.000000e+00 : f32
      %74 = vector.broadcast %cst_47 : f32 to vector<1x8xf32>
      %c0_48 = arith.constant 0 : index
      %c0_49 = arith.constant 0 : index
      %75 = vector.load %arg5[%c0_48, %c0_49] : memref<1x8xf32, #tpu.memory_space<vmem>>, vector<1x8xf32>
      tpu.vector_store %arg5[%c0_48, %c0_49], %74 {strides = array<i32>} : memref<1x8xf32, #tpu.memory_space<vmem>>, vector<1x8xf32>,
    } else {
    }
    %c0_34 = arith.constant 0 : index
    %c0_35 = arith.constant 0 : index
    %61 = vector.load %arg4[%c0_34, %c0_35] : memref<1x8xf32, #tpu.memory_space<vmem>>, vector<1x8xf32>
    %cst_36 = arith.constant dense<0.000000e+00> : vector<8xf32>
    %62 = vector.multi_reduction <add>, %54, %cst_36 [0] : vector<256x8xf32> to vector<8xf32>
    %63 = vector.shape_cast %62 : vector<8xf32> to vector<1x8xf32>
    %64 = arith.addf %61, %63 : vector<1x8xf32>
    %c0_37 = arith.constant 0 : index
    %c0_38 = arith.constant 0 : index
    %65 = vector.load %arg4[%c0_37, %c0_38] : memref<1x8xf32, #tpu.memory_space<vmem>>, vector<1x8xf32>
    tpu.vector_store %arg4[%c0_37, %c0_38], %64 {strides = array<i32>} : memref<1x8xf32, #tpu.memory_space<vmem>>, vector<1x8xf32>,
    %c0_39 = arith.constant 0 : index
    %c0_40 = arith.constant 0 : index
    %66 = vector.load %arg5[%c0_39, %c0_40] : memref<1x8xf32, #tpu.memory_space<vmem>>, vector<1x8xf32>
    %67 = arith.mulf %54, %54 : vector<256x8xf32>
    %cst_41 = arith.constant dense<0.000000e+00> : vector<8xf32>
    %68 = vector.multi_reduction <add>, %67, %cst_41 [0] : vector<256x8xf32> to vector<8xf32>
    %69 = vector.shape_cast %68 : vector<8xf32> to vector<1x8xf32>
    %70 = arith.addf %66, %69 : vector<1x8xf32>
    %c0_42 = arith.constant 0 : index
    %c0_43 = arith.constant 0 : index
    %71 = vector.load %arg5[%c0_42, %c0_43] : memref<1x8xf32, #tpu.memory_space<vmem>>, vector<1x8xf32>
    tpu.vector_store %arg5[%c0_42, %c0_43], %70 {strides = array<i32>} : memref<1x8xf32, #tpu.memory_space<vmem>>, vector<1x8xf32>,
    return
  }
  func.func @transform_0(%arg0: i32) -> (i32, i32, i32, i32) {
    %c0_i32 = arith.constant 0 : i32
    %c0_i32_0 = arith.constant 0 : i32
    %c0_i32_1 = arith.constant 0 : i32
    %c0_i32_2 = arith.constant 0 : i32
    return %arg0, %c0_i32, %c0_i32_0, %c0_i32_1 : i32, i32, i32, i32
  }
  func.func @transform_1(%arg0: i32) -> (i32, i32, i32) {
    %c0_i32 = arith.constant 0 : i32
    %c0_i32_0 = arith.constant 0 : i32
    %c0_i32_1 = arith.constant 0 : i32
    %c0_i32_2 = arith.constant 0 : i32
    return %c0_i32, %c0_i32_0, %c0_i32_1 : i32, i32, i32
  }
  func.func @transform_2(%arg0: i32) -> (i32, i32, i32) {
    %c0_i32 = arith.constant 0 : i32
    %c0_i32_0 = arith.constant 0 : i32
    %c0_i32_1 = arith.constant 0 : i32
    return %arg0, %c0_i32, %c0_i32_0 : i32, i32, i32
  }
  func.func @transform_3(%arg0: i32) -> (i32, i32) {
    %c0_i32 = arith.constant 0 : i32
    %c0_i32_0 = arith.constant 0 : i32
    %c0_i32_1 = arith.constant 0 : i32
    return %c0_i32, %c0_i32_0 : i32, i32
  }
  func.func @transform_4(%arg0: i32) -> (i32, i32) {
    %c0_i32 = arith.constant 0 : i32
    %c0_i32_0 = arith.constant 0 : i32
    %c0_i32_1 = arith.constant 0 : i32
    return %c0_i32, %c0_i32_0 : i32, i32
  }
}

</mosaic_0001>

<bundles_post_ra>
// kernel: _forward.12
= control target key start
LH: loop header
LB: loop body
LE: loop exit
PB: predicated region body
PF: predicated region fallthrough
CT: control target
= control target key end

     0   :  { %s454_s12 = smov 0   ;;  %s645_s0 = inlined_call_operand.vmem [shape: f32[512,24], index: 0, kind: input, shape index: {}]   ;;  %s646_s1 = inlined_call_operand.vmem [shape: f32[1,24], index: 1, kind: input, shape index: {}]   ;;  %s647_s2 = inlined_call_operand.vmem [shape: f32[1,24], index: 2, kind: input, shape index: {}]   ;;  %s648_s3 = inlined_call_operand.vmem [shape: f32[512,24], index: 3, kind: output, shape index: {}]  }
   0x1 LB: > { %s405_s13 = sadd.s32 4294967295, %s432_s12   ;;  %p409_p0 = scmp.ge.s32.totalorder %s432_s12, 1  ;;  %s432_s12 = sphi %s454_s12, %s13_s12  }
   0x2   : > { %p138_p1 = scmp.lt.s32.totalorder %s432_s12, 3 }
   0x4   : > { %p139_p2 = pnand %p409_p0, %p138_p1 }
   0x5   : > { %s410_s14 = sshll.u32 (!%p139_p2), %s405_s13, 5  ;;  %v465_v0 = vld [vmem:[%s646_s1] ss:$0 sm:$0xff] (!%p139_p2)  ;;  %vm316_vm0 = vcmask (!%p139_p2), 195584  }
   0x6   : > { %142 = sbr.rel (%p139_p2) target bundleno = 46 (0x2e), region = 32  ;;  %p163_p3 = scmp.lt.s32.totalorder (!%p139_p2), %s410_s14, 63  ;;  %v475_v1 = vld [vmem:[%s647_s2] ss:$0 sm:$0xff] (!%p139_p2) }
   0xd   : > { %s650_s14 = smov (!%p163_p3, %s410_s14), 63 }
   0xe   : > { %s411_s15 = sshll.u32 %s650_s14, 3 }
   0xf   : > { %s470_s20 = scalar_lea.vmem %s645_s0, %s411_s15  ;;  %s498_s25 = scalar_lea.vmem %s648_s3, %s411_s15 }
  0x10   : > { %v174_v2 = vld [vmem:[%s470_s20] sm:$0xff]  ;;  %v175_v3 = vld [vmem:[%s470_s20 + $0x8] sm:$0xff]  ;;  %v176_v4 = vld [vmem:[%s470_s20 + $0x10] sm:$0xff] }
  0x11   : > { %v213_v5 = vmul.f32 %v465_v0, %v174_v2  ;;  %v214_v6 = vmul.f32 %v465_v0, %v175_v3  ;;  %v215_v7 = vmul.f32 %v465_v0, %v176_v4  ;;  %v177_v8 = vld [vmem:[%s470_s20 + $0x18] sm:$0xff]  ;;  %v178_v9 = vld [vmem:[%s470_s20 + $0x20] sm:$0xff]  ;;  %v179_v10 = vld [vmem:[%s470_s20 + $0x28] sm:$0xff] }
  0x12   : > { %v216_v11 = vmul.f32 %v465_v0, %v177_v8  ;;  %v217_v12 = vmul.f32 %v465_v0, %v178_v9  ;;  %v218_v13 = vmul.f32 %v465_v0, %v179_v10  ;;  %v180_v14 = vld [vmem:[%s470_s20 + $0x30] sm:$0xff]  ;;  %v181_v15 = vld [vmem:[%s470_s20 + $0x38] sm:$0xff]  ;;  %v182_v24 = vld [vmem:[%s470_s20 + $0x40] sm:$0xff] }
  0x13   : > { %v252_v16 = vadd.f32 %v475_v1, %v213_v5  ;;  %v253_v17 = vadd.f32 %v475_v1, %v214_v6  ;;  %v254_v18 = vadd.f32 %v475_v1, %v215_v7  ;;  %v219_v19 = vmul.f32 %v465_v0, %v180_v14  ;;  %v183_v25 = vld [vmem:[%s470_s20 + $0x48] sm:$0xff]  ;;  %v184_v26 = vld [vmem:[%s470_s20 + $0x50] sm:$0xff]  ;;  %v185_v31 = vld [vmem:[%s470_s20 + $0x58] sm:$0xff] }
  0x14   : > { %v255_v20 = vadd.f32 %v475_v1, %v216_v11  ;;  %v256_v21 = vadd.f32 %v475_v1, %v217_v12  ;;  %v257_v22 = vadd.f32 %v475_v1, %v218_v13  ;;  %v220_v23 = vmul.f32 %v465_v0, %v181_v15  ;;  %v186_v32 = vld [vmem:[%s470_s20 + $0x60] sm:$0xff]  ;;  %v187_v33 = vld [vmem:[%s470_s20 + $0x68] sm:$0xff]  ;;  %v188_v38 = vld [vmem:[%s470_s20 + $0x70] sm:$0xff] }
  0x15   : > { %v284_v27 = vmax.f32 %v252_v16, 0.0  ;;  %v285_v28 = vmax.f32 %v253_v17, 0.0  ;;  %v286_v29 = vmax.f32 %v254_v18, 0.0  ;;  %v258_v30 = vadd.f32 %v475_v1, %v219_v19  ;;  %v189_v43 = vld [vmem:[%s470_s20 + $0x78] sm:$0xff]  ;;  %v190_v56 = vld [vmem:[%s470_s20 + $0x80] sm:$0xff]  ;;  %v191_v57 = vld [vmem:[%s470_s20 + $0x88] sm:$0xff] }
  0x16   : > { %v287_v34 = vmax.f32 %v255_v20, 0.0  ;;  %v288_v35 = vmax.f32 %v256_v21, 0.0  ;;  %v289_v36 = vmax.f32 %v257_v22, 0.0  ;;  %v259_v37 = vadd.f32 %v475_v1, %v220_v23  ;;  %v192_v58 = vld [vmem:[%s470_s20 + $0x90] sm:$0xff]  ;;  %v193_v63 = vld [vmem:[%s470_s20 + $0x98] sm:$0xff]  ;;  %v194_v2 = vld [vmem:[%s470_s20 + $0xa0] sm:$0xff] }
  0x17   : > { %317 = vst.msk [vmem:[%s498_s25] sm:$0xff] %vm316_vm0, %v284_v27  ;;  %318 = vst.msk [vmem:[%s498_s25 + $0x8] sm:$0xff] %vm316_vm0, %v285_v28  ;;  %v290_v39 = vmax.f32 %v258_v30, 0.0  ;;  %v221_v40 = vmul.f32 %v465_v0, %v182_v24  ;;  %v222_v41 = vmul.f32 %v465_v0, %v183_v25  ;;  %v223_v42 = vmul.f32 %v465_v0, %v184_v26  ;;  %v195_v3 = vld [vmem:[%s470_s20 + $0xa8] sm:$0xff]  ;;  %v196_v8 = vld [vmem:[%s470_s20 + $0xb0] sm:$0xff] }
  0x18   : > { %319 = vst.msk [vmem:[%s498_s25 + $0x10] sm:$0xff] %vm316_vm0, %v286_v29  ;;  %320 = vst.msk [vmem:[%s498_s25 + $0x18] sm:$0xff] %vm316_vm0, %v287_v34  ;;  %v291_v44 = vmax.f32 %v259_v37, 0.0  ;;  %v224_v45 = vmul.f32 %v465_v0, %v185_v31  ;;  %v225_v46 = vmul.f32 %v465_v0, %v186_v32  ;;  %v226_v47 = vmul.f32 %v465_v0, %v187_v33  ;;  %v197_v13 = vld [vmem:[%s470_s20 + $0xb8] sm:$0xff]  ;;  %v198_v26 = vld [vmem:[%s470_s20 + $0xc0] sm:$0xff] }
  0x19   : > { %321 = vst.msk [vmem:[%s498_s25 + $0x20] sm:$0xff] %vm316_vm0, %v288_v35  ;;  %322 = vst.msk [vmem:[%s498_s25 + $0x28] sm:$0xff] %vm316_vm0, %v289_v36  ;;  %v260_v48 = vadd.f32 %v475_v1, %v221_v40  ;;  %v261_v49 = vadd.f32 %v475_v1, %v222_v41  ;;  %v262_v50 = vadd.f32 %v475_v1, %v223_v42  ;;  %v199_v27 = vld [vmem:[%s470_s20 + $0xc8] sm:$0xff]  ;;  %v200_v28 = vld [vmem:[%s470_s20 + $0xd0] sm:$0xff] }
  0x1a   : > { %323 = vst.msk [vmem:[%s498_s25 + $0x30] sm:$0xff] %vm316_vm0, %v290_v39  ;;  %v227_v51 = vmul.f32 %v465_v0, %v188_v38  ;;  %324 = vst.msk [vmem:[%s498_s25 + $0x38] sm:$0xff] %vm316_vm0, %v291_v44  ;;  %v263_v52 = vadd.f32 %v475_v1, %v224_v45  ;;  %v264_v53 = vadd.f32 %v475_v1, %v225_v46  ;;  %v201_v33 = vld [vmem:[%s470_s20 + $0xd8] sm:$0xff]  ;;  %v202_v34 = vld [vmem:[%s470_s20 + $0xe0] sm:$0xff] }
  0x1b   : > { %v265_v54 = vadd.f32 %v475_v1, %v226_v47  ;;  %v228_v55 = vmul.f32 %v465_v0, %v189_v43  ;;  %v292_v59 = vmax.f32 %v260_v48, 0.0  ;;  %v293_v60 = vmax.f32 %v261_v49, 0.0  ;;  %v203_v35 = vld [vmem:[%s470_s20 + $0xe8] sm:$0xff]  ;;  %v204_v40 = vld [vmem:[%s470_s20 + $0xf0] sm:$0xff]  ;;  %v205_v45 = vld [vmem:[%s470_s20 + $0xf8] sm:$0xff] }
  0x1c   : > { %v294_v61 = vmax.f32 %v262_v50, 0.0  ;;  %v266_v62 = vadd.f32 %v475_v1, %v227_v51  ;;  %v295_v4 = vmax.f32 %v263_v52, 0.0  ;;  %v296_v5 = vmax.f32 %v264_v53, 0.0 }
  0x1d   : > { %v297_v6 = vmax.f32 %v265_v54, 0.0  ;;  %v267_v7 = vadd.f32 %v475_v1, %v228_v55  ;;  %325 = vst.msk [vmem:[%s498_s25 + $0x40] sm:$0xff] %vm316_vm0, %v292_v59  ;;  %326 = vst.msk [vmem:[%s498_s25 + $0x48] sm:$0xff] %vm316_vm0, %v293_v60  ;;  %v229_v10 = vmul.f32 %v465_v0, %v190_v56  ;;  %v230_v11 = vmul.f32 %v465_v0, %v191_v57 }
  0x1e   : > { %327 = vst.msk [vmem:[%s498_s25 + $0x50] sm:$0xff] %vm316_vm0, %v294_v61  ;;  %v298_v9 = vmax.f32 %v266_v62, 0.0  ;;  %v231_v12 = vmul.f32 %v465_v0, %v192_v58  ;;  %328 = vst.msk [vmem:[%s498_s25 + $0x58] sm:$0xff] %vm316_vm0, %v295_v4  ;;  %v232_v15 = vmul.f32 %v465_v0, %v193_v63  ;;  %v233_v16 = vmul.f32 %v465_v0, %v194_v2 }
  0x1f   : > { %329 = vst.msk [vmem:[%s498_s25 + $0x60] sm:$0xff] %vm316_vm0, %v296_v5  ;;  %330 = vst.msk [vmem:[%s498_s25 + $0x68] sm:$0xff] %vm316_vm0, %v297_v6  ;;  %v299_v14 = vmax.f32 %v267_v7, 0.0  ;;  %v234_v17 = vmul.f32 %v465_v0, %v195_v3  ;;  %v268_v18 = vadd.f32 %v475_v1, %v229_v10  ;;  %v269_v19 = vadd.f32 %v475_v1, %v230_v11 }
  0x20   : > { %331 = vst.msk [vmem:[%s498_s25 + $0x70] sm:$0xff] %vm316_vm0, %v298_v9  ;;  %v270_v20 = vadd.f32 %v475_v1, %v231_v12  ;;  %v235_v21 = vmul.f32 %v465_v0, %v196_v8  ;;  %v271_v22 = vadd.f32 %v475_v1, %v232_v15  ;;  %v272_v23 = vadd.f32 %v475_v1, %v233_v16 }
  0x21   : > { %332 = vst.msk [vmem:[%s498_s25 + $0x78] sm:$0xff] %vm316_vm0, %v299_v14  ;;  %v273_v24 = vadd.f32 %v475_v1, %v234_v17  ;;  %v236_v25 = vmul.f32 %v465_v0, %v197_v13  ;;  %v300_v29 = vmax.f32 %v268_v18, 0.0  ;;  %v301_v30 = vmax.f32 %v269_v19, 0.0 }
  0x22   : > { %v302_v31 = vmax.f32 %v270_v20, 0.0  ;;  %v274_v32 = vadd.f32 %v475_v1, %v235_v21  ;;  %v303_v36 = vmax.f32 %v271_v22, 0.0  ;;  %v304_v37 = vmax.f32 %v272_v23, 0.0 }
  0x23   : > { %v305_v38 = vmax.f32 %v273_v24, 0.0  ;;  %v275_v39 = vadd.f32 %v475_v1, %v236_v25  ;;  %333 = vst.msk [vmem:[%s498_s25 + $0x80] sm:$0xff] %vm316_vm0, %v300_v29  ;;  %334 = vst.msk [vmem:[%s498_s25 + $0x88] sm:$0xff] %vm316_vm0, %v301_v30  ;;  %v237_v42 = vmul.f32 %v465_v0, %v198_v26  ;;  %v238_v43 = vmul.f32 %v465_v0, %v199_v27 }
  0x24   : > { %335 = vst.msk [vmem:[%s498_s25 + $0x90] sm:$0xff] %vm316_vm0, %v302_v31  ;;  %v306_v41 = vmax.f32 %v274_v32, 0.0  ;;  %v239_v44 = vmul.f32 %v465_v0, %v200_v28  ;;  %336 = vst.msk [vmem:[%s498_s25 + $0x98] sm:$0xff] %vm316_vm0, %v303_v36  ;;  %v240_v47 = vmul.f32 %v465_v0, %v201_v33  ;;  %v241_v48 = vmul.f32 %v465_v0, %v202_v34 }
  0x25   : > { %337 = vst.msk [vmem:[%s498_s25 + $0xa0] sm:$0xff] %vm316_vm0, %v304_v37  ;;  %338 = vst.msk [vmem:[%s498_s25 + $0xa8] sm:$0xff] %vm316_vm0, %v305_v38  ;;  %v307_v46 = vmax.f32 %v275_v39, 0.0  ;;  %v242_v49 = vmul.f32 %v465_v0, %v203_v35  ;;  %v276_v50 = vadd.f32 %v475_v1, %v237_v42  ;;  %v277_v51 = vadd.f32 %v475_v1, %v238_v43 }
  0x26   : > { %339 = vst.msk [vmem:[%s498_s25 + $0xb0] sm:$0xff] %vm316_vm0, %v306_v41  ;;  %v278_v52 = vadd.f32 %v475_v1, %v239_v44  ;;  %v243_v53 = vmul.f32 %v465_v0, %v204_v40  ;;  %v279_v54 = vadd.f32 %v475_v1, %v240_v47  ;;  %v280_v55 = vadd.f32 %v475_v1, %v241_v48 }
  0x27   : > { %340 = vst.msk [vmem:[%s498_s25 + $0xb8] sm:$0xff] %vm316_vm0, %v307_v46  ;;  %v281_v56 = vadd.f32 %v475_v1, %v242_v49  ;;  %v244_v57 = vmul.f32 %v465_v0, %v205_v45  ;;  %v308_v58 = vmax.f32 %v276_v50, 0.0  ;;  %v309_v59 = vmax.f32 %v277_v51, 0.0 }
  0x28   : > { %v310_v60 = vmax.f32 %v278_v52, 0.0  ;;  %v282_v61 = vadd.f32 %v475_v1, %v243_v53  ;;  %v311_v62 = vmax.f32 %v279_v54, 0.0  ;;  %v312_v63 = vmax.f32 %v280_v55, 0.0 }
  0x29   : > { %v313_v2 = vmax.f32 %v281_v56, 0.0  ;;  %v283_v3 = vadd.f32 %v475_v1, %v244_v57  ;;  %341 = vst.msk [vmem:[%s498_s25 + $0xc0] sm:$0xff] %vm316_vm0, %v308_v58  ;;  %342 = vst.msk [vmem:[%s498_s25 + $0xc8] sm:$0xff] %vm316_vm0, %v309_v59 }
  0x2a   : > { %343 = vst.msk [vmem:[%s498_s25 + $0xd0] sm:$0xff] %vm316_vm0, %v310_v60  ;;  %v314_v4 = vmax.f32 %v282_v61, 0.0  ;;  %344 = vst.msk [vmem:[%s498_s25 + $0xd8] sm:$0xff] %vm316_vm0, %v311_v62 }
  0x2b   : > { %345 = vst.msk [vmem:[%s498_s25 + $0xe0] sm:$0xff] %vm316_vm0, %v312_v63  ;;  %346 = vst.msk [vmem:[%s498_s25 + $0xe8] sm:$0xff] %vm316_vm0, %v313_v2  ;;  %v315_v0 = vmax.f32 %v283_v3, 0.0 }
  0x2c   : > { %347 = vst.msk [vmem:[%s498_s25 + $0xf0] sm:$0xff] %vm316_vm0, %v314_v4 }
  0x2d   : > { %348 = vst.msk [vmem:[%s498_s25 + $0xf8] sm:$0xff] %vm316_vm0, %v315_v0 }
  0x2e PF: > { %s13_s12 = sadd.s32 1, %s432_s12  }
  0x2f   : > { %p10_p4 = scmp.ge.s32.totalorder %s13_s12, 4  }
  0x31   :  { %12 = sbr.rel (!%p10_p4) target bundleno = 1 (0x1), region = 62 }

// kernel: _forward.11
= control target key start
LH: loop header
LB: loop body
LE: loop exit
PB: predicated region body
PF: predicated region fallthrough
CT: control target
= control target key end

     0   :  { %s1013_s15 = smov 0   ;;  %s1452_s0 = inlined_call_operand.vmem [shape: f32[512,4], index: 0, kind: input, shape index: {}]   ;;  %s1453_s1 = inlined_call_operand.vmem [shape: f32[4,24], index: 1, kind: input, shape index: {}]   ;;  %s1454_s2 = inlined_call_operand.vmem [shape: f32[512,24], index: 2, kind: output, shape index: {0}]   ;;  %s1455_s3 = inlined_call_operand.vmem [shape: f32[1,24], index: 3, kind: output, shape index: {1}]   ;;  %s1456_s4 = inlined_call_operand.vmem [shape: f32[1,24], index: 4, kind: output, shape index: {2}]  }
   0x1 LB: > { %s840_s16 = sadd.s32 4294967295, %s985_s15   ;;  %p844_p0 = scmp.ge.s32.totalorder %s985_s15, 1  ;;  %s985_s15 = sphi %s1013_s15, %s15_s15  }
   0x2   : > { %p158_p1 = scmp.lt.s32.totalorder %s985_s15, 3 }
   0x4   : > { %p159_p2 = pnand %p844_p0, %p158_p1 }
   0x5   : > { %v228_v0 = vld [vmem:[%s1453_s1] sm:$0xf] (!%p159_p2)  ;;  %vm326_vm0 = vcmask (!%p159_p2), 1043456   ;;  %s845_s19 = sshll.u32 (!%p159_p2), %s840_s16, 5  ;;  %vm229_vm1 = vcmask (!%p159_p2), 31744   ;;  %vm555_vm2 = vcmask (!%p159_p2), 195584  }
   0x6   : > { %162 = sbr.rel (%p159_p2) target bundleno = 344 (0x158), region = 28  ;;  %918 = vmatprep.subr.msk.mxu0 (!%p159_p2), %vm326_vm0, %v228_v0  ;;  %968 = vmatprep.subr.msk.mxu1 (!%p159_p2), %vm326_vm0, %v228_v0  ;;  %p185_p3 = scmp.lt.s32.totalorder (!%p159_p2), %s845_s19, 63 }
   0x7   : > { %919 = vmatpush3.msk.msra.mxu0 (!%p159_p2), %vm326_vm0, %v228_v0  ;;  %969 = vmatpush3.msk.msra.mxu1 (!%p159_p2), %vm326_vm0, %v228_v0  ;;  %p882_p4 = scmp.ne.s32.totalorder (!%p159_p2), %s840_s16, 0 }
   0xd   : > { %s1458_s19 = smov (!%p185_p3, %s845_s19), 63  ;;  %vm592_vm3 = vcmask (!%p882_p4), 188416  }
   0xe   : > { %s846_s20 = sshll.u32 %s1458_s19, 3 }
   0xf   : > { %s1034_s23 = scalar_lea.vmem %s1452_s0, %s846_s20  ;;  %s1105_s26 = scalar_lea.vmem %s1454_s2, %s846_s20 }
  0x10   : > { %v196_v1 = vld [vmem:[%s1034_s23] sm:$0xff]  ;;  %v197_v3 = vld [vmem:[%s1034_s23 + $0x8] sm:$0xff]  ;;  %v198_v5 = vld [vmem:[%s1034_s23 + $0x10] sm:$0xff] }
  0x11   : > { %v212_v2 = vld [vmem:[%s1034_s23 + $0x80] sm:$0xff]  ;;  %920 = vmatprep.mubr.msk.f32.mxu0 %vm229_vm1, %v196_v1  ;;  %v213_v4 = vld [vmem:[%s1034_s23 + $0x88] sm:$0xff]  ;;  %v214_v6 = vld [vmem:[%s1034_s23 + $0x90] sm:$0xff]  ;;  %v987_v1 = vmov (!%p882_p4), 0.0  }
  0x12   : > { %944 = vmatprep.mubr.msk.f32.mxu1 %vm229_vm1, %v212_v2  ;;  %921 = vmatmul.mubr.msk.f32.vlgmr.msra.gmra.mrb[0].mxu0 %vm229_vm1, %v197_v3  ;;  %v199_v7 = vld [vmem:[%s1034_s23 + $0x18] sm:$0xff]  ;;  %v200_v9 = vld [vmem:[%s1034_s23 + $0x20] sm:$0xff]  ;;  %v201_v11 = vld [vmem:[%s1034_s23 + $0x28] sm:$0xff]  ;;  %593 = vst.msk [vmem:[%s1455_s3] sm:$0x1] (!%p882_p4), %vm592_vm3, %v987_v1 }
  0x13   : > { %945 = vmatmul.mubr.msk.f32.vlgmr.msra.gmra.mrb[0].mxu1 %vm229_vm1, %v213_v4  ;;  %923 = vmatprep.mubr.msk.f32.mxu0 %vm229_vm1, %v198_v5  ;;  %v215_v8 = vld [vmem:[%s1034_s23 + $0x98] sm:$0xff]  ;;  %v216_v10 = vld [vmem:[%s1034_s23 + $0xa0] sm:$0xff]  ;;  %v217_v12 = vld [vmem:[%s1034_s23 + $0xa8] sm:$0xff]  ;;  %594 = vst.msk [vmem:[%s1456_s4] sm:$0x1] (!%p882_p4), %vm592_vm3, %v987_v1 }
  0x14   : > { %947 = vmatprep.mubr.msk.f32.mxu1 %vm229_vm1, %v214_v6  ;;  %v202_v13 = vld [vmem:[%s1034_s23 + $0x30] sm:$0xff]  ;;  %v203_v15 = vld [vmem:[%s1034_s23 + $0x38] sm:$0xff]  ;;  %v204_v17 = vld [vmem:[%s1034_s23 + $0x40] sm:$0xff] }
  0x15   : > { %v218_v14 = vld [vmem:[%s1034_s23 + $0xb0] sm:$0xff]  ;;  %v219_v16 = vld [vmem:[%s1034_s23 + $0xb8] sm:$0xff]  ;;  %v220_v18 = vld [vmem:[%s1034_s23 + $0xc0] sm:$0xff] }
  0x16   : > { %924 = vmatmul.mubr.msk.f32.gmra.mrb[2].mxu0 %vm229_vm1, %v199_v7  ;;  %v205_v19 = vld [vmem:[%s1034_s23 + $0x48] sm:$0xff]  ;;  %v206_v21 = vld [vmem:[%s1034_s23 + $0x50] sm:$0xff]  ;;  %v207_v23 = vld [vmem:[%s1034_s23 + $0x58] sm:$0xff] }
  0x17   : > { %948 = vmatmul.mubr.msk.f32.gmra.mrb[2].mxu1 %vm229_vm1, %v215_v8  ;;  %926 = vmatprep.mubr.msk.f32.mxu0 %vm229_vm1, %v200_v9  ;;  %v221_v20 = vld [vmem:[%s1034_s23 + $0xc8] sm:$0xff]  ;;  %v222_v22 = vld [vmem:[%s1034_s23 + $0xd0] sm:$0xff]  ;;  %v223_v24 = vld [vmem:[%s1034_s23 + $0xd8] sm:$0xff] }
  0x18   : > { %950 = vmatprep.mubr.msk.f32.mxu1 %vm229_vm1, %v216_v10  ;;  %v208_v25 = vld [vmem:[%s1034_s23 + $0x60] sm:$0xff]  ;;  %v209_v27 = vld [vmem:[%s1034_s23 + $0x68] sm:$0xff]  ;;  %v210_v29 = vld [vmem:[%s1034_s23 + $0x70] sm:$0xff] }
  0x19   : > { %v224_v26 = vld [vmem:[%s1034_s23 + $0xe0] sm:$0xff]  ;;  %v225_v28 = vld [vmem:[%s1034_s23 + $0xe8] sm:$0xff]  ;;  %v226_v30 = vld [vmem:[%s1034_s23 + $0xf0] sm:$0xff] }
  0x1a   : > { %927 = vmatmul.mubr.msk.f32.gmra.mrb[4].mxu0 %vm229_vm1, %v201_v11  ;;  %v211_v31 = vld [vmem:[%s1034_s23 + $0x78] sm:$0xff] }
  0x1b   : > { %951 = vmatmul.mubr.msk.f32.gmra.mrb[4].mxu1 %vm229_vm1, %v217_v12  ;;  %929 = vmatprep.mubr.msk.f32.mxu0 %vm229_vm1, %v202_v13  ;;  %v227_v32 = vld [vmem:[%s1034_s23 + $0xf8] sm:$0xff] }
  0x1c   : > { %953 = vmatprep.mubr.msk.f32.mxu1 %vm229_vm1, %v218_v14 }
  0x1e   : > { %930 = vmatmul.mubr.msk.f32.gmra.mrb[6].mxu0 %vm229_vm1, %v203_v15 }
  0x1f   : > { %954 = vmatmul.mubr.msk.f32.gmra.mrb[6].mxu1 %vm229_vm1, %v219_v16  ;;  %932 = vmatprep.mubr.msk.f32.mxu0 %vm229_vm1, %v204_v17 }
  0x20   : > { %956 = vmatprep.mubr.msk.f32.mxu1 %vm229_vm1, %v220_v18 }
  0x22   : > { %933 = vmatmul.mubr.msk.f32.gmra.mrb[8].mxu0 %vm229_vm1, %v205_v19 }
  0x23   : > { %957 = vmatmul.mubr.msk.f32.gmra.mrb[8].mxu1 %vm229_vm1, %v221_v20  ;;  %935 = vmatprep.mubr.msk.f32.mxu0 %vm229_vm1, %v206_v21 }
  0x24   : > { %959 = vmatprep.mubr.msk.f32.mxu1 %vm229_vm1, %v222_v22 }
  0x26   : > { %936 = vmatmul.mubr.msk.f32.gmra.mrb[10].mxu0 %vm229_vm1, %v207_v23 }
  0x27   : > { %960 = vmatmul.mubr.msk.f32.gmra.mrb[10].mxu1 %vm229_vm1, %v223_v24  ;;  %938 = vmatprep.mubr.msk.f32.mxu0 %vm229_vm1, %v208_v25 }
  0x28   : > { %962 = vmatprep.mubr.msk.f32.mxu1 %vm229_vm1, %v224_v26 }
  0x2a   : > { %939 = vmatmul.mubr.msk.f32.gmra.mrb[12].mxu0 %vm229_vm1, %v209_v27 }
  0x2b   : > { %963 = vmatmul.mubr.msk.f32.gmra.mrb[12].mxu1 %vm229_vm1, %v225_v28  ;;  %941 = vmatprep.mubr.msk.f32.mxu0 %vm229_vm1, %v210_v29 }
  0x2c   : > { %965 = vmatprep.mubr.msk.f32.mxu1 %vm229_vm1, %v226_v30 }
  0x2e   : > { %942 = vmatmul.mubr.msk.f32.gmra.mrb[14].mxu0 %vm229_vm1, %v211_v31 }
  0x2f   : > { %966 = vmatmul.mubr.msk.f32.gmra.mrb[14].mxu1 %vm229_vm1, %v227_v32 }
  0xe5   : > { %v1107_v33 = vpop.f32.mrb[0].mxu0 }
  0xe6   : > { %v1109_v34 = vpop.f32.mrb[0].mxu1  ;;  %557 = vst.msk [vmem:[%s1105_s26 + $0x8] sm:$0xff] %vm555_vm2, %v1107_v33  ;;  %v1117_v35 = vpop.f32.mrb[1].mxu0 }
  0xe7   : > { %573 = vst.msk [vmem:[%s1105_s26 + $0x88] sm:$0xff] %vm555_vm2, %v1109_v34  ;;  %v1119_v36 = vpop.f32.mrb[1].mxu1  ;;  %556 = vst.msk [vmem:[%s1105_s26] sm:$0xff] %vm555_vm2, %v1117_v35 }
  0xe8   : > { %572 = vst.msk [vmem:[%s1105_s26 + $0x80] sm:$0xff] %vm555_vm2, %v1119_v36 }
  0xe9   : > { %v1127_v37 = vpop.f32.mrb[2].mxu0 }
  0xea   : > { %v1129_v38 = vpop.f32.mrb[2].mxu1  ;;  %559 = vst.msk [vmem:[%s1105_s26 + $0x18] sm:$0xff] %vm555_vm2, %v1127_v37  ;;  %v1137_v39 = vpop.f32.mrb[3].mxu0 }
  0xeb   : > { %575 = vst.msk [vmem:[%s1105_s26 + $0x98] sm:$0xff] %vm555_vm2, %v1129_v38  ;;  %v1139_v40 = vpop.f32.mrb[3].mxu1  ;;  %558 = vst.msk [vmem:[%s1105_s26 + $0x10] sm:$0xff] %vm555_vm2, %v1137_v39 }
  0xec   : > { %574 = vst.msk [vmem:[%s1105_s26 + $0x90] sm:$0xff] %vm555_vm2, %v1139_v40 }
  0xed   : > { %v1147_v41 = vpop.f32.mrb[4].mxu0 }
  0xee   : > { %v1149_v42 = vpop.f32.mrb[4].mxu1  ;;  %561 = vst.msk [vmem:[%s1105_s26 + $0x28] sm:$0xff] %vm555_vm2, %v1147_v41  ;;  %v1157_v43 = vpop.f32.mrb[5].mxu0 }
  0xef   : > { %577 = vst.msk [vmem:[%s1105_s26 + $0xa8] sm:$0xff] %vm555_vm2, %v1149_v42  ;;  %v1159_v44 = vpop.f32.mrb[5].mxu1  ;;  %560 = vst.msk [vmem:[%s1105_s26 + $0x20] sm:$0xff] %vm555_vm2, %v1157_v43 }
  0xf0   : > { %576 = vst.msk [vmem:[%s1105_s26 + $0xa0] sm:$0xff] %vm555_vm2, %v1159_v44 }
  0xf1   : > { %v1167_v45 = vpop.f32.mrb[6].mxu0 }
  0xf2   : > { %v1169_v46 = vpop.f32.mrb[6].mxu1  ;;  %563 = vst.msk [vmem:[%s1105_s26 + $0x38] sm:$0xff] %vm555_vm2, %v1167_v45  ;;  %v1177_v47 = vpop.f32.mrb[7].mxu0 }
  0xf3   : > { %579 = vst.msk [vmem:[%s1105_s26 + $0xb8] sm:$0xff] %vm555_vm2, %v1169_v46  ;;  %v1179_v48 = vpop.f32.mrb[7].mxu1  ;;  %562 = vst.msk [vmem:[%s1105_s26 + $0x30] sm:$0xff] %vm555_vm2, %v1177_v47 }
  0xf4   : > { %578 = vst.msk [vmem:[%s1105_s26 + $0xb0] sm:$0xff] %vm555_vm2, %v1179_v48 }
  0xf5   : > { %v1187_v49 = vpop.f32.mrb[8].mxu0 }
  0xf6   : > { %v1189_v50 = vpop.f32.mrb[8].mxu1  ;;  %565 = vst.msk [vmem:[%s1105_s26 + $0x48] sm:$0xff] %vm555_vm2, %v1187_v49  ;;  %v1197_v51 = vpop.f32.mrb[9].mxu0 }
  0xf7   : > { %581 = vst.msk [vmem:[%s1105_s26 + $0xc8] sm:$0xff] %vm555_vm2, %v1189_v50  ;;  %v1199_v52 = vpop.f32.mrb[9].mxu1  ;;  %564 = vst.msk [vmem:[%s1105_s26 + $0x40] sm:$0xff] %vm555_vm2, %v1197_v51 }
  0xf8   : > { %580 = vst.msk [vmem:[%s1105_s26 + $0xc0] sm:$0xff] %vm555_vm2, %v1199_v52 }
  0xf9   : > { %v1207_v53 = vpop.f32.mrb[10].mxu0 }
  0xfa   : > { %v1209_v54 = vpop.f32.mrb[10].mxu1  ;;  %567 = vst.msk [vmem:[%s1105_s26 + $0x58] sm:$0xff] %vm555_vm2, %v1207_v53  ;;  %v1217_v55 = vpop.f32.mrb[11].mxu0 }
  0xfb   : > { %583 = vst.msk [vmem:[%s1105_s26 + $0xd8] sm:$0xff] %vm555_vm2, %v1209_v54  ;;  %v1219_v56 = vpop.f32.mrb[11].mxu1  ;;  %566 = vst.msk [vmem:[%s1105_s26 + $0x50] sm:$0xff] %vm555_vm2, %v1217_v55 }
  0xfc   : > { %582 = vst.msk [vmem:[%s1105_s26 + $0xd0] sm:$0xff] %vm555_vm2, %v1219_v56 }
  0xfd   : > { %v1227_v57 = vpop.f32.mrb[12].mxu0 }
  0xfe   : > { %v1229_v58 = vpop.f32.mrb[12].mxu1  ;;  %569 = vst.msk [vmem:[%s1105_s26 + $0x68] sm:$0xff] %vm555_vm2, %v1227_v57  ;;  %v1237_v59 = vpop.f32.mrb[13].mxu0  ;;  %591 = sbr.rel (%p882_p4) target bundleno = 261 (0x105), region = 32 }
  0xff   : > { %585 = vst.msk [vmem:[%s1105_s26 + $0xe8] sm:$0xff] %vm555_vm2, %v1229_v58  ;;  %v1239_v60 = vpop.f32.mrb[13].mxu1  ;;  %568 = vst.msk [vmem:[%s1105_s26 + $0x60] sm:$0xff] %vm555_vm2, %v1237_v59 }
 0x100   : > { %584 = vst.msk [vmem:[%s1105_s26 + $0xe0] sm:$0xff] %vm555_vm2, %v1239_v60 }
 0x101   : > { %v1247_v61 = vpop.f32.mrb[14].mxu0 }
 0x102   : > { %v1249_v62 = vpop.f32.mrb[14].mxu1  ;;  %571 = vst.msk [vmem:[%s1105_s26 + $0x78] sm:$0xff] %vm555_vm2, %v1247_v61  ;;  %v1257_v63 = vpop.f32.mrb[15].mxu0 }
 0x103   : > { %587 = vst.msk [vmem:[%s1105_s26 + $0xf8] sm:$0xff] %vm555_vm2, %v1249_v62  ;;  %v1259_v0 = vpop.f32.mrb[15].mxu1  ;;  %570 = vst.msk [vmem:[%s1105_s26 + $0x70] sm:$0xff] %vm555_vm2, %v1257_v63 }
 0x104   : > { %586 = vst.msk [vmem:[%s1105_s26 + $0xf0] sm:$0xff] %vm555_vm2, %v1259_v0 }
 0x105 PF: > { %v596_v2 = vsel %vm555_vm2, %v1117_v35, 0.0  ;;  %v597_v3 = vsel %vm555_vm2, %v1107_v33, 0.0  ;;  %v599_v4 = vsel %vm555_vm2, %v1137_v39, 0.0  ;;  %v601_v6 = vsel %vm555_vm2, %v1127_v37, 0.0 }
 0x106   : > { %v598_v5 = vadd.f32 %v597_v3, %v596_v2  ;;  %v603_v8 = vsel %vm555_vm2, %v1157_v43, 0.0  ;;  %v605_v10 = vsel %vm555_vm2, %v1147_v41, 0.0  ;;  %v607_v12 = vsel %vm555_vm2, %v1177_v47, 0.0 }
 0x107   : > { %v609_v14 = vsel %vm555_vm2, %v1167_v45, 0.0  ;;  %v611_v16 = vsel %vm555_vm2, %v1197_v51, 0.0  ;;  %v613_v18 = vsel %vm555_vm2, %v1187_v49, 0.0  ;;  %v669_v19 = vmul.f32 %v1117_v35, %v1117_v35 }
 0x108   : > { %v600_v7 = vadd.f32 %v599_v4, %v598_v5  ;;  %v670_v20 = vmul.f32 %v1107_v33, %v1107_v33  ;;  %v671_v22 = vmul.f32 %v1137_v39, %v1137_v39  ;;  %v615_v23 = vsel %vm555_vm2, %v1217_v55, 0.0 }
 0x109   : > { %v672_v24 = vmul.f32 %v1127_v37, %v1127_v37  ;;  %v617_v26 = vsel %vm555_vm2, %v1207_v53, 0.0  ;;  %v673_v27 = vmul.f32 %v1157_v43, %v1157_v43  ;;  %v701_v28 = vsel %vm555_vm2, %v669_v19, 0.0 }
 0x10a   : > { %v602_v9 = vadd.f32 %v601_v6, %v600_v7  ;;  %v702_v29 = vsel %vm555_vm2, %v670_v20, 0.0  ;;  %v704_v32 = vsel %vm555_vm2, %v671_v22, 0.0  ;;  %v619_v33 = vsel %vm555_vm2, %v1237_v59, 0.0 }
 0x10b   : > { %v703_v31 = vadd.f32 %v702_v29, %v701_v28  ;;  %v674_v35 = vmul.f32 %v1147_v41, %v1147_v41  ;;  %v706_v37 = vsel %vm555_vm2, %v672_v24, 0.0  ;;  %v621_v43 = vsel %vm555_vm2, %v1227_v57, 0.0 }
 0x10c   : > { %v604_v11 = vadd.f32 %v603_v8, %v602_v9  ;;  %v675_v2 = vmul.f32 %v1177_v47, %v1177_v47  ;;  %v708_v3 = vsel %vm555_vm2, %v673_v27, 0.0  ;;  %v623_v6 = vsel %vm555_vm2, %v1257_v63, 0.0 }
 0x10d   : > { %v705_v1 = vadd.f32 %v704_v32, %v703_v31  ;;  %v676_v41 = vmul.f32 %v1167_v45, %v1167_v45  ;;  %v710_v7 = vsel %vm555_vm2, %v674_v35, 0.0  ;;  %v677_v47 = vmul.f32 %v1197_v51, %v1197_v51 }
 0x10e   : > { %v606_v13 = vadd.f32 %v605_v10, %v604_v11  ;;  %v625_v10 = vsel %vm555_vm2, %v1247_v61, 0.0  ;;  %v712_v11 = vsel %vm555_vm2, %v675_v2, 0.0  ;;  %v678_v45 = vmul.f32 %v1187_v49, %v1187_v49 }
 0x10f   : > { %v707_v5 = vadd.f32 %v706_v37, %v705_v1  ;;  %v679_v51 = vmul.f32 %v1217_v55, %v1217_v55  ;;  %v716_v19 = vsel %vm555_vm2, %v677_v47, 0.0  ;;  %v631_v22 = vsel %vm555_vm2, %v1139_v40, 0.0 }
 0x110   : > { %v608_v15 = vadd.f32 %v607_v12, %v606_v13  ;;  %v680_v49 = vmul.f32 %v1207_v53, %v1207_v53  ;;  %v681_v55 = vmul.f32 %v1237_v59, %v1237_v59  ;;  %v682_v53 = vmul.f32 %v1227_v57, %v1227_v57 }
 0x111   : > { %v709_v9 = vadd.f32 %v708_v3, %v707_v5  ;;  %v720_v27 = vsel %vm555_vm2, %v679_v51, 0.0  ;;  %v637_v35 = vsel %vm555_vm2, %v1149_v42, 0.0  ;;  %v683_v59 = vmul.f32 %v1257_v63, %v1257_v63 }
 0x112   : > { %v610_v17 = vadd.f32 %v609_v14, %v608_v15  ;;  %v627_v14 = vsel %vm555_vm2, %v1119_v36, 0.0  ;;  %v714_v15 = vsel %vm555_vm2, %v676_v41, 0.0  ;;  %v722_v31 = vsel %vm555_vm2, %v680_v49, 0.0 }
 0x113   : > { %v711_v13 = vadd.f32 %v710_v7, %v709_v9  ;;  %v724_v37 = vsel %vm555_vm2, %v681_v55, 0.0  ;;  %v684_v57 = vmul.f32 %v1247_v61, %v1247_v61  ;;  %v726_v2 = vsel %vm555_vm2, %v682_v53, 0.0 }
 0x114   : > { %v612_v21 = vadd.f32 %v611_v16, %v610_v17  ;;  %v641_v5 = vsel %vm555_vm2, %v1169_v46, 0.0  ;;  %v685_v63 = vmul.f32 %v1119_v36, %v1119_v36  ;;  %v686_v61 = vmul.f32 %v1109_v34, %v1109_v34 }
 0x115   : > { %v713_v17 = vadd.f32 %v712_v11, %v711_v13  ;;  %v730_v9 = vsel %vm555_vm2, %v684_v57, 0.0  ;;  %v645_v11 = vsel %vm555_vm2, %v1189_v50, 0.0  ;;  %v687_v36 = vmul.f32 %v1139_v40, %v1139_v40 }
 0x116   : > { %v614_v25 = vadd.f32 %v613_v18, %v612_v21  ;;  %v629_v18 = vsel %vm555_vm2, %v1109_v34, 0.0  ;;  %v688_v34 = vmul.f32 %v1129_v38, %v1129_v38  ;;  %v689_v40 = vmul.f32 %v1159_v44, %v1159_v44 }
 0x117   : > { %v715_v21 = vadd.f32 %v714_v15, %v713_v17  ;;  %v734_v15 = vsel %vm555_vm2, %v686_v61, 0.0  ;;  %v736_v51 = vsel %vm555_vm2, %v687_v36, 0.0  ;;  %v657_v53 = vsel %vm555_vm2, %v1249_v62, 0.0 }
 0x118   : > { %v616_v30 = vadd.f32 %v615_v23, %v614_v25  ;;  %v718_v23 = vsel %vm555_vm2, %v678_v45, 0.0  ;;  %v647_v45 = vsel %vm555_vm2, %v1219_v56, 0.0  ;;  %vm666_vm4 = vcmask 188416  }
 0x119   : > { %v717_v25 = vadd.f32 %v716_v19, %v715_v21  ;;  %v651_v21 = vsel %vm555_vm2, %v1239_v60, 0.0 }
 0x11a   : > { %v618_v39 = vadd.f32 %v617_v26, %v616_v30  ;;  %v633_v26 = vsel %vm555_vm2, %v1129_v38, 0.0  ;;  %v635_v30 = vsel %vm555_vm2, %v1159_v44, 0.0  ;;  %v690_v38 = vmul.f32 %v1149_v42, %v1149_v42 }
 0x11b   : > { %v719_v29 = vadd.f32 %v718_v23, %v717_v25  ;;  %v691_v44 = vmul.f32 %v1179_v48, %v1179_v48  ;;  %v740_v25 = vsel %vm555_vm2, %v689_v40, 0.0  ;;  %v692_v42 = vmul.f32 %v1169_v46, %v1169_v46  ;;  %v668_v40 = vld [vmem:[%s1456_s4] sm:$0x1] }
 0x11c   : > { %v620_v4 = vadd.f32 %v619_v33, %v618_v39 }
 0x11d   : > { %v721_v33 = vadd.f32 %v720_v27, %v719_v29  ;;  %v655_v27 = vsel %vm555_vm2, %v1259_v0, 0.0 }
 0x11e   : > { %v622_v8 = vadd.f32 %v621_v43, %v620_v4  ;;  %v639_v43 = vsel %vm555_vm2, %v1179_v48, 0.0  ;;  %v693_v48 = vmul.f32 %v1199_v52, %v1199_v52 }
 0x11f   : > { %v723_v1 = vadd.f32 %v722_v31, %v721_v33  ;;  %v744_v31 = vsel %vm555_vm2, %v691_v44, 0.0 }
 0x120   : > { %v624_v12 = vadd.f32 %v623_v6, %v622_v8  ;;  %v728_v6 = vsel %vm555_vm2, %v683_v59, 0.0  ;;  %v643_v8 = vsel %vm555_vm2, %v1199_v52, 0.0  ;;  %v746_v59 = vsel %vm555_vm2, %v692_v42, 0.0 }
 0x121   : > { %v725_v4 = vadd.f32 %v724_v37, %v723_v1  ;;  %v748_v1 = vsel %vm555_vm2, %v693_v48, 0.0  ;;  %v696_v52 = vmul.f32 %v1209_v54, %v1209_v54 }
 0x122   : > { %v626_v16 = vadd.f32 %v625_v10, %v624_v12  ;;  %v732_v12 = vsel %vm555_vm2, %v685_v63, 0.0 }
 0x123   : > { %v727_v7 = vadd.f32 %v726_v2, %v725_v4 }
 0x124   : > { %v628_v20 = vadd.f32 %v627_v14, %v626_v16 }
 0x125   : > { %v729_v47 = vadd.f32 %v728_v6, %v727_v7 }
 0x126   : > { %v630_v24 = vadd.f32 %v629_v18, %v628_v20  ;;  %v649_v18 = vsel %vm555_vm2, %v1209_v54, 0.0  ;;  %v699_v54 = vmul.f32 %v1259_v0, %v1259_v0 }
 0x127   : > { %v731_v14 = vadd.f32 %v730_v9, %v729_v47  ;;  %v700_v47 = vmul.f32 %v1249_v62, %v1249_v62 }
 0x128   : > { %v632_v28 = vadd.f32 %v631_v22, %v630_v24  ;;  %v738_v22 = vsel %vm555_vm2, %v688_v34, 0.0  ;;  %v653_v24 = vsel %vm555_vm2, %v1229_v58, 0.0 }
 0x129   : > { %v733_v17 = vadd.f32 %v732_v12, %v731_v14  ;;  %v760_v12 = vsel %vm555_vm2, %v699_v54, 0.0  ;;  %v762_v14 = vsel %vm555_vm2, %v700_v47, 0.0 }
 0x12a   : > { %v634_v32 = vadd.f32 %v633_v26, %v632_v28  ;;  %v742_v28 = vsel %vm555_vm2, %v690_v38, 0.0 }
 0x12b   : > { %v735_v20 = vadd.f32 %v734_v15, %v733_v17 }
 0x12c   : > { %v636_v39 = vadd.f32 %v635_v30, %v634_v32 }
 0x12d   : > { %v737_v23 = vadd.f32 %v736_v51, %v735_v20 }
 0x12e   : > { %v638_v3 = vadd.f32 %v637_v35, %v636_v39  ;;  %v694_v35 = vmul.f32 %v1189_v50, %v1189_v50  ;;  %v695_v39 = vmul.f32 %v1219_v56, %v1219_v56  ;;  %v697_v50 = vmul.f32 %v1239_v60, %v1239_v60  ;;  %v595_v60 = vld [vmem:[%s1455_s3] sm:$0x1] }
 0x12f   : > { %v739_v55 = vadd.f32 %v738_v22, %v737_v23  ;;  %v698_v56 = vmul.f32 %v1229_v58, %v1229_v58 }
 0x130   : > { %v640_v41 = vadd.f32 %v639_v43, %v638_v3  ;;  %v750_v2 = vsel %vm555_vm2, %v694_v35, 0.0  ;;  %v756_v61 = vsel %vm555_vm2, %v697_v50, 0.0 }
 0x131   : > { %v741_v30 = vadd.f32 %v740_v25, %v739_v55  ;;  %v758_v58 = vsel %vm555_vm2, %v698_v56, 0.0 }
 0x132   : > { %v642_v10 = vadd.f32 %v641_v5, %v640_v41  ;;  %v752_v5 = vsel %vm555_vm2, %v695_v39, 0.0  ;;  %v754_v41 = vsel %vm555_vm2, %v696_v52, 0.0 }
 0x133   : > { %v743_v33 = vadd.f32 %v742_v28, %v741_v30 }
 0x134   : > { %v644_v13 = vadd.f32 %v643_v8, %v642_v10 }
 0x135   : > { %v745_v37 = vadd.f32 %v744_v31, %v743_v33 }
 0x136   : > { %v646_v16 = vadd.f32 %v645_v11, %v644_v13 }
 0x137   : > { %v747_v57 = vadd.f32 %v746_v59, %v745_v37 }
 0x138   : > { %v648_v19 = vadd.f32 %v647_v45, %v646_v16 }
 0x139   : > { %v749_v4 = vadd.f32 %v748_v1, %v747_v57 }
 0x13a   : > { %v650_v49 = vadd.f32 %v649_v18, %v648_v19 }
 0x13b   : > { %v751_v6 = vadd.f32 %v750_v2, %v749_v4 }
 0x13c   : > { %v652_v26 = vadd.f32 %v651_v21, %v650_v49 }
 0x13d   : > { %v753_v8 = vadd.f32 %v752_v5, %v751_v6 }
 0x13e   : > { %v654_v29 = vadd.f32 %v653_v24, %v652_v26 }
 0x13f   : > { %v755_v10 = vadd.f32 %v754_v41, %v753_v8 }
 0x140   : > { %v656_v32 = vadd.f32 %v655_v27, %v654_v29 }
 0x141   : > { %v757_v36 = vadd.f32 %v756_v61, %v755_v10 }
 0x142   : > { %v658_v46 = vadd.f32 %v657_v53, %v656_v32 }
 0x143   : > { %v759_v0 = vadd.f32 %v758_v58, %v757_v36 }
 0x144   : > { %v659_v43 = vrot.slane %v658_v46, 4 }
 0x145   : > { %v761_v45 = vadd.f32 %v760_v12, %v759_v0 }
 0x146   : > { %v660_v3 = vadd.f32 %v659_v43, %v658_v46 }
 0x147   : > { %v763_v34 = vadd.f32 %v762_v14, %v761_v45 }
 0x148   : > { %v661_v63 = vrot.slane %v660_v3, 2 }
 0x149   : > { %v764_v15 = vrot.slane %v763_v34, 4 }
 0x14a   : > { %v662_v7 = vadd.f32 %v661_v63, %v660_v3 }
 0x14b   : > { %v765_v62 = vadd.f32 %v764_v15, %v763_v34 }
 0x14c   : > { %v663_v9 = vrot.slane %v662_v7, 1 }
 0x14d   : > { %v766_v16 = vrot.slane %v765_v62, 2 }
 0x14e   : > { %v664_v11 = vadd.f32 %v663_v9, %v662_v7 }
 0x14f   : > { %v767_v17 = vadd.f32 %v766_v16, %v765_v62 }
 0x150   : > { %v665_v13 = vadd.f32 %v664_v11, %v595_v60 }
 0x151   : > { %v768_v18 = vrot.slane %v767_v17, 1 }
 0x152   : > { %667 = vst.msk [vmem:[%s1455_s3] sm:$0x1] %vm666_vm4, %v665_v13 }
 0x153   : > { %v769_v51 = vadd.f32 %v768_v18, %v767_v17 }
 0x155   : > { %v770_v19 = vadd.f32 %v769_v51, %v668_v40 }
 0x157   : > { %771 = vst.msk [vmem:[%s1456_s4] sm:$0x1] %vm666_vm4, %v770_v19 }
 0x158 PF: > { %s15_s15 = sadd.s32 1, %s985_s15  }
 0x159   : > { %p12_p5 = scmp.ge.s32.totalorder %s15_s15, 4  }
 0x15b   :  { %14 = sbr.rel (!%p12_p5) target bundleno = 1 (0x1), region = 78 }

// kernel: _forward.19
= control target key start
LH: loop header
LB: loop body
LE: loop exit
PB: predicated region body
PF: predicated region fallthrough
CT: control target
= control target key end

     0   :  { %s893_s6 = smov 0   ;;  %s1121_s0 = inlined_call_operand.vmem [shape: f32[2,18,18,4], index: 0, kind: input, shape index: {}]   ;;  %s1122_s1 = inlined_call_operand.vmem [shape: f32[2,16,16,4], index: 1, kind: output, shape index: {}]  }
   0x1 LB: > { %s855_s7 = sadd.s32 4294967295, %s881_s6   ;;  %p859_p0 = scmp.ge.s32.totalorder %s881_s6, 1  ;;  %s881_s6 = sphi %s893_s6, %s11_s6  }
   0x2   : > { %p87_p1 = scmp.lt.s32.totalorder %s881_s6, 3 }
   0x4   : > { %p88_p2 = pnand %p859_p0, %p87_p1 }
   0x5   : > { %p107_p3 = scmp.lt.s32.totalorder (!%p88_p2), %s855_s7, 1  ;;  %vm219_vm0 = vcmask (!%p88_p2), 1046528   ;;  %vm364_vm1 = vcmask (!%p88_p2), 1045504   ;;  %vm767_vm2 = vcmask (!%p88_p2), 31744  }
   0x6   : > { %91 = sbr.rel (%p88_p2) target bundleno = 142 (0x8e), region = 24 }
   0xd   : > { %s1124_s7 = smov (!%p107_p3, %s855_s7), 1 }
   0xe   : > { %s866_s8 = smul.u32 432, %s1124_s7  ;;  %s865_s12 = sshll.u32 %s1124_s7, 8 }
   0xf   : > { %s953_s15 = scalar_lea.vmem %s1122_s1, %s865_s12 }
  0x10   : > { %s907_s11 = scalar_lea.vmem %s1121_s0, %s866_s8 }
  0x11   : > { %v117_v0 = vld [vmem:[%s907_s11] sm:$0xff]  ;;  %v118_v1 = vld [vmem:[%s907_s11 + $0x8] sm:$0xff]  ;;  %v120_v2 = vld [vmem:[%s907_s11 + $0x18] sm:$0xff] }
  0x12   : > { %v913_v3 = vld [vmem:[%s907_s11 + $0x20] sm:$0xff]  ;;  %v123_v4 = vld [vmem:[%s907_s11 + $0x30] sm:$0xff]  ;;  %v917_v5 = vld [vmem:[%s907_s11 + $0x38] sm:$0xff]  ;;  %v220_v6 = vrot.slane %v117_v0, 1  ;;  %v221_v7 = vrot.slane %v118_v1, 1  ;;  %v225_v8 = vrot.slane %v120_v2, 1 }
  0x13   : > { %v226_v9 = vrot.slane %v913_v3, 1  ;;  %v230_v10 = vrot.slane %v123_v4, 1  ;;  %v231_v11 = vrot.slane %v917_v5, 1  ;;  %v365_v12 = vrot.slane %v117_v0, 2  ;;  %v119_v17 = vld [vmem:[%s907_s11 + $0x10] sm:$0x3] }
  0x14   : > { %v222_v13 = vsel %vm219_vm0, %v220_v6, %v221_v7  ;;  %v366_v14 = vrot.slane %v118_v1, 2  ;;  %v370_v15 = vrot.slane %v120_v2, 2  ;;  %v371_v16 = vrot.slane %v913_v3, 2  ;;  %v122_v22 = vld [vmem:[%s907_s11 + $0x28] sm:$0x3]  ;;  %v127_v46 = vld [vmem:[%s907_s11 + $0x50] sm:$0xff] }
  0x15   : > { %v227_v18 = vsel %vm219_vm0, %v225_v8, %v226_v9  ;;  %v232_v19 = vsel %vm219_vm0, %v230_v10, %v231_v11  ;;  %v332_v20 = vadd.f32 %v222_v13, %v117_v0  ;;  %v375_v21 = vrot.slane %v123_v4, 2  ;;  %v125_v23 = vld [vmem:[%s907_s11 + $0x40] sm:$0x3]  ;;  %v126_v40 = vld [vmem:[%s907_s11 + $0x48] sm:$0xff]  ;;  %v128_v58 = vld [vmem:[%s907_s11 + $0x58] sm:$0x3] }
  0x16   : > { %v334_v24 = vadd.f32 %v227_v18, %v120_v2  ;;  %v336_v25 = vadd.f32 %v232_v19, %v123_v4  ;;  %v367_v26 = vsel %vm364_vm1, %v365_v12, %v366_v14  ;;  %v372_v27 = vsel %vm364_vm1, %v370_v15, %v371_v16 }
  0x17   : > { %v376_v28 = vrot.slane %v917_v5, 2  ;;  %v477_v29 = vadd.f32 %v367_v26, %v332_v20  ;;  %v223_v30 = vrot.slane %v119_v17, 1  ;;  %v228_v31 = vrot.slane %v122_v22, 1  ;;  %v129_v20 = vld [vmem:[%s907_s11 + $0x60] sm:$0xff] }
  0x18   : > { %v479_v32 = vadd.f32 %v372_v27, %v334_v24  ;;  %v233_v33 = vrot.slane %v125_v23, 1  ;;  %v368_v34 = vrot.slane %v119_v17, 2  ;;  %v373_v35 = vrot.slane %v122_v22, 2  ;;  %v130_v24 = vld [vmem:[%s907_s11 + $0x68] sm:$0xff] }
  0x19   : > { %v377_v36 = vsel %vm364_vm1, %v375_v21, %v376_v28  ;;  %v509_v37 = vadd.f32 %v477_v29, %v120_v2  ;;  %v224_v38 = vsel %vm219_vm0, %v221_v7, %v223_v30  ;;  %v229_v39 = vsel %vm219_vm0, %v226_v9, %v228_v31 }
  0x1a   : > { %v481_v41 = vadd.f32 %v377_v36, %v336_v25  ;;  %v511_v42 = vadd.f32 %v479_v32, %v123_v4  ;;  %v234_v43 = vsel %vm219_vm0, %v231_v11, %v233_v33  ;;  %v333_v44 = vadd.f32 %v224_v38, %v118_v1 }
  0x1b   : > { %v551_v45 = vadd.f32 %v509_v37, %v227_v18  ;;  %v335_v47 = vadd.f32 %v229_v39, %v913_v3  ;;  %v337_v48 = vadd.f32 %v234_v43, %v917_v5  ;;  %v369_v49 = vsel %vm364_vm1, %v366_v14, %v368_v34  ;;  %v131_v34 = vld [vmem:[%s907_s11 + $0x70] sm:$0x3] }
  0x1c   : > { %v513_v50 = vadd.f32 %v481_v41, %v126_v40  ;;  %v553_v51 = vadd.f32 %v511_v42, %v232_v19  ;;  %v374_v52 = vsel %vm364_vm1, %v371_v16, %v373_v35  ;;  %v378_v53 = vrot.slane %v125_v23, 2 }
  0x1d   : > { %v590_v54 = vadd.f32 %v551_v45, %v372_v27  ;;  %v478_v55 = vadd.f32 %v369_v49, %v333_v44  ;;  %v480_v56 = vadd.f32 %v374_v52, %v335_v47  ;;  %v235_v57 = vrot.slane %v126_v40, 1 }
  0x1e   : > { %v592_v59 = vadd.f32 %v553_v51, %v377_v36  ;;  %v379_v60 = vsel %vm364_vm1, %v376_v28, %v378_v53  ;;  %v236_v61 = vrot.slane %v127_v46, 1  ;;  %v380_v62 = vrot.slane %v126_v40, 2  ;;  %v132_v51 = vld [vmem:[%s907_s11 + $0x78] sm:$0xff] }
  0x1f   : > { %v622_v63 = vadd.f32 %v590_v54, %v123_v4  ;;  %v482_v0 = vadd.f32 %v379_v60, %v337_v48  ;;  %v510_v1 = vadd.f32 %v478_v55, %v913_v3  ;;  %v512_v2 = vadd.f32 %v480_v56, %v917_v5  ;;  %v133_v54 = vld [vmem:[%s907_s11 + $0x80] sm:$0xff] }
  0x20   : > { %v237_v6 = vsel %vm219_vm0, %v235_v57, %v236_v61  ;;  %v381_v7 = vrot.slane %v127_v46, 2  ;;  %v624_v8 = vadd.f32 %v592_v59, %v126_v40  ;;  %v238_v9 = vrot.slane %v128_v58, 1 }
  0x21   : > { %v664_v10 = vadd.f32 %v622_v63, %v232_v19  ;;  %v514_v11 = vadd.f32 %v482_v0, %v127_v46  ;;  %v552_v12 = vadd.f32 %v510_v1, %v229_v39  ;;  %v554_v13 = vadd.f32 %v512_v2, %v234_v43 }
  0x22   : > { %v338_v14 = vadd.f32 %v237_v6, %v126_v40  ;;  %v382_v4 = vsel %vm364_vm1, %v380_v62, %v381_v7  ;;  %v555_v15 = vadd.f32 %v513_v50, %v237_v6  ;;  %v666_v16 = vadd.f32 %v624_v8, %v237_v6 }
  0x23   : > { %v703_v3 = vadd.f32 %v664_v10, %v377_v36  ;;  %v591_v17 = vadd.f32 %v552_v12, %v374_v52  ;;  %v593_v18 = vadd.f32 %v554_v13, %v379_v60  ;;  %v239_v21 = vsel %vm219_vm0, %v236_v61, %v238_v9 }
  0x24   : > { %v483_v19 = vadd.f32 %v382_v4, %v338_v14  ;;  %v594_v22 = vadd.f32 %v555_v15, %v382_v4  ;;  %v705_v23 = vadd.f32 %v666_v16, %v382_v4  ;;  %v339_v25 = vadd.f32 %v239_v21, %v127_v46 }
  0x25   : > { %v735_v26 = vmul.f32 0.11111111, %v703_v3  ;;  %v623_v27 = vadd.f32 %v591_v17, %v917_v5  ;;  %v383_v28 = vrot.slane %v128_v58, 2  ;;  %v556_v29 = vadd.f32 %v514_v11, %v239_v21  ;;  %v134_v11 = vld [vmem:[%s907_s11 + $0x88] sm:$0x3]  ;;  %v135_v3 = vld [vmem:[%s907_s11 + $0x90] sm:$0xff] }
  0x26   : > { %v515_v30 = vadd.f32 %v483_v19, %v129_v20  ;;  %v737_v31 = vmul.f32 0.11111111, %v705_v23  ;;  %v625_v32 = vadd.f32 %v593_v18, %v127_v46  ;;  %v240_v33 = vrot.slane %v129_v20, 1 }
  0x27   : > { %768 = vst.msk [vmem:[%s953_s15] sm:$0xff] %vm767_vm2, %v735_v26  ;;  %v665_v35 = vadd.f32 %v623_v27, %v234_v43  ;;  %v384_v36 = vsel %vm364_vm1, %v381_v7, %v383_v28  ;;  %v241_v37 = vrot.slane %v130_v24, 1  ;;  %v385_v38 = vrot.slane %v129_v20, 2  ;;  %v136_v26 = vld [vmem:[%s907_s11 + $0x98] sm:$0xff] }
  0x28   : > { %770 = vst.msk [vmem:[%s953_s15 + $0x10] sm:$0xff] %vm767_vm2, %v737_v31  ;;  %v484_v39 = vadd.f32 %v384_v36, %v339_v25  ;;  %v595_v5 = vadd.f32 %v556_v29, %v384_v36  ;;  %v667_v40 = vadd.f32 %v625_v32, %v239_v21  ;;  %v386_v41 = vrot.slane %v130_v24, 2 }
  0x29   : > { %v704_v42 = vadd.f32 %v665_v35, %v379_v60  ;;  %v242_v44 = vsel %vm219_vm0, %v240_v33, %v241_v37  ;;  %v626_v45 = vadd.f32 %v594_v22, %v129_v20  ;;  %v243_v46 = vrot.slane %v131_v34, 1 }
  0x2a   : > { %v516_v47 = vadd.f32 %v484_v39, %v130_v24  ;;  %v706_v43 = vadd.f32 %v667_v40, %v384_v36  ;;  %v340_v48 = vadd.f32 %v242_v44, %v129_v20  ;;  %v387_v49 = vsel %vm364_vm1, %v385_v38, %v386_v41  ;;  %v137_v36 = vld [vmem:[%s907_s11 + $0xa0] sm:$0x3] }
  0x2b   : > { %v736_v50 = vmul.f32 0.11111111, %v704_v42  ;;  %v557_v52 = vadd.f32 %v515_v30, %v242_v44  ;;  %v668_v53 = vadd.f32 %v626_v45, %v242_v44  ;;  %v244_v55 = vsel %vm219_vm0, %v241_v37, %v243_v46 }
  0x2c   : > { %v738_v56 = vmul.f32 0.11111111, %v706_v43  ;;  %v485_v57 = vadd.f32 %v387_v49, %v340_v48  ;;  %v341_v58 = vadd.f32 %v244_v55, %v130_v24  ;;  %v388_v59 = vrot.slane %v131_v34, 2 }
  0x2d   : > { %769 = vst.msk [vmem:[%s953_s15 + $0x8] sm:$0xff] %vm767_vm2, %v736_v50  ;;  %v596_v60 = vadd.f32 %v557_v52, %v387_v49  ;;  %v707_v61 = vadd.f32 %v668_v53, %v387_v49  ;;  %v558_v62 = vadd.f32 %v516_v47, %v244_v55  ;;  %v627_v63 = vadd.f32 %v595_v5, %v130_v24  ;;  %v138_v50 = vld [vmem:[%s907_s11 + $0xa8] sm:$0xff]  ;;  %v139_v53 = vld [vmem:[%s907_s11 + $0xb0] sm:$0xff] }
  0x2e   : > { %771 = vst.msk [vmem:[%s953_s15 + $0x18] sm:$0xff] %vm767_vm2, %v738_v56  ;;  %v517_v0 = vadd.f32 %v485_v57, %v132_v51  ;;  %v389_v1 = vsel %vm364_vm1, %v386_v41, %v388_v59  ;;  %v245_v2 = vrot.slane %v132_v51, 1  ;;  %v246_v6 = vrot.slane %v133_v54, 1 }
  0x2f   : > { %v739_v7 = vmul.f32 0.11111111, %v707_v61  ;;  %v486_v8 = vadd.f32 %v389_v1, %v341_v58  ;;  %v597_v9 = vadd.f32 %v558_v62, %v389_v1  ;;  %v669_v10 = vadd.f32 %v627_v63, %v244_v55 }
  0x30   : > { %v247_v12 = vsel %vm219_vm0, %v245_v2, %v246_v6  ;;  %v390_v13 = vrot.slane %v132_v51, 2  ;;  %v391_v14 = vrot.slane %v133_v54, 2  ;;  %v628_v4 = vadd.f32 %v596_v60, %v132_v51 }
  0x31   : > { %772 = vst.msk [vmem:[%s953_s15 + $0x20] sm:$0xff] %vm767_vm2, %v739_v7  ;;  %v518_v15 = vadd.f32 %v486_v8, %v133_v54  ;;  %v708_v16 = vadd.f32 %v669_v10, %v389_v1  ;;  %v342_v17 = vadd.f32 %v247_v12, %v132_v51  ;;  %v559_v18 = vadd.f32 %v517_v0, %v247_v12 }
  0x32   : > { %v392_v20 = vsel %vm364_vm1, %v390_v13, %v391_v14  ;;  %v670_v21 = vadd.f32 %v628_v4, %v247_v12  ;;  %v248_v19 = vrot.slane %v134_v11, 1  ;;  %v393_v22 = vrot.slane %v134_v11, 2  ;;  %v141_v4 = vld [vmem:[%s907_s11 + $0xc0] sm:$0xff] }
  0x33   : > { %v740_v23 = vmul.f32 0.11111111, %v708_v16  ;;  %v487_v24 = vadd.f32 %v392_v20, %v342_v17  ;;  %v598_v25 = vadd.f32 %v559_v18, %v392_v20  ;;  %v629_v27 = vadd.f32 %v597_v9, %v133_v54  ;;  %v140_v9 = vld [vmem:[%s907_s11 + $0xb8] sm:$0x3]  ;;  %v142_v17 = vld [vmem:[%s907_s11 + $0xc8] sm:$0xff] }
  0x34   : > { %v709_v28 = vadd.f32 %v670_v21, %v392_v20  ;;  %v249_v29 = vsel %vm219_vm0, %v246_v6, %v248_v19  ;;  %v394_v30 = vsel %vm364_vm1, %v391_v14, %v393_v22  ;;  %v250_v31 = vrot.slane %v135_v3, 1 }
  0x35   : > { %773 = vst.msk [vmem:[%s953_s15 + $0x28] sm:$0xff] %vm767_vm2, %v740_v23  ;;  %v519_v32 = vadd.f32 %v487_v24, %v135_v3  ;;  %v343_v33 = vadd.f32 %v249_v29, %v133_v54  ;;  %v560_v34 = vadd.f32 %v518_v15, %v249_v29  ;;  %v671_v35 = vadd.f32 %v629_v27, %v249_v29 }
  0x36   : > { %v741_v37 = vmul.f32 0.11111111, %v709_v28  ;;  %v251_v38 = vrot.slane %v136_v26, 1  ;;  %v395_v39 = vrot.slane %v135_v3, 2  ;;  %v396_v5 = vrot.slane %v136_v26, 2 }
  0x37   : > { %v488_v40 = vadd.f32 %v394_v30, %v343_v33  ;;  %v599_v41 = vadd.f32 %v560_v34, %v394_v30  ;;  %v710_v42 = vadd.f32 %v671_v35, %v394_v30  ;;  %v630_v44 = vadd.f32 %v598_v25, %v135_v3 }
  0x38   : > { %774 = vst.msk [vmem:[%s953_s15 + $0x30] sm:$0xff] %vm767_vm2, %v741_v37  ;;  %v252_v45 = vsel %vm219_vm0, %v250_v31, %v251_v38  ;;  %v397_v46 = vsel %vm364_vm1, %v395_v39, %v396_v5  ;;  %v253_v47 = vrot.slane %v137_v36, 1  ;;  %v398_v43 = vrot.slane %v137_v36, 2 }
  0x39   : > { %v520_v48 = vadd.f32 %v488_v40, %v136_v26  ;;  %v742_v49 = vmul.f32 0.11111111, %v710_v42  ;;  %v344_v51 = vadd.f32 %v252_v45, %v135_v3  ;;  %v561_v52 = vadd.f32 %v519_v32, %v252_v45 }
  0x3a   : > { %v672_v54 = vadd.f32 %v630_v44, %v252_v45  ;;  %v254_v55 = vsel %vm219_vm0, %v251_v38, %v253_v47  ;;  %v399_v56 = vsel %vm364_vm1, %v396_v5, %v398_v43  ;;  %v631_v57 = vadd.f32 %v599_v41, %v136_v26  ;;  %v143_v38 = vld [vmem:[%s907_s11 + $0xd0] sm:$0x3]  ;;  %v144_v44 = vld [vmem:[%s907_s11 + $0xd8] sm:$0xff] }
  0x3b   : > { %775 = vst.msk [vmem:[%s953_s15 + $0x38] sm:$0xff] %vm767_vm2, %v742_v49  ;;  %v489_v58 = vadd.f32 %v397_v46, %v344_v51  ;;  %v600_v59 = vadd.f32 %v561_v52, %v397_v46  ;;  %v345_v60 = vadd.f32 %v254_v55, %v136_v26  ;;  %v562_v61 = vadd.f32 %v520_v48, %v254_v55 }
  0x3c   : > { %v711_v62 = vadd.f32 %v672_v54, %v397_v46  ;;  %v673_v63 = vadd.f32 %v631_v57, %v254_v55  ;;  %v255_v0 = vrot.slane %v138_v50, 1  ;;  %v256_v1 = vrot.slane %v139_v53, 1  ;;  %v145_v54 = vld [vmem:[%s907_s11 + $0xe0] sm:$0xff] }
  0x3d   : > { %v521_v2 = vadd.f32 %v489_v58, %v138_v50  ;;  %v490_v6 = vadd.f32 %v399_v56, %v345_v60  ;;  %v601_v7 = vadd.f32 %v562_v61, %v399_v56  ;;  %v400_v8 = vrot.slane %v138_v50, 2 }
  0x3e   : > { %v743_v10 = vmul.f32 0.11111111, %v711_v62  ;;  %v712_v11 = vadd.f32 %v673_v63, %v399_v56  ;;  %v257_v12 = vsel %vm219_vm0, %v255_v0, %v256_v1  ;;  %v401_v13 = vrot.slane %v139_v53, 2  ;;  %v146_v0 = vld [vmem:[%s907_s11 + $0xe8] sm:$0x3] }
  0x3f   : > { %v522_v14 = vadd.f32 %v490_v6, %v139_v53  ;;  %v346_v15 = vadd.f32 %v257_v12, %v138_v50  ;;  %v563_v16 = vadd.f32 %v521_v2, %v257_v12  ;;  %v632_v3 = vadd.f32 %v600_v59, %v138_v50 }
  0x40   : > { %776 = vst.msk [vmem:[%s953_s15 + $0x40] sm:$0xff] %vm767_vm2, %v743_v10  ;;  %v744_v18 = vmul.f32 0.11111111, %v712_v11  ;;  %v402_v20 = vsel %vm364_vm1, %v400_v8, %v401_v13  ;;  %v258_v21 = vrot.slane %v140_v9, 1  ;;  %v403_v19 = vrot.slane %v140_v9, 2 }
  0x41   : > { %v491_v22 = vadd.f32 %v402_v20, %v346_v15  ;;  %v602_v23 = vadd.f32 %v563_v16, %v402_v20  ;;  %v674_v24 = vadd.f32 %v632_v3, %v257_v12  ;;  %v633_v25 = vadd.f32 %v601_v7, %v139_v53  ;;  %v147_v3 = vld [vmem:[%s907_s11 + $0xf0] sm:$0xff] }
  0x42   : > { %777 = vst.msk [vmem:[%s953_s15 + $0x48] sm:$0xff] %vm767_vm2, %v744_v18  ;;  %v259_v26 = vsel %vm219_vm0, %v256_v1, %v258_v21  ;;  %v404_v27 = vsel %vm364_vm1, %v401_v13, %v403_v19  ;;  %v260_v28 = vrot.slane %v141_v4, 1  ;;  %v261_v29 = vrot.slane %v142_v17, 1 }
  0x43   : > { %v523_v30 = vadd.f32 %v491_v22, %v141_v4  ;;  %v713_v31 = vadd.f32 %v674_v24, %v402_v20  ;;  %v347_v32 = vadd.f32 %v259_v26, %v139_v53  ;;  %v564_v33 = vadd.f32 %v522_v14, %v259_v26  ;;  %v148_v20 = vld [vmem:[%s907_s11 + $0xf8] sm:$0xff] }
  0x44   : > { %v675_v34 = vadd.f32 %v633_v25, %v259_v26  ;;  %v262_v35 = vsel %vm219_vm0, %v260_v28, %v261_v29  ;;  %v405_v36 = vrot.slane %v141_v4, 2  ;;  %v406_v37 = vrot.slane %v142_v17, 2 }
  0x45   : > { %v745_v39 = vmul.f32 0.11111111, %v713_v31  ;;  %v492_v5 = vadd.f32 %v404_v27, %v347_v32  ;;  %v603_v40 = vadd.f32 %v564_v33, %v404_v27  ;;  %v348_v41 = vadd.f32 %v262_v35, %v141_v4 }
  0x46   : > { %v714_v42 = vadd.f32 %v675_v34, %v404_v27  ;;  %v407_v45 = vsel %vm364_vm1, %v405_v36, %v406_v37  ;;  %v565_v46 = vadd.f32 %v523_v30, %v262_v35  ;;  %v634_v47 = vadd.f32 %v602_v23, %v141_v4  ;;  %v149_v36 = vld [vmem:[%s907_s11 + $0x100] sm:$0x3] }
  0x47   : > { %778 = vst.msk [vmem:[%s953_s15 + $0x50] sm:$0xff] %vm767_vm2, %v745_v39  ;;  %v524_v43 = vadd.f32 %v492_v5, %v142_v17  ;;  %v493_v48 = vadd.f32 %v407_v45, %v348_v41  ;;  %v263_v49 = vrot.slane %v143_v38, 1  ;;  %v408_v50 = vrot.slane %v143_v38, 2  ;;  %v150_v41 = vld [vmem:[%s907_s11 + $0x108] sm:$0xff] }
  0x48   : > { %v746_v51 = vmul.f32 0.11111111, %v714_v42  ;;  %v604_v52 = vadd.f32 %v565_v46, %v407_v45  ;;  %v676_v53 = vadd.f32 %v634_v47, %v262_v35  ;;  %v635_v55 = vadd.f32 %v603_v40, %v142_v17  ;;  %v151_v46 = vld [vmem:[%s907_s11 + $0x110] sm:$0xff] }
  0x49   : > { %v525_v56 = vadd.f32 %v493_v48, %v144_v44  ;;  %v264_v57 = vsel %vm219_vm0, %v261_v29, %v263_v49  ;;  %v409_v58 = vsel %vm364_vm1, %v406_v37, %v408_v50  ;;  %v265_v59 = vrot.slane %v144_v44, 1 }
  0x4a   : > { %779 = vst.msk [vmem:[%s953_s15 + $0x58] sm:$0xff] %vm767_vm2, %v746_v51  ;;  %v715_v60 = vadd.f32 %v676_v53, %v407_v45  ;;  %v349_v61 = vadd.f32 %v264_v57, %v142_v17  ;;  %v566_v62 = vadd.f32 %v524_v43, %v264_v57  ;;  %v677_v63 = vadd.f32 %v635_v55, %v264_v57 }
  0x4b   : > { %v266_v1 = vrot.slane %v145_v54, 1  ;;  %v410_v2 = vrot.slane %v144_v44, 2  ;;  %v411_v6 = vrot.slane %v145_v54, 2  ;;  %v636_v7 = vadd.f32 %v604_v52, %v144_v44 }
  0x4c   : > { %v747_v8 = vmul.f32 0.11111111, %v715_v60  ;;  %v494_v9 = vadd.f32 %v409_v58, %v349_v61  ;;  %v605_v10 = vadd.f32 %v566_v62, %v409_v58  ;;  %v716_v11 = vadd.f32 %v677_v63, %v409_v58 }
  0x4d   : > { %v267_v12 = vsel %vm219_vm0, %v265_v59, %v266_v1  ;;  %v412_v13 = vsel %vm364_vm1, %v410_v2, %v411_v6  ;;  %v268_v14 = vrot.slane %v146_v0, 1  ;;  %v413_v4 = vrot.slane %v146_v0, 2  ;;  %v152_v2 = vld [vmem:[%s907_s11 + $0x118] sm:$0x3] }
  0x4e   : > { %780 = vst.msk [vmem:[%s953_s15 + $0x60] sm:$0xff] %vm767_vm2, %v747_v8  ;;  %v526_v15 = vadd.f32 %v494_v9, %v145_v54  ;;  %v748_v16 = vmul.f32 0.11111111, %v716_v11  ;;  %v350_v17 = vadd.f32 %v267_v12, %v144_v44  ;;  %v567_v18 = vadd.f32 %v525_v56, %v267_v12  ;;  %v153_v11 = vld [vmem:[%s907_s11 + $0x120] sm:$0xff] }
  0x4f   : > { %v678_v21 = vadd.f32 %v636_v7, %v267_v12  ;;  %v269_v19 = vsel %vm219_vm0, %v266_v1, %v268_v14  ;;  %v414_v22 = vsel %vm364_vm1, %v411_v6, %v413_v4  ;;  %v637_v23 = vadd.f32 %v605_v10, %v145_v54 }
  0x50   : > { %781 = vst.msk [vmem:[%s953_s15 + $0x68] sm:$0xff] %vm767_vm2, %v748_v16  ;;  %v495_v24 = vadd.f32 %v412_v13, %v350_v17  ;;  %v606_v25 = vadd.f32 %v567_v18, %v412_v13  ;;  %v351_v26 = vadd.f32 %v269_v19, %v145_v54  ;;  %v568_v27 = vadd.f32 %v526_v15, %v269_v19 }
  0x51   : > { %v717_v28 = vadd.f32 %v678_v21, %v412_v13  ;;  %v679_v29 = vadd.f32 %v637_v23, %v269_v19  ;;  %v270_v30 = vrot.slane %v147_v3, 1  ;;  %v271_v31 = vrot.slane %v148_v20, 1  ;;  %v154_v21 = vld [vmem:[%s907_s11 + $0x128] sm:$0xff] }
  0x52   : > { %v527_v32 = vadd.f32 %v495_v24, %v147_v3  ;;  %v496_v33 = vadd.f32 %v414_v22, %v351_v26  ;;  %v607_v34 = vadd.f32 %v568_v27, %v414_v22  ;;  %v415_v35 = vrot.slane %v147_v3, 2 }
  0x53   : > { %v749_v37 = vmul.f32 0.11111111, %v717_v28  ;;  %v718_v38 = vadd.f32 %v679_v29, %v414_v22  ;;  %v272_v39 = vsel %vm219_vm0, %v270_v30, %v271_v31  ;;  %v416_v5 = vrot.slane %v148_v20, 2  ;;  %v155_v30 = vld [vmem:[%s907_s11 + $0x130] sm:$0x3] }
  0x54   : > { %v528_v40 = vadd.f32 %v496_v33, %v148_v20  ;;  %v352_v42 = vadd.f32 %v272_v39, %v147_v3  ;;  %v569_v44 = vadd.f32 %v527_v32, %v272_v39  ;;  %v638_v45 = vadd.f32 %v606_v25, %v147_v3 }
  0x55   : > { %782 = vst.msk [vmem:[%s953_s15 + $0x70] sm:$0xff] %vm767_vm2, %v749_v37  ;;  %v750_v47 = vmul.f32 0.11111111, %v718_v38  ;;  %v417_v43 = vsel %vm364_vm1, %v415_v35, %v416_v5  ;;  %v273_v48 = vrot.slane %v149_v36, 1  ;;  %v418_v49 = vrot.slane %v149_v36, 2 }
  0x56   : > { %v497_v50 = vadd.f32 %v417_v43, %v352_v42  ;;  %v608_v51 = vadd.f32 %v569_v44, %v417_v43  ;;  %v680_v52 = vadd.f32 %v638_v45, %v272_v39  ;;  %v639_v53 = vadd.f32 %v607_v34, %v148_v20  ;;  %v156_v45 = vld [vmem:[%s907_s11 + $0x138] sm:$0xff] }
  0x57   : > { %783 = vst.msk [vmem:[%s953_s15 + $0x78] sm:$0xff] %vm767_vm2, %v750_v47  ;;  %v274_v54 = vsel %vm219_vm0, %v271_v31, %v273_v48  ;;  %v419_v55 = vsel %vm364_vm1, %v416_v5, %v418_v49  ;;  %v275_v56 = vrot.slane %v150_v41, 1  ;;  %v276_v57 = vrot.slane %v151_v46, 1 }
  0x58   : > { %v529_v58 = vadd.f32 %v497_v50, %v150_v41  ;;  %v719_v59 = vadd.f32 %v680_v52, %v417_v43  ;;  %v353_v60 = vadd.f32 %v274_v54, %v148_v20  ;;  %v570_v61 = vadd.f32 %v528_v40, %v274_v54  ;;  %v157_v43 = vld [vmem:[%s907_s11 + $0x140] sm:$0xff] }
  0x59   : > { %v681_v62 = vadd.f32 %v639_v53, %v274_v54  ;;  %v277_v63 = vsel %vm219_vm0, %v275_v56, %v276_v57  ;;  %v420_v0 = vrot.slane %v150_v41, 2  ;;  %v421_v1 = vrot.slane %v151_v46, 2 }
  0x5a   : > { %v751_v6 = vmul.f32 0.11111111, %v719_v59  ;;  %v498_v7 = vadd.f32 %v419_v55, %v353_v60  ;;  %v609_v8 = vadd.f32 %v570_v61, %v419_v55  ;;  %v354_v9 = vadd.f32 %v277_v63, %v150_v41 }
  0x5b   : > { %v720_v10 = vadd.f32 %v681_v62, %v419_v55  ;;  %v422_v12 = vsel %vm364_vm1, %v420_v0, %v421_v1  ;;  %v571_v13 = vadd.f32 %v529_v58, %v277_v63  ;;  %v640_v14 = vadd.f32 %v608_v51, %v150_v41  ;;  %v158_v0 = vld [vmem:[%s907_s11 + $0x148] sm:$0x3] }
  0x5c   : > { %784 = vst.msk [vmem:[%s953_s15 + $0x80] sm:$0xff] %vm767_vm2, %v751_v6  ;;  %v530_v4 = vadd.f32 %v498_v7, %v151_v46  ;;  %v499_v15 = vadd.f32 %v422_v12, %v354_v9  ;;  %v278_v16 = vrot.slane %v152_v2, 1  ;;  %v423_v3 = vrot.slane %v152_v2, 2  ;;  %v159_v9 = vld [vmem:[%s907_s11 + $0x150] sm:$0xff] }
  0x5d   : > { %v752_v17 = vmul.f32 0.11111111, %v720_v10  ;;  %v610_v18 = vadd.f32 %v571_v13, %v422_v12  ;;  %v682_v20 = vadd.f32 %v640_v14, %v277_v63  ;;  %v641_v19 = vadd.f32 %v609_v8, %v151_v46  ;;  %v160_v13 = vld [vmem:[%s907_s11 + $0x158] sm:$0xff] }
  0x5e   : > { %v531_v22 = vadd.f32 %v499_v15, %v153_v11  ;;  %v279_v23 = vsel %vm219_vm0, %v276_v57, %v278_v16  ;;  %v424_v24 = vsel %vm364_vm1, %v421_v1, %v423_v3  ;;  %v280_v25 = vrot.slane %v153_v11, 1 }
  0x5f   : > { %785 = vst.msk [vmem:[%s953_s15 + $0x88] sm:$0xff] %vm767_vm2, %v752_v17  ;;  %v721_v26 = vadd.f32 %v682_v20, %v422_v12  ;;  %v355_v27 = vadd.f32 %v279_v23, %v151_v46  ;;  %v572_v28 = vadd.f32 %v530_v4, %v279_v23  ;;  %v683_v29 = vadd.f32 %v641_v19, %v279_v23 }
  0x60   : > { %v281_v31 = vrot.slane %v154_v21, 1  ;;  %v425_v32 = vrot.slane %v153_v11, 2  ;;  %v426_v33 = vrot.slane %v154_v21, 2  ;;  %v642_v34 = vadd.f32 %v610_v18, %v153_v11 }
  0x61   : > { %v753_v35 = vmul.f32 0.11111111, %v721_v26  ;;  %v500_v36 = vadd.f32 %v424_v24, %v355_v27  ;;  %v611_v37 = vadd.f32 %v572_v28, %v424_v24  ;;  %v722_v38 = vadd.f32 %v683_v29, %v424_v24 }
  0x62   : > { %v282_v39 = vsel %vm219_vm0, %v280_v25, %v281_v31  ;;  %v427_v5 = vsel %vm364_vm1, %v425_v32, %v426_v33  ;;  %v283_v40 = vrot.slane %v155_v30, 1  ;;  %v428_v41 = vrot.slane %v155_v30, 2  ;;  %v161_v32 = vld [vmem:[%s907_s11 + $0x160] sm:$0x3] }
  0x63   : > { %786 = vst.msk [vmem:[%s953_s15 + $0x90] sm:$0xff] %vm767_vm2, %v753_v35  ;;  %v532_v42 = vadd.f32 %v500_v36, %v154_v21  ;;  %v754_v44 = vmul.f32 0.11111111, %v722_v38  ;;  %v356_v46 = vadd.f32 %v282_v39, %v153_v11  ;;  %v573_v47 = vadd.f32 %v531_v22, %v282_v39  ;;  %v162_v38 = vld [vmem:[%s907_s11 + $0x168] sm:$0xff] }
  0x64   : > { %v684_v48 = vadd.f32 %v642_v34, %v282_v39  ;;  %v284_v49 = vsel %vm219_vm0, %v281_v31, %v283_v40  ;;  %v429_v50 = vsel %vm364_vm1, %v426_v33, %v428_v41  ;;  %v643_v51 = vadd.f32 %v611_v37, %v154_v21 }
  0x65   : > { %787 = vst.msk [vmem:[%s953_s15 + $0x98] sm:$0xff] %vm767_vm2, %v754_v44  ;;  %v501_v52 = vadd.f32 %v427_v5, %v356_v46  ;;  %v612_v53 = vadd.f32 %v573_v47, %v427_v5  ;;  %v357_v54 = vadd.f32 %v284_v49, %v154_v21  ;;  %v574_v55 = vadd.f32 %v532_v42, %v284_v49 }
  0x66   : > { %v723_v56 = vadd.f32 %v684_v48, %v427_v5  ;;  %v685_v57 = vadd.f32 %v643_v51, %v284_v49  ;;  %v285_v58 = vrot.slane %v156_v45, 1  ;;  %v286_v59 = vrot.slane %v157_v43, 1  ;;  %v163_v48 = vld [vmem:[%s907_s11 + $0x170] sm:$0xff] }
  0x67   : > { %v533_v60 = vadd.f32 %v501_v52, %v156_v45  ;;  %v502_v61 = vadd.f32 %v429_v50, %v357_v54  ;;  %v613_v62 = vadd.f32 %v574_v55, %v429_v50  ;;  %v430_v63 = vrot.slane %v156_v45, 2 }
  0x68   : > { %v755_v1 = vmul.f32 0.11111111, %v723_v56  ;;  %v724_v2 = vadd.f32 %v685_v57, %v429_v50  ;;  %v287_v6 = vsel %vm219_vm0, %v285_v58, %v286_v59  ;;  %v431_v7 = vrot.slane %v157_v43, 2  ;;  %v164_v58 = vld [vmem:[%s907_s11 + $0x178] sm:$0x3] }
  0x69   : > { %v534_v8 = vadd.f32 %v502_v61, %v157_v43  ;;  %v358_v10 = vadd.f32 %v287_v6, %v156_v45  ;;  %v575_v11 = vadd.f32 %v533_v60, %v287_v6  ;;  %v644_v12 = vadd.f32 %v612_v53, %v156_v45 }
  0x6a   : > { %788 = vst.msk [vmem:[%s953_s15 + $0xa0] sm:$0xff] %vm767_vm2, %v755_v1  ;;  %v756_v14 = vmul.f32 0.11111111, %v724_v2  ;;  %v432_v4 = vsel %vm364_vm1, %v430_v63, %v431_v7  ;;  %v288_v15 = vrot.slane %v158_v0, 1  ;;  %v433_v16 = vrot.slane %v158_v0, 2 }
  0x6b   : > { %v503_v3 = vadd.f32 %v432_v4, %v358_v10  ;;  %v614_v17 = vadd.f32 %v575_v11, %v432_v4  ;;  %v686_v18 = vadd.f32 %v644_v12, %v287_v6  ;;  %v645_v20 = vadd.f32 %v613_v62, %v157_v43 }
  0x6c   : > { %789 = vst.msk [vmem:[%s953_s15 + $0xa8] sm:$0xff] %vm767_vm2, %v756_v14  ;;  %v289_v21 = vsel %vm219_vm0, %v286_v59, %v288_v15  ;;  %v434_v19 = vsel %vm364_vm1, %v431_v7, %v433_v16  ;;  %v290_v22 = vrot.slane %v159_v9, 1  ;;  %v291_v23 = vrot.slane %v160_v13, 1  ;;  %v165_v14 = vld [vmem:[%s907_s11 + $0x180] sm:$0xff] }
  0x6d   : > { %v535_v24 = vadd.f32 %v503_v3, %v159_v9  ;;  %v725_v25 = vadd.f32 %v686_v18, %v432_v4  ;;  %v359_v26 = vadd.f32 %v289_v21, %v157_v43  ;;  %v576_v27 = vadd.f32 %v534_v8, %v289_v21  ;;  %v166_v4 = vld [vmem:[%s907_s11 + $0x188] sm:$0xff] }
  0x6e   : > { %v687_v28 = vadd.f32 %v645_v20, %v289_v21  ;;  %v292_v29 = vsel %vm219_vm0, %v290_v22, %v291_v23  ;;  %v435_v30 = vrot.slane %v159_v9, 2  ;;  %v436_v31 = vrot.slane %v160_v13, 2 }
  0x6f   : > { %v757_v33 = vmul.f32 0.11111111, %v725_v25  ;;  %v504_v34 = vadd.f32 %v434_v19, %v359_v26  ;;  %v615_v35 = vadd.f32 %v576_v27, %v434_v19  ;;  %v360_v36 = vadd.f32 %v292_v29, %v159_v9  ;;  %v167_v26 = vld [vmem:[%s907_s11 + $0x190] sm:$0x3] }
  0x70   : > { %v726_v37 = vadd.f32 %v687_v28, %v434_v19  ;;  %v437_v39 = vsel %vm364_vm1, %v435_v30, %v436_v31  ;;  %v577_v5 = vadd.f32 %v535_v24, %v292_v29  ;;  %v646_v40 = vadd.f32 %v614_v17, %v159_v9 }
  0x71   : > { %790 = vst.msk [vmem:[%s953_s15 + $0xb0] sm:$0xff] %vm767_vm2, %v757_v33  ;;  %v536_v41 = vadd.f32 %v504_v34, %v160_v13  ;;  %v505_v42 = vadd.f32 %v437_v39, %v360_v36  ;;  %v293_v44 = vrot.slane %v161_v32, 1  ;;  %v438_v45 = vrot.slane %v161_v32, 2 }
  0x72   : > { %v758_v46 = vmul.f32 0.11111111, %v726_v37  ;;  %v616_v47 = vadd.f32 %v577_v5, %v437_v39  ;;  %v688_v43 = vadd.f32 %v646_v40, %v292_v29  ;;  %v647_v49 = vadd.f32 %v615_v35, %v160_v13  ;;  %v168_v35 = vld [vmem:[%s907_s11 + $0x198] sm:$0xff]  ;;  %v169_v5 = vld [vmem:[%s907_s11 + $0x1a0] sm:$0xff] }
  0x73   : > { %v537_v50 = vadd.f32 %v505_v42, %v162_v38  ;;  %v294_v51 = vsel %vm219_vm0, %v291_v23, %v293_v44  ;;  %v439_v52 = vsel %vm364_vm1, %v436_v31, %v438_v45  ;;  %v295_v53 = vrot.slane %v162_v38, 1 }
  0x74   : > { %791 = vst.msk [vmem:[%s953_s15 + $0xb8] sm:$0xff] %vm767_vm2, %v758_v46  ;;  %v727_v54 = vadd.f32 %v688_v43, %v437_v39  ;;  %v361_v55 = vadd.f32 %v294_v51, %v160_v13  ;;  %v578_v56 = vadd.f32 %v536_v41, %v294_v51  ;;  %v689_v57 = vadd.f32 %v647_v49, %v294_v51 }
  0x75   : > { %v296_v59 = vrot.slane %v163_v48, 1  ;;  %v440_v60 = vrot.slane %v162_v38, 2  ;;  %v441_v61 = vrot.slane %v163_v48, 2  ;;  %v648_v62 = vadd.f32 %v616_v47, %v162_v38 }
  0x76   : > { %v759_v63 = vmul.f32 0.11111111, %v727_v54  ;;  %v506_v0 = vadd.f32 %v439_v52, %v361_v55  ;;  %v617_v1 = vadd.f32 %v578_v56, %v439_v52  ;;  %v728_v2 = vadd.f32 %v689_v57, %v439_v52 }
  0x77   : > { %v297_v6 = vsel %vm219_vm0, %v295_v53, %v296_v59  ;;  %v442_v7 = vsel %vm364_vm1, %v440_v60, %v441_v61  ;;  %v298_v8 = vrot.slane %v164_v58, 1  ;;  %v443_v9 = vrot.slane %v164_v58, 2 }
  0x78   : > { %792 = vst.msk [vmem:[%s953_s15 + $0xc0] sm:$0xff] %vm767_vm2, %v759_v63  ;;  %v538_v10 = vadd.f32 %v506_v0, %v163_v48  ;;  %v760_v11 = vmul.f32 0.11111111, %v728_v2  ;;  %v362_v12 = vadd.f32 %v297_v6, %v162_v38  ;;  %v579_v13 = vadd.f32 %v537_v50, %v297_v6 }
  0x79   : > { %v690_v15 = vadd.f32 %v648_v62, %v297_v6  ;;  %v299_v16 = vsel %vm219_vm0, %v296_v59, %v298_v8  ;;  %v444_v3 = vsel %vm364_vm1, %v441_v61, %v443_v9  ;;  %v649_v17 = vadd.f32 %v617_v1, %v163_v48 }
  0x7a   : > { %793 = vst.msk [vmem:[%s953_s15 + $0xc8] sm:$0xff] %vm767_vm2, %v760_v11  ;;  %v507_v18 = vadd.f32 %v442_v7, %v362_v12  ;;  %v618_v20 = vadd.f32 %v579_v13, %v442_v7  ;;  %v363_v21 = vadd.f32 %v299_v16, %v163_v48  ;;  %v580_v19 = vadd.f32 %v538_v10, %v299_v16  ;;  %v170_v48 = vld [vmem:[%s907_s11 + $0x1a8] sm:$0x3] }
  0x7b   : > { %v729_v22 = vadd.f32 %v690_v15, %v442_v7  ;;  %v691_v23 = vadd.f32 %v649_v17, %v299_v16  ;;  %v544_v24 = vrot.slane %v165_v14, 1  ;;  %v545_v25 = vrot.slane %v166_v4, 1 }
  0x7c   : > { %v508_v27 = vadd.f32 %v444_v3, %v363_v21  ;;  %v619_v28 = vadd.f32 %v580_v19, %v444_v3  ;;  %v539_v29 = vadd.f32 %v507_v18, %v165_v14  ;;  %v583_v30 = vrot.slane %v165_v14, 2 }
  0x7d   : > { %v761_v31 = vmul.f32 0.11111111, %v729_v22  ;;  %v730_v32 = vadd.f32 %v691_v23, %v444_v3  ;;  %v546_v33 = vsel %vm219_vm0, %v544_v24, %v545_v25  ;;  %v584_v34 = vrot.slane %v166_v4, 2 }
  0x7e   : > { %v581_v36 = vadd.f32 %v546_v33, %v539_v29  ;;  %v650_v37 = vadd.f32 %v618_v20, %v165_v14  ;;  %v540_v38 = vadd.f32 %v508_v27, %v166_v4  ;;  %v547_v39 = vrot.slane %v167_v26, 1 }
  0x7f   : > { %794 = vst.msk [vmem:[%s953_s15 + $0xd0] sm:$0xff] %vm767_vm2, %v761_v31  ;;  %v762_v40 = vmul.f32 0.11111111, %v730_v32  ;;  %v585_v41 = vsel %vm364_vm1, %v583_v30, %v584_v34  ;;  %v586_v42 = vrot.slane %v167_v26, 2  ;;  %v651_v44 = vadd.f32 %v619_v28, %v166_v4 }
  0x80   : > { %v620_v45 = vadd.f32 %v585_v41, %v581_v36  ;;  %v692_v46 = vadd.f32 %v650_v37, %v546_v33  ;;  %v548_v47 = vsel %vm219_vm0, %v545_v25, %v547_v39  ;;  %v657_v43 = vrot.slane %v168_v35, 1 }
  0x81   : > { %795 = vst.msk [vmem:[%s953_s15 + $0xd8] sm:$0xff] %vm767_vm2, %v762_v40  ;;  %v582_v49 = vadd.f32 %v548_v47, %v540_v38  ;;  %v587_v50 = vsel %vm364_vm1, %v584_v34, %v586_v42  ;;  %v693_v51 = vadd.f32 %v651_v44, %v548_v47  ;;  %v658_v52 = vrot.slane %v169_v5, 1 }
  0x82   : > { %v731_v53 = vadd.f32 %v692_v46, %v585_v41  ;;  %v652_v54 = vadd.f32 %v620_v45, %v168_v35  ;;  %v696_v55 = vrot.slane %v168_v35, 2  ;;  %v697_v56 = vrot.slane %v169_v5, 2 }
  0x83   : > { %v621_v57 = vadd.f32 %v587_v50, %v582_v49  ;;  %v732_v58 = vadd.f32 %v693_v51, %v587_v50  ;;  %v659_v59 = vsel %vm219_vm0, %v657_v43, %v658_v52  ;;  %v660_v60 = vrot.slane %v170_v48, 1 }
  0x84   : > { %v763_v61 = vmul.f32 0.11111111, %v731_v53  ;;  %v694_v62 = vadd.f32 %v659_v59, %v652_v54  ;;  %v698_v63 = vsel %vm364_vm1, %v696_v55, %v697_v56  ;;  %v699_v0 = vrot.slane %v170_v48, 2 }
  0x85   : > { %v764_v1 = vmul.f32 0.11111111, %v732_v58  ;;  %v653_v2 = vadd.f32 %v621_v57, %v169_v5  ;;  %v661_v6 = vsel %vm219_vm0, %v658_v52, %v660_v60 }
  0x86   : > { %796 = vst.msk [vmem:[%s953_s15 + $0xe0] sm:$0xff] %vm767_vm2, %v763_v61  ;;  %v733_v7 = vadd.f32 %v698_v63, %v694_v62  ;;  %v700_v8 = vsel %vm364_vm1, %v697_v56, %v699_v0 }
  0x87   : > { %797 = vst.msk [vmem:[%s953_s15 + $0xe8] sm:$0xff] %vm767_vm2, %v764_v1  ;;  %v695_v9 = vadd.f32 %v661_v6, %v653_v2 }
  0x88   : > { %v765_v10 = vmul.f32 0.11111111, %v733_v7 }
  0x89   : > { %v734_v11 = vadd.f32 %v700_v8, %v695_v9 }
  0x8a   : > { %798 = vst.msk [vmem:[%s953_s15 + $0xf0] sm:$0xff] %vm767_vm2, %v765_v10 }
  0x8b   : > { %v766_v12 = vmul.f32 0.11111111, %v734_v11 }
  0x8d   : > { %799 = vst.msk [vmem:[%s953_s15 + $0xf8] sm:$0xff] %vm767_vm2, %v766_v12 }
  0x8e PF: > { %s11_s6 = sadd.s32 1, %s881_s6  }
  0x8f   : > { %p8_p4 = scmp.ge.s32.totalorder %s11_s6, 4  }
  0x91   :  { %10 = sbr.rel (!%p8_p4) target bundleno = 1 (0x1), region = 54 }

// kernel: _forward.20
= control target key start
LH: loop header
LB: loop body
LE: loop exit
PB: predicated region body
PF: predicated region fallthrough
CT: control target
= control target key end

     0   :  { %s1013_s15 = smov 0   ;;  %s1452_s0 = inlined_call_operand.vmem [shape: f32[512,4], index: 0, kind: input, shape index: {}]   ;;  %s1453_s1 = inlined_call_operand.vmem [shape: f32[4,8], index: 1, kind: input, shape index: {}]   ;;  %s1454_s2 = inlined_call_operand.vmem [shape: f32[512,8], index: 2, kind: output, shape index: {0}]   ;;  %s1455_s3 = inlined_call_operand.vmem [shape: f32[1,8], index: 3, kind: output, shape index: {1}]   ;;  %s1456_s4 = inlined_call_operand.vmem [shape: f32[1,8], index: 4, kind: output, shape index: {2}]  }
   0x1 LB: > { %s840_s16 = sadd.s32 4294967295, %s985_s15   ;;  %p844_p0 = scmp.ge.s32.totalorder %s985_s15, 1  ;;  %s985_s15 = sphi %s1013_s15, %s15_s15  }
   0x2   : > { %p158_p1 = scmp.lt.s32.totalorder %s985_s15, 3 }
   0x4   : > { %p159_p2 = pnand %p844_p0, %p158_p1 }
   0x5   : > { %v228_v0 = vld [vmem:[%s1453_s1] sm:$0xf] (!%p159_p2)  ;;  %vm326_vm0 = vcmask (!%p159_p2), 1043456   ;;  %s845_s19 = sshll.u32 (!%p159_p2), %s840_s16, 5  ;;  %vm229_vm1 = vcmask (!%p159_p2), 31744   ;;  %vm555_vm2 = vcmask (!%p159_p2), 64512  }
   0x6   : > { %162 = sbr.rel (%p159_p2) target bundleno = 344 (0x158), region = 28  ;;  %918 = vmatprep.subr.msk.mxu0 (!%p159_p2), %vm326_vm0, %v228_v0  ;;  %968 = vmatprep.subr.msk.mxu1 (!%p159_p2), %vm326_vm0, %v228_v0  ;;  %p185_p3 = scmp.lt.s32.totalorder (!%p159_p2), %s845_s19, 63 }
   0x7   : > { %919 = vmatpush3.msk.msra.mxu0 (!%p159_p2), %vm326_vm0, %v228_v0  ;;  %969 = vmatpush3.msk.msra.mxu1 (!%p159_p2), %vm326_vm0, %v228_v0  ;;  %p882_p4 = scmp.ne.s32.totalorder (!%p159_p2), %s840_s16, 0 }
   0xd   : > { %s1458_s19 = smov (!%p185_p3, %s845_s19), 63  ;;  %vm592_vm3 = vcmask (!%p882_p4), 57344  }
   0xe   : > { %s846_s20 = sshll.u32 %s1458_s19, 3 }
   0xf   : > { %s1034_s23 = scalar_lea.vmem %s1452_s0, %s846_s20  ;;  %s1105_s26 = scalar_lea.vmem %s1454_s2, %s846_s20 }
  0x10   : > { %v196_v1 = vld [vmem:[%s1034_s23] sm:$0xff]  ;;  %v197_v3 = vld [vmem:[%s1034_s23 + $0x8] sm:$0xff]  ;;  %v198_v5 = vld [vmem:[%s1034_s23 + $0x10] sm:$0xff] }
  0x11   : > { %v212_v2 = vld [vmem:[%s1034_s23 + $0x80] sm:$0xff]  ;;  %920 = vmatprep.mubr.msk.f32.mxu0 %vm229_vm1, %v196_v1  ;;  %v213_v4 = vld [vmem:[%s1034_s23 + $0x88] sm:$0xff]  ;;  %v214_v6 = vld [vmem:[%s1034_s23 + $0x90] sm:$0xff]  ;;  %v987_v1 = vmov (!%p882_p4), 0.0  }
  0x12   : > { %944 = vmatprep.mubr.msk.f32.mxu1 %vm229_vm1, %v212_v2  ;;  %921 = vmatmul.mubr.msk.f32.vlgmr.msra.gmra.mrb[0].mxu0 %vm229_vm1, %v197_v3  ;;  %v199_v7 = vld [vmem:[%s1034_s23 + $0x18] sm:$0xff]  ;;  %v200_v9 = vld [vmem:[%s1034_s23 + $0x20] sm:$0xff]  ;;  %v201_v11 = vld [vmem:[%s1034_s23 + $0x28] sm:$0xff]  ;;  %593 = vst.msk [vmem:[%s1455_s3] sm:$0x1] (!%p882_p4), %vm592_vm3, %v987_v1 }
  0x13   : > { %945 = vmatmul.mubr.msk.f32.vlgmr.msra.gmra.mrb[0].mxu1 %vm229_vm1, %v213_v4  ;;  %923 = vmatprep.mubr.msk.f32.mxu0 %vm229_vm1, %v198_v5  ;;  %v215_v8 = vld [vmem:[%s1034_s23 + $0x98] sm:$0xff]  ;;  %v216_v10 = vld [vmem:[%s1034_s23 + $0xa0] sm:$0xff]  ;;  %v217_v12 = vld [vmem:[%s1034_s23 + $0xa8] sm:$0xff]  ;;  %594 = vst.msk [vmem:[%s1456_s4] sm:$0x1] (!%p882_p4), %vm592_vm3, %v987_v1 }
  0x14   : > { %947 = vmatprep.mubr.msk.f32.mxu1 %vm229_vm1, %v214_v6  ;;  %v202_v13 = vld [vmem:[%s1034_s23 + $0x30] sm:$0xff]  ;;  %v203_v15 = vld [vmem:[%s1034_s23 + $0x38] sm:$0xff]  ;;  %v204_v17 = vld [vmem:[%s1034_s23 + $0x40] sm:$0xff] }
  0x15   : > { %v218_v14 = vld [vmem:[%s1034_s23 + $0xb0] sm:$0xff]  ;;  %v219_v16 = vld [vmem:[%s1034_s23 + $0xb8] sm:$0xff]  ;;  %v220_v18 = vld [vmem:[%s1034_s23 + $0xc0] sm:$0xff] }
  0x16   : > { %924 = vmatmul.mubr.msk.f32.gmra.mrb[2].mxu0 %vm229_vm1, %v199_v7  ;;  %v205_v19 = vld [vmem:[%s1034_s23 + $0x48] sm:$0xff]  ;;  %v206_v21 = vld [vmem:[%s1034_s23 + $0x50] sm:$0xff]  ;;  %v207_v23 = vld [vmem:[%s1034_s23 + $0x58] sm:$0xff] }
  0x17   : > { %948 = vmatmul.mubr.msk.f32.gmra.mrb[2].mxu1 %vm229_vm1, %v215_v8  ;;  %926 = vmatprep.mubr.msk.f32.mxu0 %vm229_vm1, %v200_v9  ;;  %v221_v20 = vld [vmem:[%s1034_s23 + $0xc8] sm:$0xff]  ;;  %v222_v22 = vld [vmem:[%s1034_s23 + $0xd0] sm:$0xff]  ;;  %v223_v24 = vld [vmem:[%s1034_s23 + $0xd8] sm:$0xff] }
  0x18   : > { %950 = vmatprep.mubr.msk.f32.mxu1 %vm229_vm1, %v216_v10  ;;  %v208_v25 = vld [vmem:[%s1034_s23 + $0x60] sm:$0xff]  ;;  %v209_v27 = vld [vmem:[%s1034_s23 + $0x68] sm:$0xff]  ;;  %v210_v29 = vld [vmem:[%s1034_s23 + $0x70] sm:$0xff] }
  0x19   : > { %v224_v26 = vld [vmem:[%s1034_s23 + $0xe0] sm:$0xff]  ;;  %v225_v28 = vld [vmem:[%s1034_s23 + $0xe8] sm:$0xff]  ;;  %v226_v30 = vld [vmem:[%s1034_s23 + $0xf0] sm:$0xff] }
  0x1a   : > { %927 = vmatmul.mubr.msk.f32.gmra.mrb[4].mxu0 %vm229_vm1, %v201_v11  ;;  %v211_v31 = vld [vmem:[%s1034_s23 + $0x78] sm:$0xff] }
  0x1b   : > { %951 = vmatmul.mubr.msk.f32.gmra.mrb[4].mxu1 %vm229_vm1, %v217_v12  ;;  %929 = vmatprep.mubr.msk.f32.mxu0 %vm229_vm1, %v202_v13  ;;  %v227_v32 = vld [vmem:[%s1034_s23 + $0xf8] sm:$0xff] }
  0x1c   : > { %953 = vmatprep.mubr.msk.f32.mxu1 %vm229_vm1, %v218_v14 }
  0x1e   : > { %930 = vmatmul.mubr.msk.f32.gmra.mrb[6].mxu0 %vm229_vm1, %v203_v15 }
  0x1f   : > { %954 = vmatmul.mubr.msk.f32.gmra.mrb[6].mxu1 %vm229_vm1, %v219_v16  ;;  %932 = vmatprep.mubr.msk.f32.mxu0 %vm229_vm1, %v204_v17 }
  0x20   : > { %956 = vmatprep.mubr.msk.f32.mxu1 %vm229_vm1, %v220_v18 }
  0x22   : > { %933 = vmatmul.mubr.msk.f32.gmra.mrb[8].mxu0 %vm229_vm1, %v205_v19 }
  0x23   : > { %957 = vmatmul.mubr.msk.f32.gmra.mrb[8].mxu1 %vm229_vm1, %v221_v20  ;;  %935 = vmatprep.mubr.msk.f32.mxu0 %vm229_vm1, %v206_v21 }
  0x24   : > { %959 = vmatprep.mubr.msk.f32.mxu1 %vm229_vm1, %v222_v22 }
  0x26   : > { %936 = vmatmul.mubr.msk.f32.gmra.mrb[10].mxu0 %vm229_vm1, %v207_v23 }
  0x27   : > { %960 = vmatmul.mubr.msk.f32.gmra.mrb[10].mxu1 %vm229_vm1, %v223_v24  ;;  %938 = vmatprep.mubr.msk.f32.mxu0 %vm229_vm1, %v208_v25 }
  0x28   : > { %962 = vmatprep.mubr.msk.f32.mxu1 %vm229_vm1, %v224_v26 }
  0x2a   : > { %939 = vmatmul.mubr.msk.f32.gmra.mrb[12].mxu0 %vm229_vm1, %v209_v27 }
  0x2b   : > { %963 = vmatmul.mubr.msk.f32.gmra.mrb[12].mxu1 %vm229_vm1, %v225_v28  ;;  %941 = vmatprep.mubr.msk.f32.mxu0 %vm229_vm1, %v210_v29 }
  0x2c   : > { %965 = vmatprep.mubr.msk.f32.mxu1 %vm229_vm1, %v226_v30 }
  0x2e   : > { %942 = vmatmul.mubr.msk.f32.gmra.mrb[14].mxu0 %vm229_vm1, %v211_v31 }
  0x2f   : > { %966 = vmatmul.mubr.msk.f32.gmra.mrb[14].mxu1 %vm229_vm1, %v227_v32 }
  0xe5   : > { %v1107_v33 = vpop.f32.mrb[0].mxu0 }
  0xe6   : > { %v1109_v34 = vpop.f32.mrb[0].mxu1  ;;  %557 = vst.msk [vmem:[%s1105_s26 + $0x8] sm:$0xff] %vm555_vm2, %v1107_v33  ;;  %v1117_v35 = vpop.f32.mrb[1].mxu0 }
  0xe7   : > { %573 = vst.msk [vmem:[%s1105_s26 + $0x88] sm:$0xff] %vm555_vm2, %v1109_v34  ;;  %v1119_v36 = vpop.f32.mrb[1].mxu1  ;;  %556 = vst.msk [vmem:[%s1105_s26] sm:$0xff] %vm555_vm2, %v1117_v35 }
  0xe8   : > { %572 = vst.msk [vmem:[%s1105_s26 + $0x80] sm:$0xff] %vm555_vm2, %v1119_v36 }
  0xe9   : > { %v1127_v37 = vpop.f32.mrb[2].mxu0 }
  0xea   : > { %v1129_v38 = vpop.f32.mrb[2].mxu1  ;;  %559 = vst.msk [vmem:[%s1105_s26 + $0x18] sm:$0xff] %vm555_vm2, %v1127_v37  ;;  %v1137_v39 = vpop.f32.mrb[3].mxu0 }
  0xeb   : > { %575 = vst.msk [vmem:[%s1105_s26 + $0x98] sm:$0xff] %vm555_vm2, %v1129_v38  ;;  %v1139_v40 = vpop.f32.mrb[3].mxu1  ;;  %558 = vst.msk [vmem:[%s1105_s26 + $0x10] sm:$0xff] %vm555_vm2, %v1137_v39 }
  0xec   : > { %574 = vst.msk [vmem:[%s1105_s26 + $0x90] sm:$0xff] %vm555_vm2, %v1139_v40 }
  0xed   : > { %v1147_v41 = vpop.f32.mrb[4].mxu0 }
  0xee   : > { %v1149_v42 = vpop.f32.mrb[4].mxu1  ;;  %561 = vst.msk [vmem:[%s1105_s26 + $0x28] sm:$0xff] %vm555_vm2, %v1147_v41  ;;  %v1157_v43 = vpop.f32.mrb[5].mxu0 }
  0xef   : > { %577 = vst.msk [vmem:[%s1105_s26 + $0xa8] sm:$0xff] %vm555_vm2, %v1149_v42  ;;  %v1159_v44 = vpop.f32.mrb[5].mxu1  ;;  %560 = vst.msk [vmem:[%s1105_s26 + $0x20] sm:$0xff] %vm555_vm2, %v1157_v43 }
  0xf0   : > { %576 = vst.msk [vmem:[%s1105_s26 + $0xa0] sm:$0xff] %vm555_vm2, %v1159_v44 }
  0xf1   : > { %v1167_v45 = vpop.f32.mrb[6].mxu0 }
  0xf2   : > { %v1169_v46 = vpop.f32.mrb[6].mxu1  ;;  %563 = vst.msk [vmem:[%s1105_s26 + $0x38] sm:$0xff] %vm555_vm2, %v1167_v45  ;;  %v1177_v47 = vpop.f32.mrb[7].mxu0 }
  0xf3   : > { %579 = vst.msk [vmem:[%s1105_s26 + $0xb8] sm:$0xff] %vm555_vm2, %v1169_v46  ;;  %v1179_v48 = vpop.f32.mrb[7].mxu1  ;;  %562 = vst.msk [vmem:[%s1105_s26 + $0x30] sm:$0xff] %vm555_vm2, %v1177_v47 }
  0xf4   : > { %578 = vst.msk [vmem:[%s1105_s26 + $0xb0] sm:$0xff] %vm555_vm2, %v1179_v48 }
  0xf5   : > { %v1187_v49 = vpop.f32.mrb[8].mxu0 }
  0xf6   : > { %v1189_v50 = vpop.f32.mrb[8].mxu1  ;;  %565 = vst.msk [vmem:[%s1105_s26 + $0x48] sm:$0xff] %vm555_vm2, %v1187_v49  ;;  %v1197_v51 = vpop.f32.mrb[9].mxu0 }
  0xf7   : > { %581 = vst.msk [vmem:[%s1105_s26 + $0xc8] sm:$0xff] %vm555_vm2, %v1189_v50  ;;  %v1199_v52 = vpop.f32.mrb[9].mxu1  ;;  %564 = vst.msk [vmem:[%s1105_s26 + $0x40] sm:$0xff] %vm555_vm2, %v1197_v51 }
  0xf8   : > { %580 = vst.msk [vmem:[%s1105_s26 + $0xc0] sm:$0xff] %vm555_vm2, %v1199_v52 }
  0xf9   : > { %v1207_v53 = vpop.f32.mrb[10].mxu0 }
  0xfa   : > { %v1209_v54 = vpop.f32.mrb[10].mxu1  ;;  %567 = vst.msk [vmem:[%s1105_s26 + $0x58] sm:$0xff] %vm555_vm2, %v1207_v53  ;;  %v1217_v55 = vpop.f32.mrb[11].mxu0 }
  0xfb   : > { %583 = vst.msk [vmem:[%s1105_s26 + $0xd8] sm:$0xff] %vm555_vm2, %v1209_v54  ;;  %v1219_v56 = vpop.f32.mrb[11].mxu1  ;;  %566 = vst.msk [vmem:[%s1105_s26 + $0x50] sm:$0xff] %vm555_vm2, %v1217_v55 }
  0xfc   : > { %582 = vst.msk [vmem:[%s1105_s26 + $0xd0] sm:$0xff] %vm555_vm2, %v1219_v56 }
  0xfd   : > { %v1227_v57 = vpop.f32.mrb[12].mxu0 }
  0xfe   : > { %v1229_v58 = vpop.f32.mrb[12].mxu1  ;;  %569 = vst.msk [vmem:[%s1105_s26 + $0x68] sm:$0xff] %vm555_vm2, %v1227_v57  ;;  %v1237_v59 = vpop.f32.mrb[13].mxu0  ;;  %591 = sbr.rel (%p882_p4) target bundleno = 261 (0x105), region = 32 }
  0xff   : > { %585 = vst.msk [vmem:[%s1105_s26 + $0xe8] sm:$0xff] %vm555_vm2, %v1229_v58  ;;  %v1239_v60 = vpop.f32.mrb[13].mxu1  ;;  %568 = vst.msk [vmem:[%s1105_s26 + $0x60] sm:$0xff] %vm555_vm2, %v1237_v59 }
 0x100   : > { %584 = vst.msk [vmem:[%s1105_s26 + $0xe0] sm:$0xff] %vm555_vm2, %v1239_v60 }
 0x101   : > { %v1247_v61 = vpop.f32.mrb[14].mxu0 }
 0x102   : > { %v1249_v62 = vpop.f32.mrb[14].mxu1  ;;  %571 = vst.msk [vmem:[%s1105_s26 + $0x78] sm:$0xff] %vm555_vm2, %v1247_v61  ;;  %v1257_v63 = vpop.f32.mrb[15].mxu0 }
 0x103   : > { %587 = vst.msk [vmem:[%s1105_s26 + $0xf8] sm:$0xff] %vm555_vm2, %v1249_v62  ;;  %v1259_v0 = vpop.f32.mrb[15].mxu1  ;;  %570 = vst.msk [vmem:[%s1105_s26 + $0x70] sm:$0xff] %vm555_vm2, %v1257_v63 }
 0x104   : > { %586 = vst.msk [vmem:[%s1105_s26 + $0xf0] sm:$0xff] %vm555_vm2, %v1259_v0 }
 0x105 PF: > { %v596_v2 = vsel %vm555_vm2, %v1117_v35, 0.0  ;;  %v597_v3 = vsel %vm555_vm2, %v1107_v33, 0.0  ;;  %v599_v4 = vsel %vm555_vm2, %v1137_v39, 0.0  ;;  %v601_v6 = vsel %vm555_vm2, %v1127_v37, 0.0 }
 0x106   : > { %v598_v5 = vadd.f32 %v597_v3, %v596_v2  ;;  %v603_v8 = vsel %vm555_vm2, %v1157_v43, 0.0  ;;  %v605_v10 = vsel %vm555_vm2, %v1147_v41, 0.0  ;;  %v607_v12 = vsel %vm555_vm2, %v1177_v47, 0.0 }
 0x107   : > { %v609_v14 = vsel %vm555_vm2, %v1167_v45, 0.0  ;;  %v611_v16 = vsel %vm555_vm2, %v1197_v51, 0.0  ;;  %v613_v18 = vsel %vm555_vm2, %v1187_v49, 0.0  ;;  %v669_v19 = vmul.f32 %v1117_v35, %v1117_v35 }
 0x108   : > { %v600_v7 = vadd.f32 %v599_v4, %v598_v5  ;;  %v670_v20 = vmul.f32 %v1107_v33, %v1107_v33  ;;  %v671_v22 = vmul.f32 %v1137_v39, %v1137_v39  ;;  %v615_v23 = vsel %vm555_vm2, %v1217_v55, 0.0 }
 0x109   : > { %v672_v24 = vmul.f32 %v1127_v37, %v1127_v37  ;;  %v617_v26 = vsel %vm555_vm2, %v1207_v53, 0.0  ;;  %v673_v27 = vmul.f32 %v1157_v43, %v1157_v43  ;;  %v701_v28 = vsel %vm555_vm2, %v669_v19, 0.0 }
 0x10a   : > { %v602_v9 = vadd.f32 %v601_v6, %v600_v7  ;;  %v702_v29 = vsel %vm555_vm2, %v670_v20, 0.0  ;;  %v704_v32 = vsel %vm555_vm2, %v671_v22, 0.0  ;;  %v619_v33 = vsel %vm555_vm2, %v1237_v59, 0.0 }
 0x10b   : > { %v703_v31 = vadd.f32 %v702_v29, %v701_v28  ;;  %v674_v35 = vmul.f32 %v1147_v41, %v1147_v41  ;;  %v706_v37 = vsel %vm555_vm2, %v672_v24, 0.0  ;;  %v621_v43 = vsel %vm555_vm2, %v1227_v57, 0.0 }
 0x10c   : > { %v604_v11 = vadd.f32 %v603_v8, %v602_v9  ;;  %v675_v2 = vmul.f32 %v1177_v47, %v1177_v47  ;;  %v708_v3 = vsel %vm555_vm2, %v673_v27, 0.0  ;;  %v623_v6 = vsel %vm555_vm2, %v1257_v63, 0.0 }
 0x10d   : > { %v705_v1 = vadd.f32 %v704_v32, %v703_v31  ;;  %v676_v41 = vmul.f32 %v1167_v45, %v1167_v45  ;;  %v710_v7 = vsel %vm555_vm2, %v674_v35, 0.0  ;;  %v677_v47 = vmul.f32 %v1197_v51, %v1197_v51 }
 0x10e   : > { %v606_v13 = vadd.f32 %v605_v10, %v604_v11  ;;  %v625_v10 = vsel %vm555_vm2, %v1247_v61, 0.0  ;;  %v712_v11 = vsel %vm555_vm2, %v675_v2, 0.0  ;;  %v678_v45 = vmul.f32 %v1187_v49, %v1187_v49 }
 0x10f   : > { %v707_v5 = vadd.f32 %v706_v37, %v705_v1  ;;  %v679_v51 = vmul.f32 %v1217_v55, %v1217_v55  ;;  %v716_v19 = vsel %vm555_vm2, %v677_v47, 0.0  ;;  %v631_v22 = vsel %vm555_vm2, %v1139_v40, 0.0 }
 0x110   : > { %v608_v15 = vadd.f32 %v607_v12, %v606_v13  ;;  %v680_v49 = vmul.f32 %v1207_v53, %v1207_v53  ;;  %v681_v55 = vmul.f32 %v1237_v59, %v1237_v59  ;;  %v682_v53 = vmul.f32 %v1227_v57, %v1227_v57 }
 0x111   : > { %v709_v9 = vadd.f32 %v708_v3, %v707_v5  ;;  %v720_v27 = vsel %vm555_vm2, %v679_v51, 0.0  ;;  %v637_v35 = vsel %vm555_vm2, %v1149_v42, 0.0  ;;  %v683_v59 = vmul.f32 %v1257_v63, %v1257_v63 }
 0x112   : > { %v610_v17 = vadd.f32 %v609_v14, %v608_v15  ;;  %v627_v14 = vsel %vm555_vm2, %v1119_v36, 0.0  ;;  %v714_v15 = vsel %vm555_vm2, %v676_v41, 0.0  ;;  %v722_v31 = vsel %vm555_vm2, %v680_v49, 0.0 }
 0x113   : > { %v711_v13 = vadd.f32 %v710_v7, %v709_v9  ;;  %v724_v37 = vsel %vm555_vm2, %v681_v55, 0.0  ;;  %v684_v57 = vmul.f32 %v1247_v61, %v1247_v61  ;;  %v726_v2 = vsel %vm555_vm2, %v682_v53, 0.0 }
 0x114   : > { %v612_v21 = vadd.f32 %v611_v16, %v610_v17  ;;  %v641_v5 = vsel %vm555_vm2, %v1169_v46, 0.0  ;;  %v685_v63 = vmul.f32 %v1119_v36, %v1119_v36  ;;  %v686_v61 = vmul.f32 %v1109_v34, %v1109_v34 }
 0x115   : > { %v713_v17 = vadd.f32 %v712_v11, %v711_v13  ;;  %v730_v9 = vsel %vm555_vm2, %v684_v57, 0.0  ;;  %v645_v11 = vsel %vm555_vm2, %v1189_v50, 0.0  ;;  %v687_v36 = vmul.f32 %v1139_v40, %v1139_v40 }
 0x116   : > { %v614_v25 = vadd.f32 %v613_v18, %v612_v21  ;;  %v629_v18 = vsel %vm555_vm2, %v1109_v34, 0.0  ;;  %v688_v34 = vmul.f32 %v1129_v38, %v1129_v38  ;;  %v689_v40 = vmul.f32 %v1159_v44, %v1159_v44 }
 0x117   : > { %v715_v21 = vadd.f32 %v714_v15, %v713_v17  ;;  %v734_v15 = vsel %vm555_vm2, %v686_v61, 0.0  ;;  %v736_v51 = vsel %vm555_vm2, %v687_v36, 0.0  ;;  %v657_v53 = vsel %vm555_vm2, %v1249_v62, 0.0 }
 0x118   : > { %v616_v30 = vadd.f32 %v615_v23, %v614_v25  ;;  %v718_v23 = vsel %vm555_vm2, %v678_v45, 0.0  ;;  %v647_v45 = vsel %vm555_vm2, %v1219_v56, 0.0  ;;  %vm666_vm4 = vcmask 57344  }
 0x119   : > { %v717_v25 = vadd.f32 %v716_v19, %v715_v21  ;;  %v651_v21 = vsel %vm555_vm2, %v1239_v60, 0.0 }
 0x11a   : > { %v618_v39 = vadd.f32 %v617_v26, %v616_v30  ;;  %v633_v26 = vsel %vm555_vm2, %v1129_v38, 0.0  ;;  %v635_v30 = vsel %vm555_vm2, %v1159_v44, 0.0  ;;  %v690_v38 = vmul.f32 %v1149_v42, %v1149_v42 }
 0x11b   : > { %v719_v29 = vadd.f32 %v718_v23, %v717_v25  ;;  %v691_v44 = vmul.f32 %v1179_v48, %v1179_v48  ;;  %v740_v25 = vsel %vm555_vm2, %v689_v40, 0.0  ;;  %v692_v42 = vmul.f32 %v1169_v46, %v1169_v46  ;;  %v668_v40 = vld [vmem:[%s1456_s4] sm:$0x1] }
 0x11c   : > { %v620_v4 = vadd.f32 %v619_v33, %v618_v39 }
 0x11d   : > { %v721_v33 = vadd.f32 %v720_v27, %v719_v29  ;;  %v655_v27 = vsel %vm555_vm2, %v1259_v0, 0.0 }
 0x11e   : > { %v622_v8 = vadd.f32 %v621_v43, %v620_v4  ;;  %v639_v43 = vsel %vm555_vm2, %v1179_v48, 0.0  ;;  %v693_v48 = vmul.f32 %v1199_v52, %v1199_v52 }
 0x11f   : > { %v723_v1 = vadd.f32 %v722_v31, %v721_v33  ;;  %v744_v31 = vsel %vm555_vm2, %v691_v44, 0.0 }
 0x120   : > { %v624_v12 = vadd.f32 %v623_v6, %v622_v8  ;;  %v728_v6 = vsel %vm555_vm2, %v683_v59, 0.0  ;;  %v643_v8 = vsel %vm555_vm2, %v1199_v52, 0.0  ;;  %v746_v59 = vsel %vm555_vm2, %v692_v42, 0.0 }
 0x121   : > { %v725_v4 = vadd.f32 %v724_v37, %v723_v1  ;;  %v748_v1 = vsel %vm555_vm2, %v693_v48, 0.0  ;;  %v696_v52 = vmul.f32 %v1209_v54, %v1209_v54 }
 0x122   : > { %v626_v16 = vadd.f32 %v625_v10, %v624_v12  ;;  %v732_v12 = vsel %vm555_vm2, %v685_v63, 0.0 }
 0x123   : > { %v727_v7 = vadd.f32 %v726_v2, %v725_v4 }
 0x124   : > { %v628_v20 = vadd.f32 %v627_v14, %v626_v16 }
 0x125   : > { %v729_v47 = vadd.f32 %v728_v6, %v727_v7 }
 0x126   : > { %v630_v24 = vadd.f32 %v629_v18, %v628_v20  ;;  %v649_v18 = vsel %vm555_vm2, %v1209_v54, 0.0  ;;  %v699_v54 = vmul.f32 %v1259_v0, %v1259_v0 }
 0x127   : > { %v731_v14 = vadd.f32 %v730_v9, %v729_v47  ;;  %v700_v47 = vmul.f32 %v1249_v62, %v1249_v62 }
 0x128   : > { %v632_v28 = vadd.f32 %v631_v22, %v630_v24  ;;  %v738_v22 = vsel %vm555_vm2, %v688_v34, 0.0  ;;  %v653_v24 = vsel %vm555_vm2, %v1229_v58, 0.0 }
 0x129   : > { %v733_v17 = vadd.f32 %v732_v12, %v731_v14  ;;  %v760_v12 = vsel %vm555_vm2, %v699_v54, 0.0  ;;  %v762_v14 = vsel %vm555_vm2, %v700_v47, 0.0 }
 0x12a   : > { %v634_v32 = vadd.f32 %v633_v26, %v632_v28  ;;  %v742_v28 = vsel %vm555_vm2, %v690_v38, 0.0 }
 0x12b   : > { %v735_v20 = vadd.f32 %v734_v15, %v733_v17 }
 0x12c   : > { %v636_v39 = vadd.f32 %v635_v30, %v634_v32 }
 0x12d   : > { %v737_v23 = vadd.f32 %v736_v51, %v735_v20 }
 0x12e   : > { %v638_v3 = vadd.f32 %v637_v35, %v636_v39  ;;  %v694_v35 = vmul.f32 %v1189_v50, %v1189_v50  ;;  %v695_v39 = vmul.f32 %v1219_v56, %v1219_v56  ;;  %v697_v50 = vmul.f32 %v1239_v60, %v1239_v60  ;;  %v595_v60 = vld [vmem:[%s1455_s3] sm:$0x1] }
 0x12f   : > { %v739_v55 = vadd.f32 %v738_v22, %v737_v23  ;;  %v698_v56 = vmul.f32 %v1229_v58, %v1229_v58 }
 0x130   : > { %v640_v41 = vadd.f32 %v639_v43, %v638_v3  ;;  %v750_v2 = vsel %vm555_vm2, %v694_v35, 0.0  ;;  %v756_v61 = vsel %vm555_vm2, %v697_v50, 0.0 }
 0x131   : > { %v741_v30 = vadd.f32 %v740_v25, %v739_v55  ;;  %v758_v58 = vsel %vm555_vm2, %v698_v56, 0.0 }
 0x132   : > { %v642_v10 = vadd.f32 %v641_v5, %v640_v41  ;;  %v752_v5 = vsel %vm555_vm2, %v695_v39, 0.0  ;;  %v754_v41 = vsel %vm555_vm2, %v696_v52, 0.0 }
 0x133   : > { %v743_v33 = vadd.f32 %v742_v28, %v741_v30 }
 0x134   : > { %v644_v13 = vadd.f32 %v643_v8, %v642_v10 }
 0x135   : > { %v745_v37 = vadd.f32 %v744_v31, %v743_v33 }
 0x136   : > { %v646_v16 = vadd.f32 %v645_v11, %v644_v13 }
 0x137   : > { %v747_v57 = vadd.f32 %v746_v59, %v745_v37 }
 0x138   : > { %v648_v19 = vadd.f32 %v647_v45, %v646_v16 }
 0x139   : > { %v749_v4 = vadd.f32 %v748_v1, %v747_v57 }
 0x13a   : > { %v650_v49 = vadd.f32 %v649_v18, %v648_v19 }
 0x13b   : > { %v751_v6 = vadd.f32 %v750_v2, %v749_v4 }
 0x13c   : > { %v652_v26 = vadd.f32 %v651_v21, %v650_v49 }
 0x13d   : > { %v753_v8 = vadd.f32 %v752_v5, %v751_v6 }
 0x13e   : > { %v654_v29 = vadd.f32 %v653_v24, %v652_v26 }
 0x13f   : > { %v755_v10 = vadd.f32 %v754_v41, %v753_v8 }
 0x140   : > { %v656_v32 = vadd.f32 %v655_v27, %v654_v29 }
 0x141   : > { %v757_v36 = vadd.f32 %v756_v61, %v755_v10 }
 0x142   : > { %v658_v46 = vadd.f32 %v657_v53, %v656_v32 }
 0x143   : > { %v759_v0 = vadd.f32 %v758_v58, %v757_v36 }
 0x144   : > { %v659_v43 = vrot.slane %v658_v46, 4 }
 0x145   : > { %v761_v45 = vadd.f32 %v760_v12, %v759_v0 }
 0x146   : > { %v660_v3 = vadd.f32 %v659_v43, %v658_v46 }
 0x147   : > { %v763_v34 = vadd.f32 %v762_v14, %v761_v45 }
 0x148   : > { %v661_v63 = vrot.slane %v660_v3, 2 }
 0x149   : > { %v764_v15 = vrot.slane %v763_v34, 4 }
 0x14a   : > { %v662_v7 = vadd.f32 %v661_v63, %v660_v3 }
 0x14b   : > { %v765_v62 = vadd.f32 %v764_v15, %v763_v34 }
 0x14c   : > { %v663_v9 = vrot.slane %v662_v7, 1 }
 0x14d   : > { %v766_v16 = vrot.slane %v765_v62, 2 }
 0x14e   : > { %v664_v11 = vadd.f32 %v663_v9, %v662_v7 }
 0x14f   : > { %v767_v17 = vadd.f32 %v766_v16, %v765_v62 }
 0x150   : > { %v665_v13 = vadd.f32 %v664_v11, %v595_v60 }
 0x151   : > { %v768_v18 = vrot.slane %v767_v17, 1 }
 0x152   : > { %667 = vst.msk [vmem:[%s1455_s3] sm:$0x1] %vm666_vm4, %v665_v13 }
 0x153   : > { %v769_v51 = vadd.f32 %v768_v18, %v767_v17 }
 0x155   : > { %v770_v19 = vadd.f32 %v769_v51, %v668_v40 }
 0x157   : > { %771 = vst.msk [vmem:[%s1456_s4] sm:$0x1] %vm666_vm4, %v770_v19 }
 0x158 PF: > { %s15_s15 = sadd.s32 1, %s985_s15  }
 0x159   : > { %p12_p5 = scmp.ge.s32.totalorder %s15_s15, 4  }
 0x15b   :  { %14 = sbr.rel (!%p12_p5) target bundleno = 1 (0x1), region = 78 }

// kernel: _forward.21
= control target key start
LH: loop header
LB: loop body
LE: loop exit
PB: predicated region body
PF: predicated region fallthrough
CT: control target
= control target key end

     0   :  { %s454_s12 = smov 0   ;;  %s645_s0 = inlined_call_operand.vmem [shape: f32[512,8], index: 0, kind: input, shape index: {}]   ;;  %s646_s1 = inlined_call_operand.vmem [shape: f32[1,8], index: 1, kind: input, shape index: {}]   ;;  %s647_s2 = inlined_call_operand.vmem [shape: f32[1,8], index: 2, kind: input, shape index: {}]   ;;  %s648_s3 = inlined_call_operand.vmem [shape: f32[512,8], index: 3, kind: output, shape index: {}]  }
   0x1 LB: > { %s405_s13 = sadd.s32 4294967295, %s432_s12   ;;  %p409_p0 = scmp.ge.s32.totalorder %s432_s12, 1  ;;  %s432_s12 = sphi %s454_s12, %s13_s12  }
   0x2   : > { %p138_p1 = scmp.lt.s32.totalorder %s432_s12, 3 }
   0x4   : > { %p139_p2 = pnand %p409_p0, %p138_p1 }
   0x5   : > { %s410_s14 = sshll.u32 (!%p139_p2), %s405_s13, 5  ;;  %v465_v0 = vld [vmem:[%s646_s1] ss:$0 sm:$0xff] (!%p139_p2)  ;;  %vm316_vm0 = vcmask (!%p139_p2), 64512  }
   0x6   : > { %142 = sbr.rel (%p139_p2) target bundleno = 46 (0x2e), region = 32  ;;  %p163_p3 = scmp.lt.s32.totalorder (!%p139_p2), %s410_s14, 63  ;;  %v475_v1 = vld [vmem:[%s647_s2] ss:$0 sm:$0xff] (!%p139_p2) }
   0xd   : > { %s650_s14 = smov (!%p163_p3, %s410_s14), 63 }
   0xe   : > { %s411_s15 = sshll.u32 %s650_s14, 3 }
   0xf   : > { %s470_s20 = scalar_lea.vmem %s645_s0, %s411_s15  ;;  %s498_s25 = scalar_lea.vmem %s648_s3, %s411_s15 }
  0x10   : > { %v174_v2 = vld [vmem:[%s470_s20] sm:$0xff]  ;;  %v175_v3 = vld [vmem:[%s470_s20 + $0x8] sm:$0xff]  ;;  %v176_v4 = vld [vmem:[%s470_s20 + $0x10] sm:$0xff] }
  0x11   : > { %v213_v5 = vmul.f32 %v465_v0, %v174_v2  ;;  %v214_v6 = vmul.f32 %v465_v0, %v175_v3  ;;  %v215_v7 = vmul.f32 %v465_v0, %v176_v4  ;;  %v177_v8 = vld [vmem:[%s470_s20 + $0x18] sm:$0xff]  ;;  %v178_v9 = vld [vmem:[%s470_s20 + $0x20] sm:$0xff]  ;;  %v179_v10 = vld [vmem:[%s470_s20 + $0x28] sm:$0xff] }
  0x12   : > { %v216_v11 = vmul.f32 %v465_v0, %v177_v8  ;;  %v217_v12 = vmul.f32 %v465_v0, %v178_v9  ;;  %v218_v13 = vmul.f32 %v465_v0, %v179_v10  ;;  %v180_v14 = vld [vmem:[%s470_s20 + $0x30] sm:$0xff]  ;;  %v181_v15 = vld [vmem:[%s470_s20 + $0x38] sm:$0xff]  ;;  %v182_v24 = vld [vmem:[%s470_s20 + $0x40] sm:$0xff] }
  0x13   : > { %v252_v16 = vadd.f32 %v475_v1, %v213_v5  ;;  %v253_v17 = vadd.f32 %v475_v1, %v214_v6  ;;  %v254_v18 = vadd.f32 %v475_v1, %v215_v7  ;;  %v219_v19 = vmul.f32 %v465_v0, %v180_v14  ;;  %v183_v25 = vld [vmem:[%s470_s20 + $0x48] sm:$0xff]  ;;  %v184_v26 = vld [vmem:[%s470_s20 + $0x50] sm:$0xff]  ;;  %v185_v31 = vld [vmem:[%s470_s20 + $0x58] sm:$0xff] }
  0x14   : > { %v255_v20 = vadd.f32 %v475_v1, %v216_v11  ;;  %v256_v21 = vadd.f32 %v475_v1, %v217_v12  ;;  %v257_v22 = vadd.f32 %v475_v1, %v218_v13  ;;  %v220_v23 = vmul.f32 %v465_v0, %v181_v15  ;;  %v186_v32 = vld [vmem:[%s470_s20 + $0x60] sm:$0xff]  ;;  %v187_v33 = vld [vmem:[%s470_s20 + $0x68] sm:$0xff]  ;;  %v188_v38 = vld [vmem:[%s470_s20 + $0x70] sm:$0xff] }
  0x15   : > { %v284_v27 = vmax.f32 %v252_v16, 0.0  ;;  %v285_v28 = vmax.f32 %v253_v17, 0.0  ;;  %v286_v29 = vmax.f32 %v254_v18, 0.0  ;;  %v258_v30 = vadd.f32 %v475_v1, %v219_v19  ;;  %v189_v43 = vld [vmem:[%s470_s20 + $0x78] sm:$0xff]  ;;  %v190_v56 = vld [vmem:[%s470_s20 + $0x80] sm:$0xff]  ;;  %v191_v57 = vld [vmem:[%s470_s20 + $0x88] sm:$0xff] }
  0x16   : > { %v287_v34 = vmax.f32 %v255_v20, 0.0  ;;  %v288_v35 = vmax.f32 %v256_v21, 0.0  ;;  %v289_v36 = vmax.f32 %v257_v22, 0.0  ;;  %v259_v37 = vadd.f32 %v475_v1, %v220_v23  ;;  %v192_v58 = vld [vmem:[%s470_s20 + $0x90] sm:$0xff]  ;;  %v193_v63 = vld [vmem:[%s470_s20 + $0x98] sm:$0xff]  ;;  %v194_v2 = vld [vmem:[%s470_s20 + $0xa0] sm:$0xff] }
  0x17   : > { %317 = vst.msk [vmem:[%s498_s25] sm:$0xff] %vm316_vm0, %v284_v27  ;;  %318 = vst.msk [vmem:[%s498_s25 + $0x8] sm:$0xff] %vm316_vm0, %v285_v28  ;;  %v290_v39 = vmax.f32 %v258_v30, 0.0  ;;  %v221_v40 = vmul.f32 %v465_v0, %v182_v24  ;;  %v222_v41 = vmul.f32 %v465_v0, %v183_v25  ;;  %v223_v42 = vmul.f32 %v465_v0, %v184_v26  ;;  %v195_v3 = vld [vmem:[%s470_s20 + $0xa8] sm:$0xff]  ;;  %v196_v8 = vld [vmem:[%s470_s20 + $0xb0] sm:$0xff] }
  0x18   : > { %319 = vst.msk [vmem:[%s498_s25 + $0x10] sm:$0xff] %vm316_vm0, %v286_v29  ;;  %320 = vst.msk [vmem:[%s498_s25 + $0x18] sm:$0xff] %vm316_vm0, %v287_v34  ;;  %v291_v44 = vmax.f32 %v259_v37, 0.0  ;;  %v224_v45 = vmul.f32 %v465_v0, %v185_v31  ;;  %v225_v46 = vmul.f32 %v465_v0, %v186_v32  ;;  %v226_v47 = vmul.f32 %v465_v0, %v187_v33  ;;  %v197_v13 = vld [vmem:[%s470_s20 + $0xb8] sm:$0xff]  ;;  %v198_v26 = vld [vmem:[%s470_s20 + $0xc0] sm:$0xff] }
  0x19   : > { %321 = vst.msk [vmem:[%s498_s25 + $0x20] sm:$0xff] %vm316_vm0, %v288_v35  ;;  %322 = vst.msk [vmem:[%s498_s25 + $0x28] sm:$0xff] %vm316_vm0, %v289_v36  ;;  %v260_v48 = vadd.f32 %v475_v1, %v221_v40  ;;  %v261_v49 = vadd.f32 %v475_v1, %v222_v41  ;;  %v262_v50 = vadd.f32 %v475_v1, %v223_v42  ;;  %v199_v27 = vld [vmem:[%s470_s20 + $0xc8] sm:$0xff]  ;;  %v200_v28 = vld [vmem:[%s470_s20 + $0xd0] sm:$0xff] }
  0x1a   : > { %323 = vst.msk [vmem:[%s498_s25 + $0x30] sm:$0xff] %vm316_vm0, %v290_v39  ;;  %v227_v51 = vmul.f32 %v465_v0, %v188_v38  ;;  %324 = vst.msk [vmem:[%s498_s25 + $0x38] sm:$0xff] %vm316_vm0, %v291_v44  ;;  %v263_v52 = vadd.f32 %v475_v1, %v224_v45  ;;  %v264_v53 = vadd.f32 %v475_v1, %v225_v46  ;;  %v201_v33 = vld [vmem:[%s470_s20 + $0xd8] sm:$0xff]  ;;  %v202_v34 = vld [vmem:[%s470_s20 + $0xe0] sm:$0xff] }
  0x1b   : > { %v265_v54 = vadd.f32 %v475_v1, %v226_v47  ;;  %v228_v55 = vmul.f32 %v465_v0, %v189_v43  ;;  %v292_v59 = vmax.f32 %v260_v48, 0.0  ;;  %v293_v60 = vmax.f32 %v261_v49, 0.0  ;;  %v203_v35 = vld [vmem:[%s470_s20 + $0xe8] sm:$0xff]  ;;  %v204_v40 = vld [vmem:[%s470_s20 + $0xf0] sm:$0xff]  ;;  %v205_v45 = vld [vmem:[%s470_s20 + $0xf8] sm:$0xff] }
  0x1c   : > { %v294_v61 = vmax.f32 %v262_v50, 0.0  ;;  %v266_v62 = vadd.f32 %v475_v1, %v227_v51  ;;  %v295_v4 = vmax.f32 %v263_v52, 0.0  ;;  %v296_v5 = vmax.f32 %v264_v53, 0.0 }
  0x1d   : > { %v297_v6 = vmax.f32 %v265_v54, 0.0  ;;  %v267_v7 = vadd.f32 %v475_v1, %v228_v55  ;;  %325 = vst.msk [vmem:[%s498_s25 + $0x40] sm:$0xff] %vm316_vm0, %v292_v59  ;;  %326 = vst.msk [vmem:[%s498_s25 + $0x48] sm:$0xff] %vm316_vm0, %v293_v60  ;;  %v229_v10 = vmul.f32 %v465_v0, %v190_v56  ;;  %v230_v11 = vmul.f32 %v465_v0, %v191_v57 }
  0x1e   : > { %327 = vst.msk [vmem:[%s498_s25 + $0x50] sm:$0xff] %vm316_vm0, %v294_v61  ;;  %v298_v9 = vmax.f32 %v266_v62, 0.0  ;;  %v231_v12 = vmul.f32 %v465_v0, %v192_v58  ;;  %328 = vst.msk [vmem:[%s498_s25 + $0x58] sm:$0xff] %vm316_vm0, %v295_v4  ;;  %v232_v15 = vmul.f32 %v465_v0, %v193_v63  ;;  %v233_v16 = vmul.f32 %v465_v0, %v194_v2 }
  0x1f   : > { %329 = vst.msk [vmem:[%s498_s25 + $0x60] sm:$0xff] %vm316_vm0, %v296_v5  ;;  %330 = vst.msk [vmem:[%s498_s25 + $0x68] sm:$0xff] %vm316_vm0, %v297_v6  ;;  %v299_v14 = vmax.f32 %v267_v7, 0.0  ;;  %v234_v17 = vmul.f32 %v465_v0, %v195_v3  ;;  %v268_v18 = vadd.f32 %v475_v1, %v229_v10  ;;  %v269_v19 = vadd.f32 %v475_v1, %v230_v11 }
  0x20   : > { %331 = vst.msk [vmem:[%s498_s25 + $0x70] sm:$0xff] %vm316_vm0, %v298_v9  ;;  %v270_v20 = vadd.f32 %v475_v1, %v231_v12  ;;  %v235_v21 = vmul.f32 %v465_v0, %v196_v8  ;;  %v271_v22 = vadd.f32 %v475_v1, %v232_v15  ;;  %v272_v23 = vadd.f32 %v475_v1, %v233_v16 }
  0x21   : > { %332 = vst.msk [vmem:[%s498_s25 + $0x78] sm:$0xff] %vm316_vm0, %v299_v14  ;;  %v273_v24 = vadd.f32 %v475_v1, %v234_v17  ;;  %v236_v25 = vmul.f32 %v465_v0, %v197_v13  ;;  %v300_v29 = vmax.f32 %v268_v18, 0.0  ;;  %v301_v30 = vmax.f32 %v269_v19, 0.0 }
  0x22   : > { %v302_v31 = vmax.f32 %v270_v20, 0.0  ;;  %v274_v32 = vadd.f32 %v475_v1, %v235_v21  ;;  %v303_v36 = vmax.f32 %v271_v22, 0.0  ;;  %v304_v37 = vmax.f32 %v272_v23, 0.0 }
  0x23   : > { %v305_v38 = vmax.f32 %v273_v24, 0.0  ;;  %v275_v39 = vadd.f32 %v475_v1, %v236_v25  ;;  %333 = vst.msk [vmem:[%s498_s25 + $0x80] sm:$0xff] %vm316_vm0, %v300_v29  ;;  %334 = vst.msk [vmem:[%s498_s25 + $0x88] sm:$0xff] %vm316_vm0, %v301_v30  ;;  %v237_v42 = vmul.f32 %v465_v0, %v198_v26  ;;  %v238_v43 = vmul.f32 %v465_v0, %v199_v27 }
  0x24   : > { %335 = vst.msk [vmem:[%s498_s25 + $0x90] sm:$0xff] %vm316_vm0, %v302_v31  ;;  %v306_v41 = vmax.f32 %v274_v32, 0.0  ;;  %v239_v44 = vmul.f32 %v465_v0, %v200_v28  ;;  %336 = vst.msk [vmem:[%s498_s25 + $0x98] sm:$0xff] %vm316_vm0, %v303_v36  ;;  %v240_v47 = vmul.f32 %v465_v0, %v201_v33  ;;  %v241_v48 = vmul.f32 %v465_v0, %v202_v34 }
  0x25   : > { %337 = vst.msk [vmem:[%s498_s25 + $0xa0] sm:$0xff] %vm316_vm0, %v304_v37  ;;  %338 = vst.msk [vmem:[%s498_s25 + $0xa8] sm:$0xff] %vm316_vm0, %v305_v38  ;;  %v307_v46 = vmax.f32 %v275_v39, 0.0  ;;  %v242_v49 = vmul.f32 %v465_v0, %v203_v35  ;;  %v276_v50 = vadd.f32 %v475_v1, %v237_v42  ;;  %v277_v51 = vadd.f32 %v475_v1, %v238_v43 }
  0x26   : > { %339 = vst.msk [vmem:[%s498_s25 + $0xb0] sm:$0xff] %vm316_vm0, %v306_v41  ;;  %v278_v52 = vadd.f32 %v475_v1, %v239_v44  ;;  %v243_v53 = vmul.f32 %v465_v0, %v204_v40  ;;  %v279_v54 = vadd.f32 %v475_v1, %v240_v47  ;;  %v280_v55 = vadd.f32 %v475_v1, %v241_v48 }
  0x27   : > { %340 = vst.msk [vmem:[%s498_s25 + $0xb8] sm:$0xff] %vm316_vm0, %v307_v46  ;;  %v281_v56 = vadd.f32 %v475_v1, %v242_v49  ;;  %v244_v57 = vmul.f32 %v465_v0, %v205_v45  ;;  %v308_v58 = vmax.f32 %v276_v50, 0.0  ;;  %v309_v59 = vmax.f32 %v277_v51, 0.0 }
  0x28   : > { %v310_v60 = vmax.f32 %v278_v52, 0.0  ;;  %v282_v61 = vadd.f32 %v475_v1, %v243_v53  ;;  %v311_v62 = vmax.f32 %v279_v54, 0.0  ;;  %v312_v63 = vmax.f32 %v280_v55, 0.0 }
  0x29   : > { %v313_v2 = vmax.f32 %v281_v56, 0.0  ;;  %v283_v3 = vadd.f32 %v475_v1, %v244_v57  ;;  %341 = vst.msk [vmem:[%s498_s25 + $0xc0] sm:$0xff] %vm316_vm0, %v308_v58  ;;  %342 = vst.msk [vmem:[%s498_s25 + $0xc8] sm:$0xff] %vm316_vm0, %v309_v59 }
  0x2a   : > { %343 = vst.msk [vmem:[%s498_s25 + $0xd0] sm:$0xff] %vm316_vm0, %v310_v60  ;;  %v314_v4 = vmax.f32 %v282_v61, 0.0  ;;  %344 = vst.msk [vmem:[%s498_s25 + $0xd8] sm:$0xff] %vm316_vm0, %v311_v62 }
  0x2b   : > { %345 = vst.msk [vmem:[%s498_s25 + $0xe0] sm:$0xff] %vm316_vm0, %v312_v63  ;;  %346 = vst.msk [vmem:[%s498_s25 + $0xe8] sm:$0xff] %vm316_vm0, %v313_v2  ;;  %v315_v0 = vmax.f32 %v283_v3, 0.0 }
  0x2c   : > { %347 = vst.msk [vmem:[%s498_s25 + $0xf0] sm:$0xff] %vm316_vm0, %v314_v4 }
  0x2d   : > { %348 = vst.msk [vmem:[%s498_s25 + $0xf8] sm:$0xff] %vm316_vm0, %v315_v0 }
  0x2e PF: > { %s13_s12 = sadd.s32 1, %s432_s12  }
  0x2f   : > { %p10_p4 = scmp.ge.s32.totalorder %s13_s12, 4  }
  0x31   :  { %12 = sbr.rel (!%p10_p4) target bundleno = 1 (0x1), region = 62 }

// kernel: _forward.13
= control target key start
LH: loop header
LB: loop body
LE: loop exit
PB: predicated region body
PF: predicated region fallthrough
CT: control target
= control target key end

     0   :  { %s4606_s15 = smov 0   ;;  %s6059_s0 = inlined_call_operand.vmem [shape: f32[2,18,18,8], index: 0, kind: input, shape index: {}]   ;;  %s6060_s1 = inlined_call_operand.vmem [shape: f32[9,8,8], index: 1, kind: input, shape index: {}]   ;;  %s6061_s2 = inlined_call_operand.vmem [shape: f32[2,256,8], index: 2, kind: output, shape index: {0}]   ;;  %s6062_s3 = inlined_call_operand.vmem [shape: f32[1,8], index: 3, kind: output, shape index: {1}]   ;;  %s6063_s4 = inlined_call_operand.vmem [shape: f32[1,8], index: 4, kind: output, shape index: {2}]  }
   0x1 LB: > { %s4612_s16 = sadd.s32 4294967295, %s4578_s15   ;;  %p3253_p0 = scmp.ge.s32.totalorder %s4578_s15, 1  ;;  %s4578_s15 = sphi %s4606_s15, %s15_s15  }
   0x2   : > { %p157_p1 = scmp.lt.s32.totalorder %s4578_s15, 3 }
   0x4   : > { %p158_p2 = pnand %p3253_p0, %p157_p1 }
   0x6   : > { %161 = sbr.rel (%p158_p2) target bundleno = 609 (0x261), region = 28 }
   0xd   : > { %v3257_v0 = vld [vmem:[%s6060_s1 + $0x8] sm:$0xff]  ;;  %v4622_v1 = vld [vmem:[%s6060_s1 + $0x20] sm:$0xff]  ;;  %p183_p3 = scmp.lt.s32.totalorder %s4612_s16, 1  ;;  %vm296_vm0 = vcmask 1046528   ;;  %vm379_vm1 = vcmask 64512   ;;  %v4705_v33 = vld [vmem:[%s6060_s1 + $0x30] sm:$0xff] }
   0xe   : > { %v247_v2 = vld [vmem:[%s6060_s1] sm:$0xff]  ;;  %3854 = vmatprep.subr.mxu1 %v3257_v0  ;;  %4054 = vmatprep.subr.mxu0 %v4622_v1  ;;  %v3421_v3 = vld [vmem:[%s6060_s1 + $0x28] sm:$0xff]  ;;  %v4714_v35 = vld [vmem:[%s6060_s1 + $0x10] sm:$0xff]  ;;  %vm958_vm2 = vcmask 1045504   ;;  %p3553_p4 = scmp.ne.s32.totalorder %s4612_s16, 0 }
   0xf   : > { %3855 = vmatpush3.msra.mxu1 %v3257_v0  ;;  %4055 = vmatpush3.msra.mxu0 %v4622_v1  ;;  %s4634_s25 = scalar_select %p183_p3, %s4612_s16, 1 }
  0x10   : > { %3904 = vmatprep.subr.mxu1 %v247_v2  ;;  %4104 = vmatprep.subr.mxu0 %v3421_v3  ;;  %vm3002_vm3 = vcmask (!%p3553_p4), 57344  }
  0x11   : > { %s4562_s26 = smul.u32 432, %s4634_s25  ;;  %s3556_s14 = sshll.u32 %s4634_s25, 8 }
  0x12   : > { %s5713_s19 = scalar_lea.vmem %s6061_s2, %s3556_s14 }
  0x13   : > { %s4640_s29 = scalar_lea.vmem %s6059_s0, %s4562_s26 }
  0x14   : > { %v4643_v4 = vld [vmem:[%s4640_s29] sm:$0xff]  ;;  %v4646_v5 = vld [vmem:[%s4640_s29 + $0x8] sm:$0xff]  ;;  %v4649_v6 = vld [vmem:[%s4640_s29 + $0x18] sm:$0xff] }
  0x15   : > { %6137 = vst [vmem:[#allocation2_spill] sm:$0xff] %v4649_v6  ;;  %v297_v7 = vrot.slane %v4643_v4, 1  ;;  %v298_v8 = vrot.slane %v4646_v5, 1  ;;  %v4654_v9 = vld [vmem:[%s4640_s29 + $0x20] sm:$0xff]  ;;  %v302_v10 = vrot.slane %v4649_v6, 1  ;;  %v4666_v15 = vld [vmem:[%s4640_s29 + $0x30] sm:$0xff] }
  0x16   : > { %6138 = vst [vmem:[#allocation3_spill] sm:$0xff] %v4654_v9  ;;  %v4658_v11 = vld [vmem:[%s4640_s29 + $0x10] sm:$0x3]  ;;  %v303_v12 = vrot.slane %v4654_v9, 1  ;;  %v4663_v14 = vld [vmem:[%s4640_s29 + $0x28] sm:$0x3] }
  0x17   : > { %v300_v13 = vrot.slane %v4658_v11, 1  ;;  %v299_v16 = vsel %vm296_vm0, %v297_v7, %v298_v8  ;;  %v305_v17 = vrot.slane %v4663_v14, 1  ;;  %v4671_v18 = vld [vmem:[%s4640_s29 + $0x38] sm:$0xff]  ;;  %v307_v19 = vrot.slane %v4666_v15, 1  ;;  %v4675_v20 = vld [vmem:[%s4640_s29 + $0x40] sm:$0x3] }
  0x18   : > { %3856 = vmatprep.mubr.msk.f32.mxu1 %vm379_vm1, %v299_v16  ;;  %v304_v21 = vsel %vm296_vm0, %v302_v10, %v303_v12  ;;  %v308_v23 = vrot.slane %v4671_v18, 1  ;;  %v310_v24 = vrot.slane %v4675_v20, 1  ;;  %v4683_v25 = vld [vmem:[%s4640_s29 + $0x48] sm:$0xff]  ;;  %v4686_v26 = vld [vmem:[%s4640_s29 + $0x50] sm:$0xff]  ;;  %v4689_v27 = vld [vmem:[%s4640_s29 + $0x58] sm:$0x3] }
  0x19   : > { %v301_v22 = vsel %vm296_vm0, %v298_v8, %v300_v13  ;;  %4056 = vmatprep.mubr.msk.f32.mxu0 %vm379_vm1, %v304_v21  ;;  %v306_v28 = vsel %vm296_vm0, %v303_v12, %v305_v17  ;;  %v312_v29 = vrot.slane %v4683_v25, 1  ;;  %v313_v30 = vrot.slane %v4686_v26, 1  ;;  %v4697_v31 = vld [vmem:[%s4640_s29 + $0x60] sm:$0xff]  ;;  %v4700_v32 = vld [vmem:[%s4640_s29 + $0x68] sm:$0xff]  ;;  %v4729_v41 = vld [vmem:[%s4640_s29 + $0x70] sm:$0x3] }
  0x1a   : > { %3857 = vmatmul.mubr.msk.f32.vlgmr.msra.gmra.mrb[0].mxu1 %vm379_vm1, %v301_v22  ;;  %4057 = vmatmul.mubr.msk.f32.vlgmr.msra.gmra.mrb[0].mxu0 %vm379_vm1, %v306_v28  ;;  %v4709_v34 = vsel %vm296_vm0, %v307_v19, %v308_v23  ;;  %v4718_v36 = vsel %vm296_vm0, %v308_v23, %v310_v24  ;;  %v315_v37 = vrot.slane %v4689_v27, 1  ;;  %v317_v39 = vrot.slane %v4697_v31, 1  ;;  %v4734_v42 = vld [vmem:[%s4640_s29 + $0x78] sm:$0xff]  ;;  %v4737_v43 = vld [vmem:[%s4640_s29 + $0x80] sm:$0xff]  ;;  %v4756_v49 = vld [vmem:[%s4640_s29 + $0x88] sm:$0x3] }
  0x1b   : > { %3905 = vmatpush3.msra.mxu1 %v247_v2  ;;  %6139 = vst [vmem:[#allocation4_spill] sm:$0xff] %v4709_v34  ;;  %4105 = vmatpush3.msra.mxu0 %v3421_v3  ;;  %6140 = vst [vmem:[#allocation5_spill] sm:$0xff] %v4718_v36  ;;  %v4724_v38 = vsel %vm296_vm0, %v312_v29, %v313_v30  ;;  %v318_v40 = vrot.slane %v4700_v32, 1  ;;  %v320_v45 = vrot.slane %v4729_v41, 1  ;;  %v322_v47 = vrot.slane %v4734_v42, 1  ;;  %v4761_v50 = vld [vmem:[%s4640_s29 + $0x90] sm:$0xff] }
  0x1c   : > { %3859 = vmatprep.mubr.msk.f32.mxu1 %vm379_vm1, %v304_v21  ;;  %4059 = vmatprep.mubr.msk.f32.mxu0 %vm379_vm1, %v4709_v34  ;;  %6141 = vst [vmem:[#allocation6_spill] sm:$0xff] %v4724_v38  ;;  %v4747_v44 = vsel %vm296_vm0, %v313_v30, %v315_v37  ;;  %v323_v48 = vrot.slane %v4737_v43, 1  ;;  %v4764_v51 = vld [vmem:[%s4640_s29 + $0x98] sm:$0xff]  ;;  %v325_v53 = vrot.slane %v4756_v49, 1  ;;  %v327_v55 = vrot.slane %v4761_v50, 1  ;;  %v4787_v58 = vld [vmem:[%s4640_s29 + $0xa8] sm:$0xff] }
  0x1d   : > { %4154 = vmatprep.subr.mxu0 %v4705_v33  ;;  %3954 = vmatprep.subr.mxu1 %v4714_v35  ;;  %6142 = vst [vmem:[#allocation7_spill] sm:$0xff] %v4747_v44  ;;  %v4751_v46 = vsel %vm296_vm0, %v317_v39, %v318_v40  ;;  %v4773_v52 = vsel %vm296_vm0, %v318_v40, %v320_v45  ;;  %v328_v56 = vrot.slane %v4764_v51, 1  ;;  %v4782_v57 = vld [vmem:[%s4640_s29 + $0xa0] sm:$0x3]  ;;  %v4790_v59 = vld [vmem:[%s4640_s29 + $0xb0] sm:$0xff]  ;;  %v332_v63 = vrot.slane %v4787_v58, 1 }
  0x1e   : > { %3860 = vmatmul.mubr.msk.f32.gmra.mrb[2].mxu1 %vm379_vm1, %v306_v28  ;;  %4060 = vmatmul.mubr.msk.f32.gmra.mrb[2].mxu0 %vm379_vm1, %v4718_v36  ;;  %6143 = vst [vmem:[#allocation8_spill] sm:$0xff] %v4751_v46  ;;  %6144 = vst [vmem:[#allocation9_spill] sm:$0xff] %v4773_v52  ;;  %v4777_v54 = vsel %vm296_vm0, %v322_v47, %v323_v48  ;;  %v4799_v60 = vsel %vm296_vm0, %v323_v48, %v325_v53  ;;  %v330_v61 = vrot.slane %v4782_v57, 1  ;;  %v4808_v2 = vld [vmem:[%s4640_s29 + $0xb8] sm:$0x3]  ;;  %v4813_v3 = vld [vmem:[%s4640_s29 + $0xc0] sm:$0xff] }
  0x1f   : > { %3862 = vmatprep.mubr.msk.f32.mxu1 %vm379_vm1, %v4709_v34  ;;  %4062 = vmatprep.mubr.msk.f32.mxu0 %vm379_vm1, %v4724_v38  ;;  %6145 = vst [vmem:[#allocation10_spill] sm:$0xff] %v4777_v54  ;;  %6146 = vst [vmem:[#allocation11_spill] sm:$0xff] %v4799_v60  ;;  %v4803_v62 = vsel %vm296_vm0, %v327_v55, %v328_v56  ;;  %v333_v0 = vrot.slane %v4790_v59, 1  ;;  %v4816_v7 = vld [vmem:[%s4640_s29 + $0xc8] sm:$0xff]  ;;  %v335_v10 = vrot.slane %v4808_v2, 1  ;;  %v337_v13 = vrot.slane %v4813_v3, 1 }
  0x20   : > { %6147 = vst [vmem:[#allocation12_spill] sm:$0xff] %v4803_v62  ;;  %v4825_v8 = vsel %vm296_vm0, %v328_v56, %v330_v61  ;;  %v338_v16 = vrot.slane %v4816_v7, 1  ;;  %v4834_v17 = vld [vmem:[%s4640_s29 + $0xd0] sm:$0x3]  ;;  %v964_v23 = vrot.slane %v4649_v6, 2  ;;  %v965_v24 = vrot.slane %v4654_v9, 2 }
  0x21   : > { %6148 = vst [vmem:[#allocation13_spill] sm:$0xff] %v4825_v8  ;;  %v4829_v12 = vsel %vm296_vm0, %v332_v63, %v333_v0  ;;  %v4845_v19 = vsel %vm296_vm0, %v333_v0, %v335_v10  ;;  %v340_v21 = vrot.slane %v4834_v17, 1  ;;  %v4854_v28 = vld [vmem:[%s4640_s29 + $0xd8] sm:$0xff]  ;;  %v4857_v29 = vld [vmem:[%s4640_s29 + $0xe0] sm:$0xff]  ;;  %v967_v30 = vrot.slane %v4663_v14, 2  ;;  %v4882_v53 = vld [vmem:[%s4640_s29 + $0xf0] sm:$0xff] }
  0x22   : > { %3863 = vmatmul.mubr.msk.f32.gmra.mrb[4].mxu1 %vm379_vm1, %v4718_v36  ;;  %4063 = vmatmul.mubr.msk.f32.gmra.mrb[4].mxu0 %vm379_vm1, %v4747_v44  ;;  %6149 = vst [vmem:[#allocation14_spill] sm:$0xff] %v4829_v12  ;;  %6150 = vst [vmem:[#allocation15_spill] sm:$0xff] %v4845_v19  ;;  %v4849_v22 = vsel %vm296_vm0, %v337_v13, %v338_v16  ;;  %v342_v39 = vrot.slane %v4854_v28, 1  ;;  %v343_v40 = vrot.slane %v4857_v29, 1  ;;  %v4874_v45 = vld [vmem:[%s4640_s29 + $0xe8] sm:$0x3] }
  0x23   : > { %3865 = vmatprep.mubr.msk.f32.mxu1 %vm379_vm1, %v4724_v38  ;;  %4065 = vmatprep.mubr.msk.f32.mxu0 %vm379_vm1, %v4751_v46  ;;  %6151 = vst [vmem:[#allocation16_spill] sm:$0xff] %v4849_v22  ;;  %v4869_v37 = vsel %vm296_vm0, %v338_v16, %v340_v21  ;;  %v4877_v47 = vsel %vm958_vm2, %v964_v23, %v965_v24  ;;  %v969_v48 = vrot.slane %v4666_v15, 2  ;;  %v970_v14 = vrot.slane %v4671_v18, 2  ;;  %v4885_v55 = vld [vmem:[%s4640_s29 + $0xf8] sm:$0xff]  ;;  %v4906_v16 = vld [vmem:[%s4640_s29 + $0x100] sm:$0x3] }
  0x24   : > { %6152 = vst [vmem:[#allocation17_spill] sm:$0xff] %v4869_v37  ;;  %v345_v56 = vrot.slane %v4874_v45, 1  ;;  %v972_v61 = vrot.slane %v4675_v20, 2  ;;  %v4898_v63 = vsel %vm958_vm2, %v965_v24, %v967_v30  ;;  %v4901_v0 = vsel %vm296_vm0, %v342_v39, %v343_v40  ;;  %v4917_v24 = vld [vmem:[%s4640_s29 + $0x110] sm:$0xff]  ;;  %v4924_v30 = vld [vmem:[%s6060_s1 + $0x38] sm:$0xff] }
  0x25   : > { %6153 = vst [vmem:[#allocation18_spill] sm:$0xff] %v4901_v0  ;;  %v347_v10 = vrot.slane %v4882_v53, 1  ;;  %v348_v13 = vrot.slane %v4885_v55, 1  ;;  %v4909_v21 = vsel %vm958_vm2, %v969_v48, %v970_v14  ;;  %v974_v20 = vrot.slane %v4683_v25, 2  ;;  %v5018_v36 = vld [vmem:[%s4640_s29 + $0x148] sm:$0x3] }
  0x26   : > { %3866 = vmatmul.mubr.msk.f32.gmra.mrb[6].mxu1 %vm379_vm1, %v4747_v44  ;;  %4066 = vmatmul.mubr.msk.f32.gmra.mrb[6].mxu0 %vm379_vm1, %v4773_v52  ;;  %v975_v23 = vrot.slane %v4686_v26, 2  ;;  %v4931_v39 = vsel %vm296_vm0, %v343_v40, %v345_v56  ;;  %v4934_v48 = vsel %vm958_vm2, %v970_v14, %v972_v61  ;;  %v353_v40 = vrot.slane %v4917_v24, 1  ;;  %v4947_v56 = vld [vmem:[%s4640_s29 + $0x118] sm:$0x3] }
  0x27   : > { %3868 = vmatprep.mubr.msk.f32.mxu1 %vm379_vm1, %v4751_v46  ;;  %4068 = vmatprep.mubr.msk.f32.mxu0 %vm379_vm1, %v4777_v54  ;;  %6154 = vst [vmem:[#allocation19_spill] sm:$0xff] %v4931_v39  ;;  %6155 = vst [vmem:[#allocation20_spill] sm:$0xff] %v4934_v48  ;;  %v979_v61 = vrot.slane %v4697_v31, 2  ;;  %v4991_v46 = vld [vmem:[%s4640_s29 + $0x138] sm:$0xff]  ;;  %v987_v44 = vrot.slane %v4756_v49, 2  ;;  %v992_v34 = vrot.slane %v4782_v57, 2 }
  0x28   : > { %v4950_v14 = vsel %vm958_vm2, %v974_v20, %v975_v23  ;;  %v355_v20 = vrot.slane %v4947_v56, 1  ;;  %v362_v38 = vrot.slane %v4991_v46, 1  ;;  %v994_v57 = vrot.slane %v4787_v58, 2 }
  0x29   : > { %6157 = vst [vmem:[#allocation22_spill] sm:$0xff] %v4950_v14 }
  0x2a   : > { %3869 = vmatmul.mubr.msk.f32.gmra.mrb[8].mxu1 %vm379_vm1, %v4773_v52  ;;  %4069 = vmatmul.mubr.msk.f32.gmra.mrb[8].mxu0 %vm379_vm1, %v4799_v60  ;;  %v4983_v52 = vld [vmem:[%s4640_s29 + $0x130] sm:$0x3] }
  0x2b   : > { %3871 = vmatprep.mubr.msk.f32.mxu1 %vm379_vm1, %v4777_v54  ;;  %4071 = vmatprep.mubr.msk.f32.mxu0 %vm379_vm1, %v4803_v62 }
  0x2e   : > { %3872 = vmatmul.mubr.msk.f32.gmra.mrb[10].mxu1 %vm379_vm1, %v4799_v60  ;;  %4072 = vmatmul.mubr.msk.f32.gmra.mrb[10].mxu0 %vm379_vm1, %v4825_v8 }
  0x2f   : > { %3874 = vmatprep.mubr.msk.f32.mxu1 %vm379_vm1, %v4803_v62  ;;  %4074 = vmatprep.mubr.msk.f32.mxu0 %vm379_vm1, %v4829_v12  ;;  %v982_v62 = vrot.slane %v4729_v41, 2  ;;  %v984_v41 = vrot.slane %v4734_v42, 2 }
  0x32   : > { %3875 = vmatmul.mubr.msk.f32.gmra.mrb[12].mxu1 %vm379_vm1, %v4825_v8  ;;  %4075 = vmatmul.mubr.msk.f32.gmra.mrb[12].mxu0 %vm379_vm1, %v4845_v19  ;;  %v4955_v8 = vld [vmem:[%s4640_s29 + $0x120] sm:$0xff] }
  0x33   : > { %3877 = vmatprep.mubr.msk.f32.mxu1 %vm379_vm1, %v4829_v12  ;;  %4077 = vmatprep.mubr.msk.f32.mxu0 %vm379_vm1, %v4849_v22  ;;  %v977_v12 = vrot.slane %v4689_v27, 2  ;;  %v357_v54 = vrot.slane %v4955_v8, 1 }
  0x35   : > { %v4975_v60 = vsel %vm958_vm2, %v975_v23, %v977_v12  ;;  %v4994_v12 = vld [vmem:[%s4640_s29 + $0x140] sm:$0xff] }
  0x36   : > { %3878 = vmatmul.mubr.msk.f32.gmra.mrb[14].mxu1 %vm379_vm1, %v4845_v19  ;;  %4078 = vmatmul.mubr.msk.f32.gmra.mrb[14].mxu0 %vm379_vm1, %v4869_v37  ;;  %v4941_v19 = vsel %vm296_vm0, %v347_v10, %v348_v13  ;;  %v4958_v10 = vld [vmem:[%s4640_s29 + $0x128] sm:$0xff]  ;;  %6159 = vst [vmem:[#allocation24_spill] sm:$0xff] %v4975_v60 }
  0x37   : > { %3880 = vmatprep.mubr.msk.f32.mxu1 %vm379_vm1, %v4849_v22  ;;  %4106 = vmatprep.mubr.msk.f32.mxu0 %vm379_vm1, %v4877_v47  ;;  %v4914_v22 = vld [vmem:[%s4640_s29 + $0x108] sm:$0xff]  ;;  %6156 = vst [vmem:[#allocation21_spill] sm:$0xff] %v4941_v19 }
  0x3a   : > { %3881 = vmatmul.mubr.msk.f32.gmra.mrb[16].mxu1 %vm379_vm1, %v4869_v37  ;;  %4107 = vmatmul.mubr.msk.f32.vlgmr.msra.gmra.mrb[0].mxu0 %vm379_vm1, %v4898_v63  ;;  %v350_v37 = vrot.slane %v4906_v16, 1 }
  0x3b   : > { %3883 = vmatprep.mubr.msk.f32.mxu1 %vm379_vm1, %v4901_v0  ;;  %4155 = vmatpush3.msra.mxu0 %v4705_v33  ;;  %v352_v0 = vrot.slane %v4914_v22, 1  ;;  %v980_v33 = vrot.slane %v4700_v32, 2 }
  0x3c   : > { %4109 = vmatprep.mubr.msk.f32.mxu0 %vm379_vm1, %v4909_v21  ;;  %4204 = vmatprep.subr.mxu0 %v4924_v30  ;;  %v4968_v27 = vsel %vm296_vm0, %v348_v13, %v350_v37  ;;  %v985_v13 = vrot.slane %v4737_v43, 2 }
  0x3d   : > { %6158 = vst [vmem:[#allocation23_spill] sm:$0xff] %v4968_v27  ;;  %v4986_v37 = vsel %vm958_vm2, %v979_v61, %v980_v33  ;;  %v5006_v23 = vsel %vm958_vm2, %v980_v33, %v982_v62  ;;  %v360_v61 = vrot.slane %v4983_v52, 1  ;;  %v989_v62 = vrot.slane %v4761_v50, 2 }
  0x3e   : > { %3884 = vmatmul.mubr.msk.f32.gmra.mrb[18].mxu1 %vm379_vm1, %v4931_v39  ;;  %4110 = vmatmul.mubr.msk.f32.gmra.mrb[2].mxu0 %vm379_vm1, %v4934_v48  ;;  %v4978_v39 = vsel %vm296_vm0, %v352_v0, %v353_v40  ;;  %6161 = vst [vmem:[#allocation26_spill] sm:$0xff] %v4986_v37  ;;  %v5003_v0 = vsel %vm296_vm0, %v353_v40, %v355_v20  ;;  %6163 = vst [vmem:[#allocation28_spill] sm:$0xff] %v5006_v23  ;;  %v990_v33 = vrot.slane %v4764_v51, 2  ;;  %v5026_v20 = vld [vmem:[%s4640_s29 + $0x150] sm:$0xff]  ;;  %v5088_v48 = vld [vmem:[%s4640_s29 + $0x178] sm:$0x3] }
  0x3f   : > { %3886 = vmatprep.mubr.msk.f32.mxu1 %vm379_vm1, %v4941_v19  ;;  %4112 = vmatprep.mubr.msk.f32.mxu0 %vm379_vm1, %v4950_v14  ;;  %6160 = vst [vmem:[#allocation25_spill] sm:$0xff] %v4978_v39  ;;  %v358_v19 = vrot.slane %v4958_v10, 1  ;;  %6162 = vst [vmem:[#allocation27_spill] sm:$0xff] %v5003_v0  ;;  %v5021_v40 = vsel %vm958_vm2, %v984_v41, %v985_v13  ;;  %v365_v41 = vrot.slane %v5018_v36, 1 }
  0x40   : > { %6165 = vst [vmem:[#allocation30_spill] sm:$0xff] %v5021_v40 }
  0x41   : > { %v5038_v49 = vsel %vm296_vm0, %v358_v19, %v360_v61  ;;  %v995_v61 = vrot.slane %v4790_v59, 2 }
  0x42   : > { %3887 = vmatmul.mubr.msk.f32.gmra.mrb[20].mxu1 %vm379_vm1, %v4968_v27  ;;  %4113 = vmatmul.mubr.msk.f32.gmra.mrb[4].mxu0 %vm379_vm1, %v4975_v60  ;;  %v5012_v27 = vsel %vm296_vm0, %v357_v54, %v358_v19  ;;  %v5029_v54 = vld [vmem:[%s4640_s29 + $0x158] sm:$0xff]  ;;  %6166 = vst [vmem:[#allocation31_spill] sm:$0xff] %v5038_v49  ;;  %v5053_v60 = vld [vmem:[%s4640_s29 + $0x160] sm:$0x3]  ;;  %v5056_v19 = vsel %vm958_vm2, %v989_v62, %v990_v33 }
  0x43   : > { %3889 = vmatprep.mubr.msk.f32.mxu1 %vm379_vm1, %v4978_v39  ;;  %4115 = vmatprep.mubr.msk.f32.mxu0 %vm379_vm1, %v4986_v37  ;;  %6164 = vst [vmem:[#allocation29_spill] sm:$0xff] %v5012_v27  ;;  %v363_v39 = vrot.slane %v4994_v12, 1  ;;  %v5045_v37 = vsel %vm958_vm2, %v985_v13, %v987_v44  ;;  %v5064_v44 = vld [vmem:[%s4640_s29 + $0x170] sm:$0xff]  ;;  %v5076_v13 = vsel %vm958_vm2, %v990_v33, %v992_v34  ;;  %v370_v62 = vrot.slane %v5053_v60, 1 }
  0x44   : > { %6167 = vst [vmem:[#allocation32_spill] sm:$0xff] %v5045_v37  ;;  %6169 = vst [vmem:[#allocation34_spill] sm:$0xff] %v5064_v44  ;;  %v999_v34 = vrot.slane %v4813_v3, 2  ;;  %v1000_v33 = vrot.slane %v4816_v7, 2 }
  0x45   : > { %6171 = vst [vmem:[#allocation36_spill] sm:$0xff] %v5076_v13 }
  0x46   : > { %3890 = vmatmul.mubr.msk.f32.gmra.mrb[22].mxu1 %vm379_vm1, %v5003_v0  ;;  %4116 = vmatmul.mubr.msk.f32.gmra.mrb[6].mxu0 %vm379_vm1, %v5006_v23  ;;  %v5048_v0 = vsel %vm296_vm0, %v362_v38, %v363_v39  ;;  %v367_v23 = vrot.slane %v5026_v20, 1  ;;  %v5073_v38 = vsel %vm296_vm0, %v363_v39, %v365_v41  ;;  %v5091_v39 = vsel %vm958_vm2, %v994_v57, %v995_v61 }
  0x47   : > { %3892 = vmatprep.mubr.msk.f32.mxu1 %vm379_vm1, %v5012_v27  ;;  %4118 = vmatprep.mubr.msk.f32.mxu0 %vm379_vm1, %v5021_v40  ;;  %6168 = vst [vmem:[#allocation33_spill] sm:$0xff] %v5048_v0  ;;  %v368_v27 = vrot.slane %v5029_v54, 1  ;;  %v5061_v40 = vld [vmem:[%s4640_s29 + $0x168] sm:$0xff]  ;;  %6170 = vst [vmem:[#allocation35_spill] sm:$0xff] %v5073_v38 }
  0x49   : > { %v5082_v14 = vsel %vm296_vm0, %v367_v23, %v368_v27  ;;  %v375_v23 = vrot.slane %v5088_v48, 1 }
  0x4a   : > { %3893 = vmatmul.mubr.msk.f32.gmra.mrb[24].mxu1 %vm379_vm1, %v5038_v49  ;;  %4119 = vmatmul.mubr.msk.f32.gmra.mrb[8].mxu0 %vm379_vm1, %v5045_v37  ;;  %6172 = vst [vmem:[#allocation37_spill] sm:$0xff] %v5082_v14  ;;  %v997_v49 = vrot.slane %v4808_v2, 2  ;;  %v372_v37 = vrot.slane %v5061_v40, 1  ;;  %v5102_v2 = vsel %vm296_vm0, %v368_v27, %v370_v62  ;;  %v1005_v27 = vrot.slane %v4857_v29, 2 }
  0x4b   : > { %3895 = vmatprep.mubr.msk.f32.mxu1 %vm379_vm1, %v5048_v0  ;;  %4121 = vmatprep.mubr.msk.f32.mxu0 %vm379_vm1, %v5056_v19  ;;  %v373_v0 = vrot.slane %v5064_v44, 1  ;;  %6173 = vst [vmem:[#allocation38_spill] sm:$0xff] %v5102_v2  ;;  %v1009_v62 = vrot.slane %v4882_v53, 2 }
  0x4c   : > { %v5108_v41 = vsel %vm958_vm2, %v995_v61, %v997_v49  ;;  %v1007_v49 = vrot.slane %v4874_v45, 2 }
  0x4d   : > { %v5111_v57 = vsel %vm296_vm0, %v372_v37, %v373_v0  ;;  %v5126_v37 = vsel %vm296_vm0, %v373_v0, %v375_v23  ;;  %v5161_v23 = vld [vmem:[%s6060_s1 + $0x18] sm:$0xff] }
  0x4e   : > { %3896 = vmatmul.mubr.msk.f32.gmra.mrb[26].mxu1 %vm379_vm1, %v5073_v38  ;;  %4122 = vmatmul.mubr.msk.f32.gmra.mrb[10].mxu0 %vm379_vm1, %v5076_v13  ;;  %6174 = vst [vmem:[#allocation39_spill] sm:$0xff] %v5111_v57  ;;  %v1002_v38 = vrot.slane %v4834_v17, 2  ;;  %v5115_v13 = vsel %vm958_vm2, %v999_v34, %v1000_v33  ;;  %6175 = vst [vmem:[#allocation40_spill] sm:$0xff] %v5126_v37  ;;  %v1010_v34 = vrot.slane %v4885_v55, 2 }
  0x4f   : > { %3898 = vmatprep.mubr.msk.f32.mxu1 %vm379_vm1, %v5082_v14  ;;  %4124 = vmatprep.mubr.msk.f32.mxu0 %vm379_vm1, %v5091_v39  ;;  %v1004_v14 = vrot.slane %v4854_v28, 2  ;;  %v5148_v45 = vsel %vm958_vm2, %v1005_v27, %v1007_v49 }
  0x50   : > { %v5131_v17 = vsel %vm958_vm2, %v1000_v33, %v1002_v38  ;;  %v5152_v0 = vsel %vm958_vm2, %v1009_v62, %v1010_v34  ;;  %v1014_v38 = vrot.slane %v4914_v22, 2  ;;  %v1015_v33 = vrot.slane %v4917_v24, 2 }
  0x51   : > { %v5135_v61 = vsel %vm958_vm2, %v1004_v14, %v1005_v27  ;;  %v1012_v14 = vrot.slane %v4906_v16, 2  ;;  %v1017_v27 = vrot.slane %v4947_v56, 2  ;;  %v1019_v62 = vrot.slane %v4955_v8, 2 }
  0x52   : > { %3899 = vmatmul.mubr.msk.f32.gmra.mrb[28].mxu1 %vm379_vm1, %v5102_v2  ;;  %4125 = vmatmul.mubr.msk.f32.gmra.mrb[12].mxu0 %vm379_vm1, %v5108_v41  ;;  %v5175_v49 = vsel %vm958_vm2, %v1014_v38, %v1015_v33  ;;  %v1024_v38 = vrot.slane %v4991_v46, 2  ;;  %v1035_v2 = vrot.slane %v5064_v44, 2 }
  0x53   : > { %3901 = vmatprep.mubr.msk.f32.mxu1 %vm379_vm1, %v5111_v57  ;;  %4127 = vmatprep.mubr.msk.f32.mxu0 %vm379_vm1, %v5115_v13  ;;  %v5171_v16 = vsel %vm958_vm2, %v1010_v34, %v1012_v14  ;;  %6176 = vst [vmem:[#allocation41_spill] sm:$0xff] %v5175_v49  ;;  %v5189_v56 = vsel %vm958_vm2, %v1015_v33, %v1017_v27  ;;  %v1022_v34 = vrot.slane %v4983_v52, 2  ;;  %v1027_v33 = vrot.slane %v5018_v36, 2 }
  0x54   : > { %v1030_v57 = vrot.slane %v5029_v54, 2 }
  0x56   : > { %3902 = vmatmul.mubr.msk.f32.gmra.mrb[30].mxu1 %vm379_vm1, %v5126_v37  ;;  %4128 = vmatmul.mubr.msk.f32.gmra.mrb[14].mxu0 %vm379_vm1, %v5131_v17  ;;  %v1025_v37 = vrot.slane %v4994_v12, 2 }
  0x57   : > { %3906 = vmatprep.mubr.msk.f32.mxu1 %vm379_vm1, %v4643_v4  ;;  %4130 = vmatprep.mubr.msk.f32.mxu0 %vm379_vm1, %v5135_v61 }
  0x58   : > { %v5210_v27 = vsel %vm958_vm2, %v1024_v38, %v1025_v37  ;;  %v5223_v36 = vsel %vm958_vm2, %v1025_v37, %v1027_v33  ;;  %v1034_v38 = vrot.slane %v5061_v40, 2  ;;  %v1037_v37 = vrot.slane %v5088_v48, 2 }
  0x59   : > { %6178 = vst [vmem:[#allocation43_spill] sm:$0xff] %v5210_v27  ;;  %6179 = vst [vmem:[#allocation44_spill] sm:$0xff] %v5223_v36 }
  0x5a   : > { %3907 = vmatmul.mubr.msk.f32.vlgmr.msra.gmra.mrb[0].mxu1 %vm379_vm1, %v4646_v5  ;;  %4131 = vmatmul.mubr.msk.f32.gmra.mrb[16].mxu0 %vm379_vm1, %v5148_v45  ;;  %v5250_v33 = vsel %vm958_vm2, %v1034_v38, %v1035_v2  ;;  %v5266_v48 = vsel %vm958_vm2, %v1035_v2, %v1037_v37  ;;  %v960_v38 = vrot.slane %v4646_v5, 2  ;;  %v962_v37 = vrot.slane %v4658_v11, 2  ;;  %v6186_v5 = vld [vmem:[#allocation20_spill] sm:$0xff]  ;;  %v6187_v11 = vld [vmem:[#allocation22_spill] sm:$0xff] }
  0x5b   : > { %3955 = vmatpush3.msra.mxu1 %v4714_v35  ;;  %3909 = vmatprep.mubr.msk.f32.mxu1 %vm379_vm1, %v4649_v6  ;;  %v1020_v35 = vrot.slane %v4958_v10, 2  ;;  %v5237_v6 = vld [vmem:[%s4640_s29 + $0x188] sm:$0xff]  ;;  %6182 = vst [vmem:[#allocation47_spill] sm:$0xff] %v5250_v33  ;;  %6183 = vst [vmem:[#allocation48_spill] sm:$0xff] %v5266_v48 }
  0x5c   : > { %4133 = vmatprep.mubr.msk.f32.mxu0 %vm379_vm1, %v5152_v0  ;;  %4004 = vmatprep.subr.mxu1 %v5161_v23 }
  0x5d   : > { %v5193_v14 = vsel %vm958_vm2, %v1019_v62, %v1020_v35  ;;  %v5206_v52 = vsel %vm958_vm2, %v1020_v35, %v1022_v34  ;;  %v1029_v62 = vrot.slane %v5026_v20, 2  ;;  %v1032_v35 = vrot.slane %v5053_v60, 2 }
  0x5e   : > { %3910 = vmatmul.mubr.msk.f32.gmra.mrb[2].mxu1 %vm379_vm1, %v4654_v9  ;;  %4134 = vmatmul.mubr.msk.f32.gmra.mrb[18].mxu0 %vm379_vm1, %v5171_v16  ;;  %6177 = vst [vmem:[#allocation42_spill] sm:$0xff] %v5206_v52  ;;  %v5234_v9 = vld [vmem:[%s4640_s29 + $0x180] sm:$0xff] }
  0x5f   : > { %3912 = vmatprep.mubr.msk.f32.mxu1 %vm379_vm1, %v4666_v15  ;;  %4136 = vmatprep.mubr.msk.f32.mxu0 %vm379_vm1, %v5175_v49  ;;  %v5227_v34 = vsel %vm958_vm2, %v1029_v62, %v1030_v57  ;;  %v5246_v60 = vsel %vm958_vm2, %v1030_v57, %v1032_v35  ;;  %v1896_v62 = vrot.slane %v5234_v9, 2 }
  0x60   : > { %6180 = vst [vmem:[#allocation45_spill] sm:$0xff] %v5227_v34  ;;  %6181 = vst [vmem:[#allocation46_spill] sm:$0xff] %v5246_v60 }
  0x62   : > { %3913 = vmatmul.mubr.msk.f32.gmra.mrb[4].mxu1 %vm379_vm1, %v4671_v18  ;;  %4137 = vmatmul.mubr.msk.f32.gmra.mrb[20].mxu0 %vm379_vm1, %v5189_v56 }
  0x63   : > { %3915 = vmatprep.mubr.msk.f32.mxu1 %vm379_vm1, %v4683_v25  ;;  %4139 = vmatprep.mubr.msk.f32.mxu0 %vm379_vm1, %v5193_v14 }
  0x66   : > { %3916 = vmatmul.mubr.msk.f32.gmra.mrb[6].mxu1 %vm379_vm1, %v4686_v26  ;;  %4140 = vmatmul.mubr.msk.f32.gmra.mrb[22].mxu0 %vm379_vm1, %v5206_v52  ;;  %v5255_v52 = vld [vmem:[%s4640_s29 + $0x190] sm:$0x3] }
  0x67   : > { %3918 = vmatprep.mubr.msk.f32.mxu1 %vm379_vm1, %v4697_v31  ;;  %4142 = vmatprep.mubr.msk.f32.mxu0 %vm379_vm1, %v5210_v27  ;;  %v1897_v27 = vrot.slane %v5237_v6, 2  ;;  %v1899_v57 = vrot.slane %v5255_v52, 2 }
  0x69   : > { %v5270_v35 = vsel %vm958_vm2, %v1896_v62, %v1897_v27  ;;  %v5281_v2 = vsel %vm958_vm2, %v1897_v27, %v1899_v57  ;;  %v5296_v27 = vld [vmem:[%s6060_s1 + $0x40] sm:$0xff] }
  0x6a   : > { %3919 = vmatmul.mubr.msk.f32.gmra.mrb[8].mxu1 %vm379_vm1, %v4700_v32  ;;  %4143 = vmatmul.mubr.msk.f32.gmra.mrb[24].mxu0 %vm379_vm1, %v5223_v36  ;;  %6184 = vst [vmem:[#allocation49_spill] sm:$0xff] %v5270_v35  ;;  %6185 = vst [vmem:[#allocation50_spill] sm:$0xff] %v5281_v2  ;;  %v6191_v57 = vld [vmem:[#allocation30_spill] sm:$0xff] }
  0x6b   : > { %3921 = vmatprep.mubr.msk.f32.mxu1 %vm379_vm1, %v4734_v42  ;;  %4145 = vmatprep.mubr.msk.f32.mxu0 %vm379_vm1, %v5227_v34 }
  0x6e   : > { %3922 = vmatmul.mubr.msk.f32.gmra.mrb[10].mxu1 %vm379_vm1, %v4737_v43  ;;  %4146 = vmatmul.mubr.msk.f32.gmra.mrb[26].mxu0 %vm379_vm1, %v5246_v60 }
  0x6f   : > { %3924 = vmatprep.mubr.msk.f32.mxu1 %vm379_vm1, %v4761_v50  ;;  %4148 = vmatprep.mubr.msk.f32.mxu0 %vm379_vm1, %v5250_v33 }
  0x72   : > { %3925 = vmatmul.mubr.msk.f32.gmra.mrb[12].mxu1 %vm379_vm1, %v4764_v51  ;;  %4149 = vmatmul.mubr.msk.f32.gmra.mrb[28].mxu0 %vm379_vm1, %v5266_v48 }
  0x73   : > { %3927 = vmatprep.mubr.msk.f32.mxu1 %vm379_vm1, %v4787_v58  ;;  %4151 = vmatprep.mubr.msk.f32.mxu0 %vm379_vm1, %v5270_v35  ;;  %v6196_v35 = vld [vmem:[#allocation6_spill] sm:$0xff] }
  0x76   : > { %3928 = vmatmul.mubr.msk.f32.gmra.mrb[14].mxu1 %vm379_vm1, %v4790_v59  ;;  %4152 = vmatmul.mubr.msk.f32.gmra.mrb[30].mxu0 %vm379_vm1, %v5281_v2  ;;  %v6195_v2 = vld [vmem:[#allocation5_spill] sm:$0xff] }
  0x77   : > { %3930 = vmatprep.mubr.msk.f32.mxu1 %vm379_vm1, %v4813_v3  ;;  %4156 = vmatprep.mubr.msk.f32.mxu0 %vm379_vm1, %v4666_v15 }
  0x7a   : > { %3931 = vmatmul.mubr.msk.f32.gmra.mrb[16].mxu1 %vm379_vm1, %v4816_v7  ;;  %4157 = vmatmul.mubr.msk.f32.vlgmr.msra.gmra.mrb[0].mxu0 %vm379_vm1, %v4671_v18 }
  0x7b   : > { %3933 = vmatprep.mubr.msk.f32.mxu1 %vm379_vm1, %v4854_v28  ;;  %4205 = vmatpush3.msra.mxu0 %v4924_v30  ;;  %v959_v30 = vrot.slane %v4643_v4, 2  ;;  %v963_v4 = vsel %vm958_vm2, %v960_v38, %v962_v37  ;;  %v6193_v37 = vld [vmem:[#allocation36_spill] sm:$0xff] }
  0x7c   : > { %4159 = vmatprep.mubr.msk.f32.mxu0 %vm379_vm1, %v4683_v25  ;;  %4254 = vmatprep.subr.mxu0 %v5296_v27 }
  0x7d   : > { %v961_v62 = vsel %vm958_vm2, %v959_v30, %v960_v38  ;;  %v6192_v30 = vld [vmem:[#allocation32_spill] sm:$0xff]  ;;  %v5416_v38 = vld [vmem:[%s4640_s29 + $0x198] sm:$0xff] }
  0x7e   : > { %3934 = vmatmul.mubr.msk.f32.gmra.mrb[18].mxu1 %vm379_vm1, %v4857_v29  ;;  %4160 = vmatmul.mubr.msk.f32.gmra.mrb[2].mxu0 %vm379_vm1, %v4686_v26 }
  0x7f   : > { %3936 = vmatprep.mubr.msk.f32.mxu1 %vm379_vm1, %v4882_v53  ;;  %4162 = vmatprep.mubr.msk.f32.mxu0 %vm379_vm1, %v4697_v31 }
  0x82   : > { %3937 = vmatmul.mubr.msk.f32.gmra.mrb[20].mxu1 %vm379_vm1, %v4885_v55  ;;  %4163 = vmatmul.mubr.msk.f32.gmra.mrb[4].mxu0 %vm379_vm1, %v4700_v32 }
  0x83   : > { %3939 = vmatprep.mubr.msk.f32.mxu1 %vm379_vm1, %v4914_v22  ;;  %4165 = vmatprep.mubr.msk.f32.mxu0 %vm379_vm1, %v4734_v42 }
  0x86   : > { %3940 = vmatmul.mubr.msk.f32.gmra.mrb[22].mxu1 %vm379_vm1, %v4917_v24  ;;  %4166 = vmatmul.mubr.msk.f32.gmra.mrb[6].mxu0 %vm379_vm1, %v4737_v43 }
  0x87   : > { %3942 = vmatprep.mubr.msk.f32.mxu1 %vm379_vm1, %v4955_v8  ;;  %4168 = vmatprep.mubr.msk.f32.mxu0 %vm379_vm1, %v4761_v50 }
  0x8a   : > { %3943 = vmatmul.mubr.msk.f32.gmra.mrb[24].mxu1 %vm379_vm1, %v4958_v10  ;;  %4169 = vmatmul.mubr.msk.f32.gmra.mrb[8].mxu0 %vm379_vm1, %v4764_v51 }
  0x8b   : > { %3945 = vmatprep.mubr.msk.f32.mxu1 %vm379_vm1, %v4991_v46  ;;  %4171 = vmatprep.mubr.msk.f32.mxu0 %vm379_vm1, %v4787_v58 }
  0x8e   : > { %3946 = vmatmul.mubr.msk.f32.gmra.mrb[26].mxu1 %vm379_vm1, %v4994_v12  ;;  %4172 = vmatmul.mubr.msk.f32.gmra.mrb[10].mxu0 %vm379_vm1, %v4790_v59 }
  0x8f   : > { %3948 = vmatprep.mubr.msk.f32.mxu1 %vm379_vm1, %v5026_v20  ;;  %4174 = vmatprep.mubr.msk.f32.mxu0 %vm379_vm1, %v4813_v3 }
  0x92   : > { %3949 = vmatmul.mubr.msk.f32.gmra.mrb[28].mxu1 %vm379_vm1, %v5029_v54  ;;  %4175 = vmatmul.mubr.msk.f32.gmra.mrb[12].mxu0 %vm379_vm1, %v4816_v7 }
  0x93   : > { %3951 = vmatprep.mubr.msk.f32.mxu1 %vm379_vm1, %v5061_v40  ;;  %4177 = vmatprep.mubr.msk.f32.mxu0 %vm379_vm1, %v4854_v28 }
  0x96   : > { %3952 = vmatmul.mubr.msk.f32.gmra.mrb[30].mxu1 %vm379_vm1, %v5064_v44  ;;  %4178 = vmatmul.mubr.msk.f32.gmra.mrb[14].mxu0 %vm379_vm1, %v4857_v29 }
  0x97   : > { %3956 = vmatprep.mubr.msk.f32.mxu1 %vm379_vm1, %v961_v62  ;;  %4180 = vmatprep.mubr.msk.f32.mxu0 %vm379_vm1, %v4882_v53  ;;  %v5427_v62 = vld [vmem:[%s4640_s29 + $0x1a0] sm:$0xff] }
  0x9a   : > { %3957 = vmatmul.mubr.msk.f32.vlgmr.msra.gmra.mrb[0].mxu1 %vm379_vm1, %v963_v4  ;;  %4181 = vmatmul.mubr.msk.f32.gmra.mrb[16].mxu0 %vm379_vm1, %v4885_v55  ;;  %v6194_v4 = vld [vmem:[#allocation4_spill] sm:$0xff] }
  0x9b   : > { %4005 = vmatpush3.msra.mxu1 %v5161_v23  ;;  %3959 = vmatprep.mubr.msk.f32.mxu1 %vm379_vm1, %v4877_v47  ;;  %v6188_v47 = vld [vmem:[#allocation24_spill] sm:$0xff] }
  0x9c   : > { %4183 = vmatprep.mubr.msk.f32.mxu0 %vm379_vm1, %v4914_v22  ;;  %4304 = vmatprep.subr.mxu1 %v4622_v1  ;;  %v6190_v23 = vld [vmem:[#allocation28_spill] sm:$0xff] }
  0x9e   : > { %3960 = vmatmul.mubr.msk.f32.gmra.mrb[2].mxu1 %vm379_vm1, %v4898_v63  ;;  %4184 = vmatmul.mubr.msk.f32.gmra.mrb[18].mxu0 %vm379_vm1, %v4917_v24  ;;  %v6189_v63 = vld [vmem:[#allocation26_spill] sm:$0xff] }
  0x9f   : > { %3962 = vmatprep.mubr.msk.f32.mxu1 %vm379_vm1, %v4909_v21  ;;  %4186 = vmatprep.mubr.msk.f32.mxu0 %vm379_vm1, %v4955_v8 }
  0xa2   : > { %3963 = vmatmul.mubr.msk.f32.gmra.mrb[4].mxu1 %vm379_vm1, %v6186_v5  ;;  %4187 = vmatmul.mubr.msk.f32.gmra.mrb[20].mxu0 %vm379_vm1, %v4958_v10 }
  0xa3   : > { %3965 = vmatprep.mubr.msk.f32.mxu1 %vm379_vm1, %v6187_v11  ;;  %4189 = vmatprep.mubr.msk.f32.mxu0 %vm379_vm1, %v4991_v46 }
  0xa6   : > { %3966 = vmatmul.mubr.msk.f32.gmra.mrb[6].mxu1 %vm379_vm1, %v6188_v47  ;;  %4190 = vmatmul.mubr.msk.f32.gmra.mrb[22].mxu0 %vm379_vm1, %v4994_v12 }
  0xa7   : > { %3968 = vmatprep.mubr.msk.f32.mxu1 %vm379_vm1, %v6189_v63  ;;  %4192 = vmatprep.mubr.msk.f32.mxu0 %vm379_vm1, %v5026_v20 }
  0xaa   : > { %3969 = vmatmul.mubr.msk.f32.gmra.mrb[8].mxu1 %vm379_vm1, %v6190_v23  ;;  %4193 = vmatmul.mubr.msk.f32.gmra.mrb[24].mxu0 %vm379_vm1, %v5029_v54 }
  0xab   : > { %3971 = vmatprep.mubr.msk.f32.mxu1 %vm379_vm1, %v6191_v57  ;;  %4195 = vmatprep.mubr.msk.f32.mxu0 %vm379_vm1, %v5061_v40 }
  0xae   : > { %3972 = vmatmul.mubr.msk.f32.gmra.mrb[10].mxu1 %vm379_vm1, %v6192_v30  ;;  %4196 = vmatmul.mubr.msk.f32.gmra.mrb[26].mxu0 %vm379_vm1, %v5064_v44  ;;  %v6197_v44 = vld [vmem:[#allocation7_spill] sm:$0xff] }
  0xaf   : > { %3974 = vmatprep.mubr.msk.f32.mxu1 %vm379_vm1, %v5056_v19  ;;  %4198 = vmatprep.mubr.msk.f32.mxu0 %vm379_vm1, %v5234_v9 }
  0xb2   : > { %3975 = vmatmul.mubr.msk.f32.gmra.mrb[12].mxu1 %vm379_vm1, %v6193_v37  ;;  %4199 = vmatmul.mubr.msk.f32.gmra.mrb[28].mxu0 %vm379_vm1, %v5237_v6 }
  0xb3   : > { %3977 = vmatprep.mubr.msk.f32.mxu1 %vm379_vm1, %v5091_v39  ;;  %4201 = vmatprep.mubr.msk.f32.mxu0 %vm379_vm1, %v5416_v38 }
  0xb6   : > { %3978 = vmatmul.mubr.msk.f32.gmra.mrb[14].mxu1 %vm379_vm1, %v5108_v41  ;;  %4202 = vmatmul.mubr.msk.f32.gmra.mrb[30].mxu0 %vm379_vm1, %v5427_v62 }
  0xb7   : > { %3980 = vmatprep.mubr.msk.f32.mxu1 %vm379_vm1, %v5115_v13  ;;  %4206 = vmatprep.mubr.msk.f32.mxu0 %vm379_vm1, %v6194_v4  ;;  %v6198_v4 = vld [vmem:[#allocation8_spill] sm:$0xff] }
  0xba   : > { %3981 = vmatmul.mubr.msk.f32.gmra.mrb[16].mxu1 %vm379_vm1, %v5131_v17  ;;  %4207 = vmatmul.mubr.msk.f32.vlgmr.msra.gmra.mrb[0].mxu0 %vm379_vm1, %v6195_v2  ;;  %v6199_v2 = vld [vmem:[#allocation9_spill] sm:$0xff] }
  0xbb   : > { %3983 = vmatprep.mubr.msk.f32.mxu1 %vm379_vm1, %v5135_v61  ;;  %4255 = vmatpush3.msra.mxu0 %v5296_v27  ;;  %v6202_v27 = vld [vmem:[#allocation12_spill] sm:$0xff] }
  0xbc   : > { %4209 = vmatprep.mubr.msk.f32.mxu0 %vm379_vm1, %v6196_v35  ;;  %v6200_v35 = vld [vmem:[#allocation10_spill] sm:$0xff] }
  0xbe   : > { %3984 = vmatmul.mubr.msk.f32.gmra.mrb[18].mxu1 %vm379_vm1, %v5148_v45  ;;  %4210 = vmatmul.mubr.msk.f32.gmra.mrb[2].mxu0 %vm379_vm1, %v6197_v44  ;;  %v6201_v44 = vld [vmem:[#allocation11_spill] sm:$0xff] }
  0xbf   : > { %3986 = vmatprep.mubr.msk.f32.mxu1 %vm379_vm1, %v5152_v0  ;;  %4212 = vmatprep.mubr.msk.f32.mxu0 %vm379_vm1, %v6198_v4  ;;  %v6203_v4 = vld [vmem:[#allocation42_spill] sm:$0xff] }
  0xc2   : > { %3987 = vmatmul.mubr.msk.f32.gmra.mrb[20].mxu1 %vm379_vm1, %v5171_v16  ;;  %4213 = vmatmul.mubr.msk.f32.gmra.mrb[4].mxu0 %vm379_vm1, %v6199_v2  ;;  %v6204_v2 = vld [vmem:[#allocation13_spill] sm:$0xff] }
  0xc3   : > { %3989 = vmatprep.mubr.msk.f32.mxu1 %vm379_vm1, %v5175_v49  ;;  %4215 = vmatprep.mubr.msk.f32.mxu0 %vm379_vm1, %v6200_v35  ;;  %v6205_v49 = vld [vmem:[#allocation43_spill] sm:$0xff]  ;;  %v6206_v35 = vld [vmem:[#allocation14_spill] sm:$0xff] }
  0xc6   : > { %3990 = vmatmul.mubr.msk.f32.gmra.mrb[22].mxu1 %vm379_vm1, %v5189_v56  ;;  %4216 = vmatmul.mubr.msk.f32.gmra.mrb[6].mxu0 %vm379_vm1, %v6201_v44  ;;  %v6207_v44 = vld [vmem:[#allocation15_spill] sm:$0xff] }
  0xc7   : > { %3992 = vmatprep.mubr.msk.f32.mxu1 %vm379_vm1, %v5193_v14  ;;  %4218 = vmatprep.mubr.msk.f32.mxu0 %vm379_vm1, %v6202_v27  ;;  %v6208_v27 = vld [vmem:[#allocation16_spill] sm:$0xff] }
  0xca   : > { %3993 = vmatmul.mubr.msk.f32.gmra.mrb[24].mxu1 %vm379_vm1, %v6203_v4  ;;  %4219 = vmatmul.mubr.msk.f32.gmra.mrb[8].mxu0 %vm379_vm1, %v6204_v2  ;;  %v6209_v2 = vld [vmem:[#allocation17_spill] sm:$0xff] }
  0xcb   : > { %3995 = vmatprep.mubr.msk.f32.mxu1 %vm379_vm1, %v6205_v49  ;;  %4221 = vmatprep.mubr.msk.f32.mxu0 %vm379_vm1, %v6206_v35  ;;  %v6210_v35 = vld [vmem:[#allocation18_spill] sm:$0xff] }
  0xce   : > { %3996 = vmatmul.mubr.msk.f32.gmra.mrb[26].mxu1 %vm379_vm1, %v5223_v36  ;;  %4222 = vmatmul.mubr.msk.f32.gmra.mrb[10].mxu0 %vm379_vm1, %v6207_v44  ;;  %v6211_v44 = vld [vmem:[#allocation19_spill] sm:$0xff] }
  0xcf   : > { %3998 = vmatprep.mubr.msk.f32.mxu1 %vm379_vm1, %v5227_v34  ;;  %4224 = vmatprep.mubr.msk.f32.mxu0 %vm379_vm1, %v6208_v27  ;;  %v6212_v34 = vld [vmem:[#allocation2_spill] sm:$0xff]  ;;  %v6213_v27 = vld [vmem:[#allocation21_spill] sm:$0xff]  ;;  %v5552_v36 = vld [vmem:[%s4640_s29 + $0x1a8] sm:$0x3] }
  0xd2   : > { %3999 = vmatmul.mubr.msk.f32.gmra.mrb[28].mxu1 %vm379_vm1, %v5246_v60  ;;  %4225 = vmatmul.mubr.msk.f32.gmra.mrb[12].mxu0 %vm379_vm1, %v6209_v2  ;;  %v6214_v60 = vld [vmem:[#allocation3_spill] sm:$0xff] }
  0xd3   : > { %4001 = vmatprep.mubr.msk.f32.mxu1 %vm379_vm1, %v5250_v33  ;;  %4227 = vmatprep.mubr.msk.f32.mxu0 %vm379_vm1, %v6210_v35  ;;  %v6215_v2 = vld [vmem:[#allocation23_spill] sm:$0xff]  ;;  %v6223_v33 = vld [vmem:[#allocation38_spill] sm:$0xff] }
  0xd6   : > { %4002 = vmatmul.mubr.msk.f32.gmra.mrb[30].mxu1 %vm379_vm1, %v5266_v48  ;;  %4228 = vmatmul.mubr.msk.f32.gmra.mrb[14].mxu0 %vm379_vm1, %v6211_v44  ;;  %v6216_v48 = vld [vmem:[#allocation25_spill] sm:$0xff] }
  0xd7   : > { %4006 = vmatprep.mubr.msk.f32.mxu1 %vm379_vm1, %v6212_v34  ;;  %4230 = vmatprep.mubr.msk.f32.mxu0 %vm379_vm1, %v6213_v27  ;;  %v6217_v34 = vld [vmem:[#allocation27_spill] sm:$0xff] }
  0xda   : > { %4007 = vmatmul.mubr.msk.f32.vlgmr.msra.gmra.mrb[0].mxu1 %vm379_vm1, %v6214_v60  ;;  %4231 = vmatmul.mubr.msk.f32.gmra.mrb[16].mxu0 %vm379_vm1, %v6215_v2  ;;  %v6218_v60 = vld [vmem:[#allocation29_spill] sm:$0xff] }
  0xdb   : > { %4305 = vmatpush3.msra.mxu1 %v4622_v1  ;;  %4009 = vmatprep.mubr.msk.f32.mxu1 %vm379_vm1, %v4666_v15  ;;  %v6219_v1 = vld [vmem:[#allocation31_spill] sm:$0xff]  ;;  %v6220_v15 = vld [vmem:[#allocation33_spill] sm:$0xff] }
  0xdc   : > { %4233 = vmatprep.mubr.msk.f32.mxu0 %vm379_vm1, %v6216_v48 }
  0xde   : > { %4010 = vmatmul.mubr.msk.f32.gmra.mrb[2].mxu1 %vm379_vm1, %v4671_v18  ;;  %4234 = vmatmul.mubr.msk.f32.gmra.mrb[18].mxu0 %vm379_vm1, %v6217_v34  ;;  %v6221_v18 = vld [vmem:[#allocation35_spill] sm:$0xff] }
  0xdf   : > { %4012 = vmatprep.mubr.msk.f32.mxu1 %vm379_vm1, %v4683_v25  ;;  %4236 = vmatprep.mubr.msk.f32.mxu0 %vm379_vm1, %v6218_v60  ;;  %v6222_v25 = vld [vmem:[#allocation37_spill] sm:$0xff] }
  0xe2   : > { %4013 = vmatmul.mubr.msk.f32.gmra.mrb[4].mxu1 %vm379_vm1, %v4686_v26  ;;  %4237 = vmatmul.mubr.msk.f32.gmra.mrb[20].mxu0 %vm379_vm1, %v6219_v1  ;;  %v1628_v26 = vrot.slane %v5234_v9, 1 }
  0xe3   : > { %4015 = vmatprep.mubr.msk.f32.mxu1 %vm379_vm1, %v4697_v31  ;;  %4239 = vmatprep.mubr.msk.f32.mxu0 %vm379_vm1, %v6220_v15  ;;  %v1629_v31 = vrot.slane %v5237_v6, 1 }
  0xe5   : > { %v5549_v15 = vsel %vm296_vm0, %v1628_v26, %v1629_v31 }
  0xe6   : > { %4016 = vmatmul.mubr.msk.f32.gmra.mrb[6].mxu1 %vm379_vm1, %v4700_v32  ;;  %4240 = vmatmul.mubr.msk.f32.gmra.mrb[22].mxu0 %vm379_vm1, %v6221_v18  ;;  %v6224_v32 = vld [vmem:[#allocation39_spill] sm:$0xff]  ;;  %v2431_v18 = vrot.slane %v5427_v62, 1 }
  0xe7   : > { %4018 = vmatprep.mubr.msk.f32.mxu1 %vm379_vm1, %v4734_v42  ;;  %4242 = vmatprep.mubr.msk.f32.mxu0 %vm379_vm1, %v6222_v25  ;;  %v1631_v42 = vrot.slane %v5255_v52, 1  ;;  %v2430_v25 = vrot.slane %v5416_v38, 1  ;;  %v2433_v52 = vrot.slane %v5552_v36, 1 }
  0xe9   : > { %v2432_v26 = vsel %vm296_vm0, %v2430_v25, %v2431_v18 }
  0xea   : > { %4019 = vmatmul.mubr.msk.f32.gmra.mrb[8].mxu1 %vm379_vm1, %v4737_v43  ;;  %4243 = vmatmul.mubr.msk.f32.gmra.mrb[24].mxu0 %vm379_vm1, %v6223_v33  ;;  %v6225_v43 = vld [vmem:[#allocation40_spill] sm:$0xff] }
  0xeb   : > { %4021 = vmatprep.mubr.msk.f32.mxu1 %vm379_vm1, %v4761_v50  ;;  %4245 = vmatprep.mubr.msk.f32.mxu0 %vm379_vm1, %v6224_v32  ;;  %v5563_v50 = vsel %vm296_vm0, %v1629_v31, %v1631_v42 }
  0xee   : > { %4022 = vmatmul.mubr.msk.f32.gmra.mrb[10].mxu1 %vm379_vm1, %v4764_v51  ;;  %4246 = vmatmul.mubr.msk.f32.gmra.mrb[26].mxu0 %vm379_vm1, %v6225_v43  ;;  %v2434_v51 = vsel %vm296_vm0, %v2431_v18, %v2433_v52 }
  0xef   : > { %4024 = vmatprep.mubr.msk.f32.mxu1 %vm379_vm1, %v4787_v58  ;;  %4248 = vmatprep.mubr.msk.f32.mxu0 %vm379_vm1, %v5549_v15  ;;  %v6229_v58 = vld [vmem:[#allocation33_spill] sm:$0xff] }
  0xf2   : > { %4025 = vmatmul.mubr.msk.f32.gmra.mrb[12].mxu1 %vm379_vm1, %v4790_v59  ;;  %4249 = vmatmul.mubr.msk.f32.gmra.mrb[28].mxu0 %vm379_vm1, %v5563_v50  ;;  %v6230_v59 = vld [vmem:[#allocation45_spill] sm:$0xff] }
  0xf3   : > { %4027 = vmatprep.mubr.msk.f32.mxu1 %vm379_vm1, %v4813_v3  ;;  %4251 = vmatprep.mubr.msk.f32.mxu0 %vm379_vm1, %v2432_v26  ;;  %v6231_v3 = vld [vmem:[#allocation35_spill] sm:$0xff] }
  0xf6   : > { %4028 = vmatmul.mubr.msk.f32.gmra.mrb[14].mxu1 %vm379_vm1, %v4816_v7  ;;  %4252 = vmatmul.mubr.msk.f32.gmra.mrb[30].mxu0 %vm379_vm1, %v2434_v51  ;;  %v6232_v7 = vld [vmem:[#allocation46_spill] sm:$0xff] }
  0xf7   : > { %4030 = vmatprep.mubr.msk.f32.mxu1 %vm379_vm1, %v4854_v28  ;;  %4256 = vmatprep.mubr.msk.f32.mxu0 %vm379_vm1, %v4909_v21  ;;  %v2698_v28 = vrot.slane %v5416_v38, 2  ;;  %v2701_v21 = vrot.slane %v5552_v36, 2 }
  0xfa   : > { %4031 = vmatmul.mubr.msk.f32.gmra.mrb[16].mxu1 %vm379_vm1, %v4857_v29  ;;  %4257 = vmatmul.mubr.msk.f32.vlgmr.msra.gmra.mrb[0].mxu0 %vm379_vm1, %v6186_v5  ;;  %v2699_v29 = vrot.slane %v5427_v62, 2 }
  0xfb   : > { %4033 = vmatprep.mubr.msk.f32.mxu1 %vm379_vm1, %v4882_v53  ;;  %4259 = vmatprep.mubr.msk.f32.mxu0 %vm379_vm1, %v6187_v11  ;;  %v6235_v53 = vld [vmem:[#allocation48_spill] sm:$0xff] }
  0xfe   : > { %4034 = vmatmul.mubr.msk.f32.gmra.mrb[18].mxu1 %vm379_vm1, %v4885_v55  ;;  %4260 = vmatmul.mubr.msk.f32.gmra.mrb[2].mxu0 %vm379_vm1, %v6188_v47  ;;  %v6236_v55 = vld [vmem:[#allocation49_spill] sm:$0xff] }
  0xff   : > { %4036 = vmatprep.mubr.msk.f32.mxu1 %vm379_vm1, %v4914_v22  ;;  %4262 = vmatprep.mubr.msk.f32.mxu0 %vm379_vm1, %v6189_v63  ;;  %v6234_v22 = vld [vmem:[#allocation47_spill] sm:$0xff] }
 0x102   : > { %4037 = vmatmul.mubr.msk.f32.gmra.mrb[20].mxu1 %vm379_vm1, %v4917_v24  ;;  %4263 = vmatmul.mubr.msk.f32.gmra.mrb[4].mxu0 %vm379_vm1, %v6190_v23  ;;  %v2700_v24 = vsel %vm958_vm2, %v2698_v28, %v2699_v29 }
 0x103   : > { %4039 = vmatprep.mubr.msk.f32.mxu1 %vm379_vm1, %v4955_v8  ;;  %4265 = vmatprep.mubr.msk.f32.mxu0 %vm379_vm1, %v6191_v57  ;;  %v6233_v8 = vld [vmem:[#allocation37_spill] sm:$0xff] }
 0x106   : > { %4040 = vmatmul.mubr.msk.f32.gmra.mrb[22].mxu1 %vm379_vm1, %v4958_v10  ;;  %4266 = vmatmul.mubr.msk.f32.gmra.mrb[6].mxu0 %vm379_vm1, %v6192_v30  ;;  %v6237_v10 = vld [vmem:[#allocation50_spill] sm:$0xff] }
 0x107   : > { %4042 = vmatprep.mubr.msk.f32.mxu1 %vm379_vm1, %v4991_v46  ;;  %4268 = vmatprep.mubr.msk.f32.mxu0 %vm379_vm1, %v5056_v19  ;;  %v6226_v46 = vld [vmem:[#allocation34_spill] sm:$0xff] }
 0x10a   : > { %4043 = vmatmul.mubr.msk.f32.gmra.mrb[24].mxu1 %vm379_vm1, %v4994_v12  ;;  %4269 = vmatmul.mubr.msk.f32.gmra.mrb[8].mxu0 %vm379_vm1, %v6193_v37  ;;  %v2702_v12 = vsel %vm958_vm2, %v2699_v29, %v2701_v21 }
 0x10b   : > { %4045 = vmatprep.mubr.msk.f32.mxu1 %vm379_vm1, %v5026_v20  ;;  %4271 = vmatprep.mubr.msk.f32.mxu0 %vm379_vm1, %v5091_v39 }
 0x10e   : > { %4046 = vmatmul.mubr.msk.f32.gmra.mrb[26].mxu1 %vm379_vm1, %v5029_v54  ;;  %4272 = vmatmul.mubr.msk.f32.gmra.mrb[10].mxu0 %vm379_vm1, %v5108_v41 }
 0x10f   : > { %4048 = vmatprep.mubr.msk.f32.mxu1 %vm379_vm1, %v5061_v40  ;;  %4274 = vmatprep.mubr.msk.f32.mxu0 %vm379_vm1, %v5115_v13 }
 0x112   : > { %4049 = vmatmul.mubr.msk.f32.gmra.mrb[28].mxu1 %vm379_vm1, %v6226_v46  ;;  %4275 = vmatmul.mubr.msk.f32.gmra.mrb[12].mxu0 %vm379_vm1, %v5131_v17 }
 0x113   : > { %4051 = vmatprep.mubr.msk.f32.mxu1 %vm379_vm1, %v5234_v9  ;;  %4277 = vmatprep.mubr.msk.f32.mxu0 %vm379_vm1, %v5135_v61  ;;  %v6227_v9 = vld [vmem:[#allocation41_spill] sm:$0xff] }
 0x116   : > { %4052 = vmatmul.mubr.msk.f32.gmra.mrb[30].mxu1 %vm379_vm1, %v5237_v6  ;;  %4278 = vmatmul.mubr.msk.f32.gmra.mrb[14].mxu0 %vm379_vm1, %v5148_v45  ;;  %v6228_v6 = vld [vmem:[#allocation44_spill] sm:$0xff] }
 0x117   : > { %4080 = vmatprep.mubr.msk.f32.mxu1 %vm379_vm1, %v6210_v35  ;;  %4280 = vmatprep.mubr.msk.f32.mxu0 %vm379_vm1, %v5152_v0 }
 0x11a   : > { %4081 = vmatmul.mubr.msk.f32.vlgmr.msra.gmra.mrb[16].mxu1 %vm379_vm1, %v6211_v44  ;;  %4281 = vmatmul.mubr.msk.f32.gmra.mrb[16].mxu0 %vm379_vm1, %v5171_v16 }
 0x11b   : > { %4083 = vmatprep.mubr.msk.f32.mxu1 %vm379_vm1, %v6213_v27  ;;  %4283 = vmatprep.mubr.msk.f32.mxu0 %vm379_vm1, %v6227_v9 }
 0x11e   : > { %4084 = vmatmul.mubr.msk.f32.gmra.mrb[18].mxu1 %vm379_vm1, %v6215_v2  ;;  %4284 = vmatmul.mubr.msk.f32.gmra.mrb[18].mxu0 %vm379_vm1, %v5189_v56 }
 0x11f   : > { %4086 = vmatprep.mubr.msk.f32.mxu1 %vm379_vm1, %v6216_v48  ;;  %4286 = vmatprep.mubr.msk.f32.mxu0 %vm379_vm1, %v5193_v14 }
 0x122   : > { %4087 = vmatmul.mubr.msk.f32.gmra.mrb[20].mxu1 %vm379_vm1, %v6217_v34  ;;  %4287 = vmatmul.mubr.msk.f32.gmra.mrb[20].mxu0 %vm379_vm1, %v6203_v4 }
 0x123   : > { %4089 = vmatprep.mubr.msk.f32.mxu1 %vm379_vm1, %v6218_v60  ;;  %4289 = vmatprep.mubr.msk.f32.mxu0 %vm379_vm1, %v6205_v49 }
 0x126   : > { %4090 = vmatmul.mubr.msk.f32.gmra.mrb[22].mxu1 %vm379_vm1, %v6219_v1  ;;  %4290 = vmatmul.mubr.msk.f32.gmra.mrb[22].mxu0 %vm379_vm1, %v6228_v6 }
 0x127   : > { %4092 = vmatprep.mubr.msk.f32.mxu1 %vm379_vm1, %v6229_v58  ;;  %4292 = vmatprep.mubr.msk.f32.mxu0 %vm379_vm1, %v6230_v59 }
 0x12a   : > { %4093 = vmatmul.mubr.msk.f32.gmra.mrb[24].mxu1 %vm379_vm1, %v6231_v3  ;;  %4293 = vmatmul.mubr.msk.f32.gmra.mrb[24].mxu0 %vm379_vm1, %v6232_v7 }
 0x12b   : > { %4095 = vmatprep.mubr.msk.f32.mxu1 %vm379_vm1, %v6233_v8  ;;  %4295 = vmatprep.mubr.msk.f32.mxu0 %vm379_vm1, %v6234_v22 }
 0x12e   : > { %4096 = vmatmul.mubr.msk.f32.gmra.mrb[26].mxu1 %vm379_vm1, %v6223_v33  ;;  %4296 = vmatmul.mubr.msk.f32.gmra.mrb[26].mxu0 %vm379_vm1, %v6235_v53 }
 0x12f   : > { %4098 = vmatprep.mubr.msk.f32.mxu1 %vm379_vm1, %v6224_v32  ;;  %4298 = vmatprep.mubr.msk.f32.mxu0 %vm379_vm1, %v6236_v55 }
 0x132   : > { %4099 = vmatmul.mubr.msk.f32.gmra.mrb[28].mxu1 %vm379_vm1, %v6225_v43  ;;  %4299 = vmatmul.mubr.msk.f32.gmra.mrb[28].mxu0 %vm379_vm1, %v6237_v10 }
 0x133   : > { %4101 = vmatprep.mubr.msk.f32.mxu1 %vm379_vm1, %v5549_v15  ;;  %4301 = vmatprep.mubr.msk.f32.mxu0 %vm379_vm1, %v2700_v24 }
 0x136   : > { %4102 = vmatmul.mubr.msk.f32.gmra.mrb[30].mxu1 %vm379_vm1, %v5563_v50  ;;  %4302 = vmatmul.mubr.msk.f32.gmra.mrb[30].mxu0 %vm379_vm1, %v2702_v12 }
 0x1ad   : > { %v4008_v40 = vpop.f32.mrb[0].mxu1 }
 0x1ae   : > { %v1436_v20 = vpop.f32.mrb[1].mxu1 }
 0x1b1   : > { %v4011_v54 = vpop.f32.mrb[2].mxu1 }
 0x1b2   : > { %v1446_v19 = vpop.f32.mrb[3].mxu1 }
 0x1b5   : > { %v4014_v13 = vpop.f32.mrb[4].mxu1 }
 0x1b6   : > { %v1456_v39 = vpop.f32.mrb[5].mxu1 }
 0x1b9   : > { %v4017_v41 = vpop.f32.mrb[6].mxu1 }
 0x1ba   : > { %v1466_v17 = vpop.f32.mrb[7].mxu1 }
 0x1bd   : > { %v4020_v61 = vpop.f32.mrb[8].mxu1 }
 0x1be   : > { %v1476_v45 = vpop.f32.mrb[9].mxu1 }
 0x1c1   : > { %v4023_v0 = vpop.f32.mrb[10].mxu1 }
 0x1c2   : > { %v1486_v16 = vpop.f32.mrb[11].mxu1 }
 0x1c5   : > { %v4026_v49 = vpop.f32.mrb[12].mxu1 }
 0x1c6   : > { %v1496_v56 = vpop.f32.mrb[13].mxu1 }
 0x1c9   : > { %v4029_v14 = vpop.f32.mrb[14].mxu1 }
 0x1ca   : > { %v1506_v36 = vpop.f32.mrb[15].mxu1 }
 0x1cd   : > { %v4258_v33 = vpop.f32.mrb[0].mxu0 }
 0x1ce   : > { %v5715_v48 = vadd.f32 %v4258_v33, %v4008_v40  ;;  %v2775_v5 = vpop.f32.mrb[1].mxu0 }
 0x1cf   : > { %v5717_v11 = vadd.f32 %v2775_v5, %v1436_v20 }
 0x1d0   : > { %2967 = vst.msk [vmem:[%s5713_s19 + $0x8] sm:$0xff] %vm379_vm1, %v5715_v48 }
 0x1d1   : > { %2966 = vst.msk [vmem:[%s5713_s19] sm:$0xff] %vm379_vm1, %v5717_v11  ;;  %v4261_v47 = vpop.f32.mrb[2].mxu0 }
 0x1d2   : > { %v5725_v63 = vadd.f32 %v4261_v47, %v4011_v54  ;;  %v2785_v23 = vpop.f32.mrb[3].mxu0 }
 0x1d3   : > { %v5727_v57 = vadd.f32 %v2785_v23, %v1446_v19 }
 0x1d4   : > { %2969 = vst.msk [vmem:[%s5713_s19 + $0x18] sm:$0xff] %vm379_vm1, %v5725_v63 }
 0x1d5   : > { %2968 = vst.msk [vmem:[%s5713_s19 + $0x10] sm:$0xff] %vm379_vm1, %v5727_v57  ;;  %v4264_v30 = vpop.f32.mrb[4].mxu0 }
 0x1d6   : > { %v5735_v38 = vadd.f32 %v4264_v30, %v4014_v13  ;;  %v2795_v37 = vpop.f32.mrb[5].mxu0 }
 0x1d7   : > { %v5737_v62 = vadd.f32 %v2795_v37, %v1456_v39 }
 0x1d8   : > { %2971 = vst.msk [vmem:[%s5713_s19 + $0x28] sm:$0xff] %vm379_vm1, %v5735_v38 }
 0x1d9   : > { %2970 = vst.msk [vmem:[%s5713_s19 + $0x20] sm:$0xff] %vm379_vm1, %v5737_v62  ;;  %v4267_v4 = vpop.f32.mrb[6].mxu0 }
 0x1da   : > { %v5745_v35 = vadd.f32 %v4267_v4, %v4017_v41  ;;  %v2805_v44 = vpop.f32.mrb[7].mxu0 }
 0x1db   : > { %v5747_v27 = vadd.f32 %v2805_v44, %v1466_v17 }
 0x1dc   : > { %2973 = vst.msk [vmem:[%s5713_s19 + $0x38] sm:$0xff] %vm379_vm1, %v5745_v35 }
 0x1dd   : > { %2972 = vst.msk [vmem:[%s5713_s19 + $0x30] sm:$0xff] %vm379_vm1, %v5747_v27  ;;  %v4270_v2 = vpop.f32.mrb[8].mxu0 }
 0x1de   : > { %v5755_v34 = vadd.f32 %v4270_v2, %v4020_v61  ;;  %v2815_v60 = vpop.f32.mrb[9].mxu0 }
 0x1df   : > { %v5757_v1 = vadd.f32 %v2815_v60, %v1476_v45 }
 0x1e0   : > { %2975 = vst.msk [vmem:[%s5713_s19 + $0x48] sm:$0xff] %vm379_vm1, %v5755_v34 }
 0x1e1   : > { %2974 = vst.msk [vmem:[%s5713_s19 + $0x40] sm:$0xff] %vm379_vm1, %v5757_v1  ;;  %v4273_v15 = vpop.f32.mrb[10].mxu0 }
 0x1e2   : > { %v5765_v18 = vadd.f32 %v4273_v15, %v4023_v0  ;;  %v2825_v25 = vpop.f32.mrb[11].mxu0 }
 0x1e3   : > { %v5767_v31 = vadd.f32 %v2825_v25, %v1486_v16 }
 0x1e4   : > { %2977 = vst.msk [vmem:[%s5713_s19 + $0x58] sm:$0xff] %vm379_vm1, %v5765_v18 }
 0x1e5   : > { %2976 = vst.msk [vmem:[%s5713_s19 + $0x50] sm:$0xff] %vm379_vm1, %v5767_v31  ;;  %v4276_v32 = vpop.f32.mrb[12].mxu0 }
 0x1e6   : > { %v5775_v42 = vadd.f32 %v4276_v32, %v4026_v49  ;;  %v2835_v43 = vpop.f32.mrb[13].mxu0 }
 0x1e7   : > { %v5777_v50 = vadd.f32 %v2835_v43, %v1496_v56 }
 0x1e8   : > { %2979 = vst.msk [vmem:[%s5713_s19 + $0x68] sm:$0xff] %vm379_vm1, %v5775_v42 }
 0x1e9   : > { %2978 = vst.msk [vmem:[%s5713_s19 + $0x60] sm:$0xff] %vm379_vm1, %v5777_v50  ;;  %v4279_v52 = vpop.f32.mrb[14].mxu0 }
 0x1ea   : > { %v5785_v26 = vadd.f32 %v4279_v52, %v4029_v14  ;;  %v2845_v51 = vpop.f32.mrb[15].mxu0 }
 0x1eb   : > { %v5787_v46 = vadd.f32 %v2845_v51, %v1506_v36 }
 0x1ec   : > { %2981 = vst.msk [vmem:[%s5713_s19 + $0x78] sm:$0xff] %vm379_vm1, %v5785_v26 }
 0x1ed   : > { %v4082_v9 = vpop.f32.mrb[16].mxu1  ;;  %2980 = vst.msk [vmem:[%s5713_s19 + $0x70] sm:$0xff] %vm379_vm1, %v5787_v46  ;;  %v4282_v6 = vpop.f32.mrb[16].mxu0 }
 0x1ee   : > { %v1785_v58 = vpop.f32.mrb[17].mxu1  ;;  %v5795_v59 = vadd.f32 %v4282_v6, %v4082_v9  ;;  %v2855_v3 = vpop.f32.mrb[17].mxu0  ;;  %v4580_v9 = vmov (!%p3553_p4), 0.0  }
 0x1ef   : > { %v5797_v7 = vadd.f32 %v2855_v3, %v1785_v58  ;;  %3003 = vst.msk [vmem:[%s6062_s3] sm:$0x1] (!%p3553_p4), %vm3002_vm3, %v4580_v9  ;;  %3004 = vst.msk [vmem:[%s6063_s4] sm:$0x1] (!%p3553_p4), %vm3002_vm3, %v4580_v9 }
 0x1f0   : > { %2983 = vst.msk [vmem:[%s5713_s19 + $0x88] sm:$0xff] %vm379_vm1, %v5795_v59 }
 0x1f1   : > { %v4085_v8 = vpop.f32.mrb[18].mxu1  ;;  %2982 = vst.msk [vmem:[%s5713_s19 + $0x80] sm:$0xff] %vm379_vm1, %v5797_v7  ;;  %v4285_v22 = vpop.f32.mrb[18].mxu0 }
 0x1f2   : > { %v1795_v28 = vpop.f32.mrb[19].mxu1  ;;  %v5805_v29 = vadd.f32 %v4285_v22, %v4085_v8  ;;  %v2865_v53 = vpop.f32.mrb[19].mxu0 }
 0x1f3   : > { %v5807_v55 = vadd.f32 %v2865_v53, %v1795_v28 }
 0x1f4   : > { %2985 = vst.msk [vmem:[%s5713_s19 + $0x98] sm:$0xff] %vm379_vm1, %v5805_v29 }
 0x1f5   : > { %v4088_v21 = vpop.f32.mrb[20].mxu1  ;;  %2984 = vst.msk [vmem:[%s5713_s19 + $0x90] sm:$0xff] %vm379_vm1, %v5807_v55  ;;  %v4288_v24 = vpop.f32.mrb[20].mxu0 }
 0x1f6   : > { %v1805_v10 = vpop.f32.mrb[21].mxu1  ;;  %v5815_v12 = vadd.f32 %v4288_v24, %v4088_v21  ;;  %v2875_v40 = vpop.f32.mrb[21].mxu0 }
 0x1f7   : > { %v5817_v20 = vadd.f32 %v2875_v40, %v1805_v10 }
 0x1f8   : > { %2987 = vst.msk [vmem:[%s5713_s19 + $0xa8] sm:$0xff] %vm379_vm1, %v5815_v12 }
 0x1f9   : > { %v4091_v54 = vpop.f32.mrb[22].mxu1  ;;  %2986 = vst.msk [vmem:[%s5713_s19 + $0xa0] sm:$0xff] %vm379_vm1, %v5817_v20  ;;  %v4291_v19 = vpop.f32.mrb[22].mxu0 }
 0x1fa   : > { %v1815_v13 = vpop.f32.mrb[23].mxu1  ;;  %v5825_v39 = vadd.f32 %v4291_v19, %v4091_v54  ;;  %v2885_v41 = vpop.f32.mrb[23].mxu0 }
 0x1fb   : > { %v5827_v17 = vadd.f32 %v2885_v41, %v1815_v13 }
 0x1fc   : > { %2989 = vst.msk [vmem:[%s5713_s19 + $0xb8] sm:$0xff] %vm379_vm1, %v5825_v39 }
 0x1fd   : > { %v4094_v61 = vpop.f32.mrb[24].mxu1  ;;  %2988 = vst.msk [vmem:[%s5713_s19 + $0xb0] sm:$0xff] %vm379_vm1, %v5827_v17  ;;  %v4294_v45 = vpop.f32.mrb[24].mxu0 }
 0x1fe   : > { %v1825_v0 = vpop.f32.mrb[25].mxu1  ;;  %v5835_v16 = vadd.f32 %v4294_v45, %v4094_v61  ;;  %v2895_v49 = vpop.f32.mrb[25].mxu0 }
 0x1ff   : > { %v5837_v56 = vadd.f32 %v2895_v49, %v1825_v0 }
 0x200   : > { %2991 = vst.msk [vmem:[%s5713_s19 + $0xc8] sm:$0xff] %vm379_vm1, %v5835_v16 }
 0x201   : > { %v4097_v14 = vpop.f32.mrb[26].mxu1  ;;  %2990 = vst.msk [vmem:[%s5713_s19 + $0xc0] sm:$0xff] %vm379_vm1, %v5837_v56  ;;  %v4297_v36 = vpop.f32.mrb[26].mxu0 }
 0x202   : > { %v1835_v33 = vpop.f32.mrb[27].mxu1  ;;  %v5845_v5 = vadd.f32 %v4297_v36, %v4097_v14  ;;  %v2905_v47 = vpop.f32.mrb[27].mxu0 }
 0x203   : > { %v5847_v23 = vadd.f32 %v2905_v47, %v1835_v33 }
 0x204   : > { %2993 = vst.msk [vmem:[%s5713_s19 + $0xd8] sm:$0xff] %vm379_vm1, %v5845_v5 }
 0x205   : > { %v4100_v30 = vpop.f32.mrb[28].mxu1  ;;  %2992 = vst.msk [vmem:[%s5713_s19 + $0xd0] sm:$0xff] %vm379_vm1, %v5847_v23  ;;  %v4300_v37 = vpop.f32.mrb[28].mxu0 }
 0x206   : > { %v1845_v4 = vpop.f32.mrb[29].mxu1  ;;  %v5855_v44 = vadd.f32 %v4300_v37, %v4100_v30  ;;  %v2915_v2 = vpop.f32.mrb[29].mxu0 }
 0x207   : > { %v5857_v60 = vadd.f32 %v2915_v2, %v1845_v4  ;;  %3001 = sbr.rel (%p3553_p4) target bundleno = 526 (0x20e), region = 32 }
 0x208   : > { %2995 = vst.msk [vmem:[%s5713_s19 + $0xe8] sm:$0xff] %vm379_vm1, %v5855_v44 }
 0x209   : > { %v4103_v15 = vpop.f32.mrb[30].mxu1  ;;  %2994 = vst.msk [vmem:[%s5713_s19 + $0xe0] sm:$0xff] %vm379_vm1, %v5857_v60  ;;  %v4303_v25 = vpop.f32.mrb[30].mxu0 }
 0x20a   : > { %v1855_v32 = vpop.f32.mrb[31].mxu1  ;;  %v5865_v43 = vadd.f32 %v4303_v25, %v4103_v15  ;;  %v2925_v52 = vpop.f32.mrb[31].mxu0 }
 0x20b   : > { %v5867_v51 = vadd.f32 %v2925_v52, %v1855_v32 }
 0x20c   : > { %2997 = vst.msk [vmem:[%s5713_s19 + $0xf8] sm:$0xff] %vm379_vm1, %v5865_v43 }
 0x20d   : > { %2996 = vst.msk [vmem:[%s5713_s19 + $0xf0] sm:$0xff] %vm379_vm1, %v5867_v51 }
 0x20e PF: > { %v3006_v6 = vsel %vm379_vm1, %v5717_v11, 0.0  ;;  %v3007_v58 = vsel %vm379_vm1, %v5715_v48, 0.0  ;;  %v3009_v3 = vsel %vm379_vm1, %v5727_v57, 0.0  ;;  %v3011_v22 = vsel %vm379_vm1, %v5725_v63, 0.0 }
 0x20f   : > { %v3008_v8 = vadd.f32 %v3007_v58, %v3006_v6  ;;  %v3013_v53 = vsel %vm379_vm1, %v5737_v62, 0.0  ;;  %v3015_v24 = vsel %vm379_vm1, %v5735_v38, 0.0  ;;  %v3017_v40 = vsel %vm379_vm1, %v5747_v27, 0.0 }
 0x210   : > { %v3019_v19 = vsel %vm379_vm1, %v5745_v35, 0.0  ;;  %v3021_v41 = vsel %vm379_vm1, %v5757_v1, 0.0  ;;  %v3023_v45 = vsel %vm379_vm1, %v5755_v34, 0.0  ;;  %v3079_v0 = vmul.f32 %v5717_v11, %v5717_v11 }
 0x211   : > { %v3010_v28 = vadd.f32 %v3009_v3, %v3008_v8  ;;  %v3080_v49 = vmul.f32 %v5715_v48, %v5715_v48  ;;  %v3081_v36 = vmul.f32 %v5727_v57, %v5727_v57  ;;  %v3025_v33 = vsel %vm379_vm1, %v5767_v31, 0.0 }
 0x212   : > { %v3082_v47 = vmul.f32 %v5725_v63, %v5725_v63  ;;  %v3027_v37 = vsel %vm379_vm1, %v5765_v18, 0.0  ;;  %v3083_v11 = vmul.f32 %v5737_v62, %v5737_v62  ;;  %v3111_v4 = vsel %vm379_vm1, %v3079_v0, 0.0 }
 0x213   : > { %v3012_v21 = vadd.f32 %v3011_v22, %v3010_v28  ;;  %v3112_v48 = vsel %vm379_vm1, %v3080_v49, 0.0  ;;  %v3114_v57 = vsel %vm379_vm1, %v3081_v36, 0.0  ;;  %v3029_v25 = vsel %vm379_vm1, %v5777_v50, 0.0 }
 0x214   : > { %v3113_v15 = vadd.f32 %v3112_v48, %v3111_v4  ;;  %v3084_v63 = vmul.f32 %v5735_v38, %v5735_v38  ;;  %v3116_v32 = vsel %vm379_vm1, %v3082_v47, 0.0  ;;  %v3031_v62 = vsel %vm379_vm1, %v5775_v42, 0.0 }
 0x215   : > { %v3014_v10 = vadd.f32 %v3013_v53, %v3012_v21  ;;  %v3085_v6 = vmul.f32 %v5747_v27, %v5747_v27  ;;  %v3118_v58 = vsel %vm379_vm1, %v3083_v11, 0.0  ;;  %v3033_v22 = vsel %vm379_vm1, %v5787_v46, 0.0 }
 0x216   : > { %v3115_v9 = vadd.f32 %v3114_v57, %v3113_v15  ;;  %v3086_v38 = vmul.f32 %v5745_v35, %v5745_v35  ;;  %v3120_v28 = vsel %vm379_vm1, %v3084_v63, 0.0  ;;  %v3087_v27 = vmul.f32 %v5757_v1, %v5757_v1 }
 0x217   : > { %v3016_v54 = vadd.f32 %v3015_v24, %v3014_v10  ;;  %v3035_v24 = vsel %vm379_vm1, %v5785_v26, 0.0  ;;  %v3122_v10 = vsel %vm379_vm1, %v3085_v6, 0.0  ;;  %v3088_v35 = vmul.f32 %v5755_v34, %v5755_v34 }
 0x218   : > { %v3117_v8 = vadd.f32 %v3116_v32, %v3115_v9  ;;  %v3089_v1 = vmul.f32 %v5767_v31, %v5767_v31  ;;  %v3126_v0 = vsel %vm379_vm1, %v3087_v27, 0.0  ;;  %v3041_v36 = vsel %vm379_vm1, %v5807_v55, 0.0 }
 0x219   : > { %v3018_v13 = vadd.f32 %v3017_v40, %v3016_v54  ;;  %v3090_v34 = vmul.f32 %v5765_v18, %v5765_v18  ;;  %v3091_v31 = vmul.f32 %v5777_v50, %v5777_v50  ;;  %v3092_v18 = vmul.f32 %v5775_v42, %v5775_v42 }
 0x21a   : > { %v3119_v21 = vadd.f32 %v3118_v58, %v3117_v8  ;;  %v3130_v11 = vsel %vm379_vm1, %v3089_v1, 0.0  ;;  %v3047_v63 = vsel %vm379_vm1, %v5815_v12, 0.0  ;;  %v3093_v50 = vmul.f32 %v5787_v46, %v5787_v46 }
 0x21b   : > { %v3020_v61 = vadd.f32 %v3019_v19, %v3018_v13  ;;  %v3037_v19 = vsel %vm379_vm1, %v5797_v7, 0.0  ;;  %v3124_v13 = vsel %vm379_vm1, %v3086_v38, 0.0  ;;  %v3132_v15 = vsel %vm379_vm1, %v3090_v34, 0.0 }
 0x21c   : > { %v3121_v54 = vadd.f32 %v3120_v28, %v3119_v21  ;;  %v3134_v32 = vsel %vm379_vm1, %v3091_v31, 0.0  ;;  %v3094_v42 = vmul.f32 %v5785_v26, %v5785_v26  ;;  %v3136_v6 = vsel %vm379_vm1, %v3092_v18, 0.0 }
 0x21d   : > { %v3022_v14 = vadd.f32 %v3021_v41, %v3020_v61  ;;  %v3051_v8 = vsel %vm379_vm1, %v5825_v39, 0.0  ;;  %v3095_v46 = vmul.f32 %v5797_v7, %v5797_v7  ;;  %v3096_v26 = vmul.f32 %v5795_v59, %v5795_v59 }
 0x21e   : > { %v3123_v61 = vadd.f32 %v3122_v10, %v3121_v54  ;;  %v3140_v21 = vsel %vm379_vm1, %v3094_v42, 0.0  ;;  %v3055_v10 = vsel %vm379_vm1, %v5835_v16, 0.0  ;;  %v3097_v7 = vmul.f32 %v5807_v55, %v5807_v55 }
 0x21f   : > { %v3024_v30 = vadd.f32 %v3023_v45, %v3022_v14  ;;  %v3039_v45 = vsel %vm379_vm1, %v5795_v59, 0.0  ;;  %v3098_v59 = vmul.f32 %v5805_v29, %v5805_v29  ;;  %v3099_v55 = vmul.f32 %v5817_v20, %v5817_v20 }
 0x220   : > { %v3125_v14 = vadd.f32 %v3124_v13, %v3123_v61  ;;  %v3144_v13 = vsel %vm379_vm1, %v3096_v26, 0.0  ;;  %v3146_v1 = vsel %vm379_vm1, %v3097_v7, 0.0  ;;  %v3067_v18 = vsel %vm379_vm1, %v5865_v43, 0.0 }
 0x221   : > { %v3026_v2 = vadd.f32 %v3025_v33, %v3024_v30  ;;  %v3128_v33 = vsel %vm379_vm1, %v3088_v35, 0.0  ;;  %v3057_v35 = vsel %vm379_vm1, %v5847_v23, 0.0  ;;  %vm3076_vm4 = vcmask 57344  }
 0x222   : > { %v3127_v30 = vadd.f32 %v3126_v0, %v3125_v14  ;;  %v3061_v14 = vsel %vm379_vm1, %v5857_v60, 0.0 }
 0x223   : > { %v3028_v52 = vadd.f32 %v3027_v37, %v3026_v2  ;;  %v3043_v37 = vsel %vm379_vm1, %v5805_v29, 0.0  ;;  %v3045_v2 = vsel %vm379_vm1, %v5817_v20, 0.0  ;;  %v3100_v29 = vmul.f32 %v5815_v12, %v5815_v12 }
 0x224   : > { %v3129_v48 = vadd.f32 %v3128_v33, %v3127_v30  ;;  %v3101_v20 = vmul.f32 %v5827_v17, %v5827_v17  ;;  %v3150_v30 = vsel %vm379_vm1, %v3099_v55, 0.0  ;;  %v3102_v12 = vmul.f32 %v5825_v39, %v5825_v39  ;;  %v3078_v55 = vld [vmem:[%s6063_s4] sm:$0x1] }
 0x225   : > { %v3030_v3 = vadd.f32 %v3029_v25, %v3028_v52 }
 0x226   : > { %v3131_v25 = vadd.f32 %v3130_v11, %v3129_v48  ;;  %v3065_v11 = vsel %vm379_vm1, %v5867_v51, 0.0 }
 0x227   : > { %v3032_v53 = vadd.f32 %v3031_v62, %v3030_v3  ;;  %v3049_v62 = vsel %vm379_vm1, %v5827_v17, 0.0  ;;  %v3103_v17 = vmul.f32 %v5837_v56, %v5837_v56 }
 0x228   : > { %v3133_v9 = vadd.f32 %v3132_v15, %v3131_v25  ;;  %v3154_v15 = vsel %vm379_vm1, %v3101_v20, 0.0 }
 0x229   : > { %v3034_v40 = vadd.f32 %v3033_v22, %v3032_v53  ;;  %v3138_v22 = vsel %vm379_vm1, %v3093_v50, 0.0  ;;  %v3053_v53 = vsel %vm379_vm1, %v5837_v56, 0.0  ;;  %v3156_v50 = vsel %vm379_vm1, %v3102_v12, 0.0 }
 0x22a   : > { %v3135_v3 = vadd.f32 %v3134_v32, %v3133_v9  ;;  %v3158_v9 = vsel %vm379_vm1, %v3103_v17, 0.0  ;;  %v3106_v56 = vmul.f32 %v5845_v5, %v5845_v5 }
 0x22b   : > { %v3036_v41 = vadd.f32 %v3035_v24, %v3034_v40  ;;  %v3142_v40 = vsel %vm379_vm1, %v3095_v46, 0.0 }
 0x22c   : > { %v3137_v28 = vadd.f32 %v3136_v6, %v3135_v3 }
 0x22d   : > { %v3038_v49 = vadd.f32 %v3037_v19, %v3036_v41 }
 0x22e   : > { %v3139_v27 = vadd.f32 %v3138_v22, %v3137_v28 }
 0x22f   : > { %v3040_v47 = vadd.f32 %v3039_v45, %v3038_v49  ;;  %v3059_v45 = vsel %vm379_vm1, %v5845_v5, 0.0  ;;  %v3109_v5 = vmul.f32 %v5867_v51, %v5867_v51 }
 0x230   : > { %v3141_v19 = vadd.f32 %v3140_v21, %v3139_v27  ;;  %v3110_v27 = vmul.f32 %v5865_v43, %v5865_v43 }
 0x231   : > { %v3042_v4 = vadd.f32 %v3041_v36, %v3040_v47  ;;  %v3148_v36 = vsel %vm379_vm1, %v3098_v59, 0.0  ;;  %v3063_v47 = vsel %vm379_vm1, %v5855_v44, 0.0 }
 0x232   : > { %v3143_v61 = vadd.f32 %v3142_v40, %v3141_v19  ;;  %v3170_v40 = vsel %vm379_vm1, %v3109_v5, 0.0  ;;  %v3172_v19 = vsel %vm379_vm1, %v3110_v27, 0.0 }
 0x233   : > { %v3044_v57 = vadd.f32 %v3043_v37, %v3042_v4  ;;  %v3152_v4 = vsel %vm379_vm1, %v3100_v29, 0.0 }
 0x234   : > { %v3145_v49 = vadd.f32 %v3144_v13, %v3143_v61 }
 0x235   : > { %v3046_v52 = vadd.f32 %v3045_v2, %v3044_v57 }
 0x236   : > { %v3147_v33 = vadd.f32 %v3146_v1, %v3145_v49 }
 0x237   : > { %v3048_v58 = vadd.f32 %v3047_v63, %v3046_v52  ;;  %v3104_v63 = vmul.f32 %v5835_v16, %v5835_v16  ;;  %v3105_v52 = vmul.f32 %v5847_v23, %v5847_v23  ;;  %v3107_v16 = vmul.f32 %v5857_v60, %v5857_v60  ;;  %v3005_v60 = vld [vmem:[%s6062_s3] sm:$0x1] }
 0x238   : > { %v3149_v31 = vadd.f32 %v3148_v36, %v3147_v33  ;;  %v3108_v23 = vmul.f32 %v5855_v44, %v5855_v44 }
 0x239   : > { %v3050_v38 = vadd.f32 %v3049_v62, %v3048_v58  ;;  %v3160_v6 = vsel %vm379_vm1, %v3104_v63, 0.0  ;;  %v3166_v26 = vsel %vm379_vm1, %v3107_v16, 0.0 }
 0x23a   : > { %v3151_v2 = vadd.f32 %v3150_v30, %v3149_v31  ;;  %v3168_v44 = vsel %vm379_vm1, %v3108_v23, 0.0 }
 0x23b   : > { %v3052_v24 = vadd.f32 %v3051_v8, %v3050_v38  ;;  %v3162_v8 = vsel %vm379_vm1, %v3105_v52, 0.0  ;;  %v3164_v38 = vsel %vm379_vm1, %v3106_v56, 0.0 }
 0x23c   : > { %v3153_v25 = vadd.f32 %v3152_v4, %v3151_v2 }
 0x23d   : > { %v3054_v54 = vadd.f32 %v3053_v53, %v3052_v24 }
 0x23e   : > { %v3155_v32 = vadd.f32 %v3154_v15, %v3153_v25 }
 0x23f   : > { %v3056_v41 = vadd.f32 %v3055_v10, %v3054_v54 }
 0x240   : > { %v3157_v42 = vadd.f32 %v3156_v50, %v3155_v32 }
 0x241   : > { %v3058_v0 = vadd.f32 %v3057_v35, %v3056_v41 }
 0x242   : > { %v3159_v3 = vadd.f32 %v3158_v9, %v3157_v42 }
 0x243   : > { %v3060_v34 = vadd.f32 %v3059_v45, %v3058_v0 }
 0x244   : > { %v3161_v22 = vadd.f32 %v3160_v6, %v3159_v3 }
 0x245   : > { %v3062_v37 = vadd.f32 %v3061_v14, %v3060_v34 }
 0x246   : > { %v3163_v53 = vadd.f32 %v3162_v8, %v3161_v22 }
 0x247   : > { %v3064_v48 = vadd.f32 %v3063_v47, %v3062_v37 }
 0x248   : > { %v3165_v24 = vadd.f32 %v3164_v38, %v3163_v53 }
 0x249   : > { %v3066_v57 = vadd.f32 %v3065_v11, %v3064_v48 }
 0x24a   : > { %v3167_v7 = vadd.f32 %v3166_v26, %v3165_v24 }
 0x24b   : > { %v3068_v39 = vadd.f32 %v3067_v18, %v3066_v57 }
 0x24c   : > { %v3169_v51 = vadd.f32 %v3168_v44, %v3167_v7 }
 0x24d   : > { %v3069_v62 = vrot.slane %v3068_v39, 4 }
 0x24e   : > { %v3171_v35 = vadd.f32 %v3170_v40, %v3169_v51 }
 0x24f   : > { %v3070_v58 = vadd.f32 %v3069_v62, %v3068_v39 }
 0x250   : > { %v3173_v59 = vadd.f32 %v3172_v19, %v3171_v35 }
 0x251   : > { %v3071_v46 = vrot.slane %v3070_v58, 2 }
 0x252   : > { %v3174_v13 = vrot.slane %v3173_v59, 4 }
 0x253   : > { %v3072_v28 = vadd.f32 %v3071_v46, %v3070_v58 }
 0x254   : > { %v3175_v43 = vadd.f32 %v3174_v13, %v3173_v59 }
 0x255   : > { %v3073_v21 = vrot.slane %v3072_v28, 1 }
 0x256   : > { %v3176_v41 = vrot.slane %v3175_v43, 2 }
 0x257   : > { %v3074_v10 = vadd.f32 %v3073_v21, %v3072_v28 }
 0x258   : > { %v3177_v61 = vadd.f32 %v3176_v41, %v3175_v43 }
 0x259   : > { %v3075_v54 = vadd.f32 %v3074_v10, %v3005_v60 }
 0x25a   : > { %v3178_v45 = vrot.slane %v3177_v61, 1 }
 0x25b   : > { %3077 = vst.msk [vmem:[%s6062_s3] sm:$0x1] %vm3076_vm4, %v3075_v54 }
 0x25c   : > { %v3179_v1 = vadd.f32 %v3178_v45, %v3177_v61 }
 0x25e   : > { %v3180_v0 = vadd.f32 %v3179_v1, %v3078_v55 }
 0x260   : > { %3181 = vst.msk [vmem:[%s6063_s4] sm:$0x1] %vm3076_vm4, %v3180_v0 }
 0x261 PF: > { %s15_s15 = sadd.s32 1, %s4578_s15  }
 0x262   : > { %p12_p5 = scmp.ge.s32.totalorder %s15_s15, 4  }
 0x264   :  { %14 = sbr.rel (!%p12_p5) target bundleno = 1 (0x1), region = 86 }

</bundles_post_ra>
